<compile_context>
chip_gen: v6e
topology: v6e:2x2x1
jax: 0.10.0
libtpu: 0.0.40
codegen_flags: <defaults>
</compile_context>

<pallas_src>
import functools

import jax
import jax.numpy as jnp
import numpy as np
from jax.experimental import pallas as pl
from jax.experimental.pallas import tpu as pltpu

LN_EPS = 1e-5
FRAME_EPS = 1e-10


def backbone_frame_kernel(x_ref, aff_ref, w_ref, b_ref, lng_ref, lnb_ref,
                          wbt_ref, bb_ref, ncac_ref, naff_ref, *, mm_dtype, inv_h):
    f32 = jnp.float32
    h = x_ref[...].astype(f32)                                  # (TM, Hp), tokens on sublanes

    def layer_norm(y, gamma, beta):
        # Single-pass statistics with the *real* feature-count divisor (padded feature
        # columns are exactly zero, so full-width sums are unaffected).
        mu = jnp.sum(y, axis=-1, keepdims=True) * inv_h
        ms = jnp.sum(y * y, axis=-1, keepdims=True) * inv_h
        var = jnp.maximum(ms - mu * mu, 0.0)                    # cancellation guard
        return (y - mu) * jax.lax.rsqrt(var + LN_EPS) * gamma + beta

    # --- embed_fc: 3 x FcResBlock(H -> H); bf16 MXU operands, f32 accumulation --------
    for blk in range(3):
        i1, i2 = 2 * blk, 2 * blk + 1
        y = jnp.dot(h.astype(mm_dtype), w_ref[i1],
                    preferred_element_type=f32) + b_ref[i1:i1 + 1, :]
        y = jnp.maximum(layer_norm(y, lng_ref[i1:i1 + 1, :], lnb_ref[i1:i1 + 1, :]), 0.0)
        y = jnp.dot(y.astype(mm_dtype), w_ref[i2],
                    preferred_element_type=f32) + b_ref[i2:i2 + 1, :]
        y = layer_norm(y, lng_ref[i2:i2 + 1, :], lnb_ref[i2:i2 + 1, :])
        h = jnp.maximum(h + y, 0.0)

    # --- backbone_fc, tokens-on-lanes (9, TM) without transposing h --------------------
    # (9, Hp) contracted with (TM, Hp) on the last dim of both (A @ B^T form).
    ncac_t = jax.lax.dot_general(
        wbt_ref[...], h.astype(mm_dtype),
        (((1,), (1,)), ((), ())),
        preferred_element_type=f32) + bb_ref[...]               # rows: 3*p + j (point-major)

    # --- affine_mul_vecs on (3, TM) sublane slabs --------------------------------------
    # aff rows (host-permuted, column-major): [R[:,0] | R[:,1] | R[:,2] | t], 3 rows each.
    aff = aff_ref[...].astype(f32)                              # (12, TM), tokens on lanes
    rcol = [aff[0:3, :], aff[3:6, :], aff[6:9, :]]              # R columns, rows = coord i
    tvec = aff[9:12, :]                                         # translation, rows = coord i

    pts = []                                                    # world coords, rows = coord i
    for p in range(3):                                          # p: 0=N, 1=CA, 2=C
        vp = ncac_t[3 * p:3 * p + 3, :]                         # local coords of point p
        gp = (tvec
              + rcol[0] * vp[0:1, :]                            # sublane-broadcast FMAs
              + rcol[1] * vp[1:2, :]
              + rcol[2] * vp[2:3, :])
        pts.append(gp)

    ncac_ref[...] = jnp.concatenate(pts, axis=0).astype(ncac_ref.dtype)   # (9, TM), rows 3p+i

    # --- affine_from_3_points(C=pts[2], CA=pts[1], N=pts[0]) on (3, TM) slabs ----------
    e0 = pts[1] - pts[2]                                        # CA - C
    e1 = pts[0] - pts[1]                                        # N  - CA
    inv0 = jax.lax.rsqrt(jnp.sum(e0 * e0, axis=0, keepdims=True) + FRAME_EPS)
    e0 = e0 * inv0
    d = jnp.sum(e0 * e1, axis=0, keepdims=True)
    e1 = e1 - d * e0
    inv1 = jax.lax.rsqrt(jnp.sum(e1 * e1, axis=0, keepdims=True) + FRAME_EPS)
    e1 = e1 * inv1

    def rot1(v):  # row i -> v[(i + 1) % 3]
        return jnp.concatenate([v[1:3, :], v[0:1, :]], axis=0)

    def rot2(v):  # row i -> v[(i + 2) % 3]
        return jnp.concatenate([v[2:3, :], v[0:2, :]], axis=0)

    e2 = rot1(e0) * rot2(e1) - rot2(e0) * rot1(e1)              # cross(e0, e1)

    # new_affine columns [-e0, e1, -e2, CA] (cols 0 and 2 negated), emitted column-major:
    # row index 3*c + i; the wrapper permutes back to (n, 3, 4).
    naff_ref[...] = jnp.concatenate([-e0, e1, -e2, pts[1]], axis=0).astype(naff_ref.dtype)


def _choose_tm(n):
    try:
        kind = jax.devices()[0].device_kind.lower()
    except Exception:
        kind = ""
    if any(v in kind for v in ("v2", "v3", "v4", "v5")):
        base = 256            # 4x128^2 MXU generation; halves per-step overhead vs 128
    elif "v6" in kind:
        base = 512            # 128 MiB VMEM: amortize per-step overhead further
    else:
        base = 256            # v7x / unknown: 64 MiB VMEM, keep >=2 steps for 2 TCs
    if n <= 128:
        return 128
    # Keep at least 2 grid steps (megacore load balance on v7x, pipelining everywhere).
    return max(128, min(base, 128 * ((n - 1) // 128)))


def backbone_frame_net(x, affine, params, *, tm=None, mm_dtype=jnp.bfloat16,
                       single_buffer_weights=None):
    n, h_real = x.shape
    out_dtype = x.dtype
    if tm is None:
        tm = _choose_tm(n)
    assert tm % 128 == 0

    # --- host-side padding: H -> multiple of 128 (lane-dense), tokens -> multiple of tm.
    hp = max(128, ((h_real + 127) // 128) * 128)
    dh = hp - h_real
    grid_len = pl.cdiv(n, tm)
    n_pad = grid_len * tm
    dn = n_pad - n

    xk = x
    if dh:
        xk = jnp.pad(xk, ((0, 0), (0, dh)))
    if dn:
        xk = jnp.pad(xk, ((0, dn), (0, 0)))

    # Affine permuted column-major: rows [R[:,0] | R[:,1] | R[:,2] | t], tokens on lanes.
    aff_t = affine.transpose(0, 2, 1).reshape(n, 12).T.astype(jnp.float32)   # (12, n)
    if dn:
        aff_t = jnp.pad(aff_t, ((0, 0), (0, dn)))

    w, b = params["w"], params["b"]
    gamma, beta = params["gamma"], params["beta"]
    wb, bb = params["wb"], params["bb"]
    if dh:
        # Zero padding keeps padded feature columns exactly zero through the trunk.
        w = jnp.pad(w, ((0, 0), (0, dh), (0, dh)))
        b = jnp.pad(b, ((0, 0), (0, dh)))
        gamma = jnp.pad(gamma, ((0, 0), (0, dh)))
        beta = jnp.pad(beta, ((0, 0), (0, dh)))
        wb = jnp.pad(wb, ((0, dh), (0, 0)))
    w = w.astype(mm_dtype)                                      # (6, hp, hp)
    b = b.astype(jnp.float32)
    gamma = gamma.astype(jnp.float32)
    beta = beta.astype(jnp.float32)
    wbt = wb.T.astype(mm_dtype)                                 # (9, hp)
    bb = bb.reshape(9, 1).astype(jnp.float32)                   # (9, 1)

    wbytes = jnp.dtype(mm_dtype).itemsize
    xbytes = jnp.dtype(xk.dtype).itemsize
    obytes = jnp.dtype(out_dtype).itemsize
    if single_buffer_weights is None:
        # Only worth it (and only needed, for v7x's 64 MiB VMEM) at large H.
        single_buffer_weights = (2 * 6 * hp * hp * wbytes) >= (16 << 20)
    wbuf = 1 if single_buffer_weights else 2

    full2 = lambda i: (0, 0)
    full3 = lambda i: (0, 0, 0)

    if single_buffer_weights:
        w_spec = pl.BlockSpec((6, hp, hp), full3, pipeline_mode=pl.Buffered(1))
    else:
        w_spec = pl.BlockSpec((6, hp, hp), full3)

    # Explicit VMEM budget: pipelined tiles + weights + headroom for in-kernel f32 temps.
    est = (2 * tm * hp * xbytes                 # x tiles (double-buffered)
           + 2 * 12 * tm * 4                    # affine tiles
           + 2 * (9 + 12) * tm * obytes         # output tiles
           + wbuf * 6 * hp * hp * wbytes        # fc weights
           + 2 * (3 * 6 * hp * 4                # fc bias + LN gamma/beta
                  + 9 * hp * wbytes + 9 * 4)    # backbone_fc weight + bias
           + 6 * tm * hp * 4)                   # in-kernel f32 temporaries headroom
    vmem_limit = int(min(48 << 20, max(32 << 20, est + (8 << 20))))

    kernel = functools.partial(backbone_frame_kernel,
                               mm_dtype=mm_dtype, inv_h=1.0 / float(h_real))

    ncac_t, naff_t = pl.pallas_call(
        kernel,
        out_shape=(jax.ShapeDtypeStruct((9, n_pad), out_dtype),
                   jax.ShapeDtypeStruct((12, n_pad), out_dtype)),
        grid_spec=pltpu.PrefetchScalarGridSpec(
            num_scalar_prefetch=0,
            grid=(grid_len,),
            in_specs=[
                pl.BlockSpec((tm, hp), lambda i: (i, 0)),       # x
                pl.BlockSpec((12, tm), lambda i: (0, i)),       # affine (tokens on lanes)
                w_spec,                                         # fc weights   (grid-invariant)
                pl.BlockSpec((6, hp), full2),                   # fc biases    (grid-invariant)
                pl.BlockSpec((6, hp), full2),                   # LN gamma     (grid-invariant)
                pl.BlockSpec((6, hp), full2),                   # LN beta      (grid-invariant)
                pl.BlockSpec((9, hp), full2),                   # backbone_fc weight^T
                pl.BlockSpec((9, 1), full2),                    # backbone_fc bias
            ],
            out_specs=[
                pl.BlockSpec((9, tm), lambda i: (0, i)),        # ncac, lane-dense
                pl.BlockSpec((12, tm), lambda i: (0, i)),       # new_affine, lane-dense
            ],
        ),
        compiler_params=pltpu.CompilerParams(
            dimension_semantics=("parallel",),
            vmem_limit_bytes=vmem_limit),
    )(xk, aff_t, w, b, gamma, beta, wbt, bb)

    # Kernel layouts back to module layouts (cheap host-side XLA transposes).
    ncac = ncac_t[:, :n].T.reshape(n, 3, 3)                     # rows 3p+i -> (n, p, i)
    new_affine = naff_t[:, :n].T.reshape(n, 4, 3).transpose(0, 2, 1)   # rows 3c+i -> (n, i, c)
    return ncac, new_affine


def init_params(key, h):
    k0, k1, k2 = jax.random.split(key, 3)
    return dict(
        w=jax.random.normal(k0, (6, h, h), jnp.float32) / np.sqrt(h),
        b=jax.random.normal(k1, (6, h), jnp.float32) * 0.01,
        gamma=jnp.ones((6, h), jnp.float32),
        beta=jnp.zeros((6, h), jnp.float32),
        wb=jax.random.normal(k2, (h, 9), jnp.float32) * 0.02,
        bb=jnp.array([0, 1, 0, 0, 0, 0, 1, 0, 0], jnp.float32),
    )


def _layer_norm_ref(y, gamma, beta):
    mu = jnp.mean(y, axis=-1, keepdims=True)
    var = jnp.mean((y - mu) ** 2, axis=-1, keepdims=True)
    return (y - mu) * jax.lax.rsqrt(var + LN_EPS) * gamma + beta


def reference(x, affine, params, mm_dtype=jnp.float32):
    def mm(a, bmat):
        return jnp.dot(a.astype(mm_dtype), bmat.astype(mm_dtype),
                       preferred_element_type=jnp.float32)

    h = x.astype(jnp.float32)
    for blk in range(3):
        i1, i2 = 2 * blk, 2 * blk + 1
        y = mm(h, params["w"][i1]) + params["b"][i1]
        y = jnp.maximum(_layer_norm_ref(y, params["gamma"][i1], params["beta"][i1]), 0.0)
        y = mm(y, params["w"][i2]) + params["b"][i2]
        y = _layer_norm_ref(y, params["gamma"][i2], params["beta"][i2])
        h = jnp.maximum(h + y, 0.0)
    ncac_loc = (mm(h, params["wb"]) + params["bb"]).reshape(-1, 3, 3)
    rot, trans = affine[:, :3, :3], affine[:, :3, 3]
    ncac = jnp.einsum("nij,npj->npi", rot, ncac_loc) + trans[:, None, :]
    c, ca, n_at = ncac[:, 2], ncac[:, 1], ncac[:, 0]
    e0 = ca - c
    e1 = n_at - ca
    e0 = e0 * jax.lax.rsqrt((e0 ** 2).sum(-1, keepdims=True) + FRAME_EPS)
    d = (e0 * e1).sum(-1, keepdims=True)
    e1 = e1 - d * e0
    e1 = e1 * jax.lax.rsqrt((e1 ** 2).sum(-1, keepdims=True) + FRAME_EPS)
    e2 = jnp.cross(e0, e1)
    rot_new = jnp.stack([-e0, e1, -e2], axis=-1)
    new_affine = jnp.concatenate([rot_new, ca[:, :, None]], axis=-1)
    return ncac, new_affine


if __name__ == "__main__":
    # --- config 1: small shapes consistent with the module ---------------------------
    n, hfz = 16, 32
    key = jax.random.PRNGKey(0)
    kx, kr, kt = jax.random.split(key, 3)

    x = jax.random.normal(kx, (n, hfz), jnp.float32)
    q, _ = jnp.linalg.qr(jax.random.normal(kr, (n, 3, 3), jnp.float32))
    t = jax.random.normal(kt, (n, 3), jnp.float32)
    affine = jnp.concatenate([q, t[:, :, None]], axis=-1)        # (n, 3, 4)

    params = init_params(jax.random.PRNGKey(42), hfz)

    ncac, new_affine = backbone_frame_net(x, affine, params)
    jax.block_until_ready((ncac, new_affine))

    # Tight check vs a reference mirroring the bf16 MXU operands (verifies kernel math /
    # layout / padding), plus a looser check vs full-f32 module semantics.
    ncac_bf, naff_bf = reference(x, affine, params, mm_dtype=jnp.bfloat16)
    assert np.allclose(np.asarray(ncac), np.asarray(ncac_bf), atol=5e-3, rtol=5e-3)
    assert np.allclose(np.asarray(new_affine), np.asarray(naff_bf), atol=5e-3, rtol=5e-3)

    ncac_f32, naff_f32 = reference(x, affine, params, mm_dtype=jnp.float32)
    assert np.allclose(np.asarray(ncac), np.asarray(ncac_f32), atol=5e-2, rtol=5e-2)
    assert np.allclose(np.asarray(new_affine), np.asarray(naff_f32), atol=5e-2, rtol=5e-2)

    # --- config 2: exercises multi-step grid + token padding + H padding --------------
    n2, h2 = 200, 48
    k2x, k2r, k2t = jax.random.split(jax.random.PRNGKey(1), 3)
    x2 = jax.random.normal(k2x, (n2, h2), jnp.float32)
    q2, _ = jnp.linalg.qr(jax.random.normal(k2r, (n2, 3, 3), jnp.float32))
    t2 = jax.random.normal(k2t, (n2, 3), jnp.float32)
    affine2 = jnp.concatenate([q2, t2[:, :, None]], axis=-1)
    params2 = init_params(jax.random.PRNGKey(7), h2)

    ncac2, naff2 = backbone_frame_net(x2, affine2, params2)
    jax.block_until_ready((ncac2, naff2))
    ncac2_bf, naff2_bf = reference(x2, affine2, params2, mm_dtype=jnp.bfloat16)
    assert np.allclose(np.asarray(ncac2), np.asarray(ncac2_bf), atol=1e-2, rtol=1e-2)
    assert np.allclose(np.asarray(naff2), np.asarray(naff2_bf), atol=1e-2, rtol=1e-2)

    print("KERNEL_OK")
</pallas_src>

<mosaic_0001>
module attributes {stable_mosaic.version = 11 : i64} {
  func.func @backbone_frame_kernel(%arg0: i32, %arg1: memref<128x128xf32, #tpu.memory_space<vmem>>, %arg2: memref<12x128xf32, #tpu.memory_space<vmem>>, %arg3: memref<6x128x128xbf16, #tpu.memory_space<vmem>>, %arg4: memref<6x128xf32, #tpu.memory_space<vmem>>, %arg5: memref<6x128xf32, #tpu.memory_space<vmem>>, %arg6: memref<6x128xf32, #tpu.memory_space<vmem>>, %arg7: memref<9x128xbf16, #tpu.memory_space<vmem>>, %arg8: memref<9x1xf32, #tpu.memory_space<vmem>>, %arg9: memref<9x128xf32, #tpu.memory_space<vmem>>, %arg10: memref<12x128xf32, #tpu.memory_space<vmem>>) attributes {dimension_semantics = [#tpu.dimension_semantics<parallel>], iteration_bounds = array<i64: 1>, scalar_prefetch = 0 : i64, scratch_operands = 0 : i64, tpu.core_type = #tpu.core_type<tc>, window_params = [{transform_indices = @transform_0, window_bounds = array<i64: 128, 128>}, {transform_indices = @transform_1, window_bounds = array<i64: 12, 128>}, {pipeline_mode = #tpu.pipeline_mode<synchronous>, transform_indices = @transform_2, window_bounds = array<i64: 6, 128, 128>}, {pipeline_mode = #tpu.pipeline_mode<synchronous>, transform_indices = @transform_3, window_bounds = array<i64: 6, 128>}, {pipeline_mode = #tpu.pipeline_mode<synchronous>, transform_indices = @transform_4, window_bounds = array<i64: 6, 128>}, {pipeline_mode = #tpu.pipeline_mode<synchronous>, transform_indices = @transform_5, window_bounds = array<i64: 6, 128>}, {pipeline_mode = #tpu.pipeline_mode<synchronous>, transform_indices = @transform_6, window_bounds = array<i64: 9, 128>}, {pipeline_mode = #tpu.pipeline_mode<synchronous>, transform_indices = @transform_7, window_bounds = array<i64: 9, 1>}, {transform_indices = @transform_8, window_bounds = array<i64: 9, 128>}, {transform_indices = @transform_9, window_bounds = array<i64: 12, 128>}]} {
    %c0 = arith.constant 0 : index
    %c0_0 = arith.constant 0 : index
    %0 = vector.load %arg1[%c0, %c0_0] : memref<128x128xf32, #tpu.memory_space<vmem>>, vector<128x128xf32>
    %1 = arith.truncf %0 : vector<128x128xf32> to vector<128x128xbf16>
    %c0_1 = arith.constant 0 : index
    %c0_2 = arith.constant 0 : index
    %c0_3 = arith.constant 0 : index
    %2 = vector.load %arg3[%c0_1, %c0_2, %c0_3] : memref<6x128x128xbf16, #tpu.memory_space<vmem>>, vector<1x128x128xbf16>
    %3 = vector.shape_cast %2 : vector<1x128x128xbf16> to vector<128x128xbf16>
    %cst = arith.constant dense<0.000000e+00> : vector<128x128xf32>
    %4 = tpu.matmul %1, %3, %cst {dimension_numbers = #tpu.dot_dimension_numbers<[1], [0], [0], [1], [0, 0, 1, 1], [], []>} : vector<128x128xbf16>, vector<128x128xbf16>, vector<128x128xf32> -> vector<128x128xf32>
    %c0_4 = arith.constant 0 : index
    %c0_5 = arith.constant 0 : index
    %5 = vector.load %arg4[%c0_4, %c0_5] : memref<6x128xf32, #tpu.memory_space<vmem>>, vector<1x128xf32>
    %6 = vector.broadcast %5 : vector<1x128xf32> to vector<128x128xf32>
    %7 = arith.addf %4, %6 : vector<128x128xf32>
    %c0_6 = arith.constant 0 : index
    %c0_7 = arith.constant 0 : index
    %8 = vector.load %arg5[%c0_6, %c0_7] : memref<6x128xf32, #tpu.memory_space<vmem>>, vector<1x128xf32>
    %c0_8 = arith.constant 0 : index
    %c0_9 = arith.constant 0 : index
    %9 = vector.load %arg6[%c0_8, %c0_9] : memref<6x128xf32, #tpu.memory_space<vmem>>, vector<1x128xf32>
    %cst_10 = arith.constant dense<0.000000e+00> : vector<128xf32>
    %10 = vector.multi_reduction <add>, %7, %cst_10 [1] : vector<128x128xf32> to vector<128xf32>
    %11 = vector.shape_cast %10 : vector<128xf32> to vector<128x1xf32>
    %cst_11 = arith.constant 3.125000e-02 : f32
    %12 = vector.broadcast %cst_11 : f32 to vector<128x1xf32>
    %13 = arith.mulf %11, %12 : vector<128x1xf32>
    %14 = arith.mulf %7, %7 : vector<128x128xf32>
    %cst_12 = arith.constant dense<0.000000e+00> : vector<128xf32>
    %15 = vector.multi_reduction <add>, %14, %cst_12 [1] : vector<128x128xf32> to vector<128xf32>
    %16 = vector.shape_cast %15 : vector<128xf32> to vector<128x1xf32>
    %cst_13 = arith.constant 3.125000e-02 : f32
    %17 = vector.broadcast %cst_13 : f32 to vector<128x1xf32>
    %18 = arith.mulf %16, %17 : vector<128x1xf32>
    %19 = arith.mulf %13, %13 : vector<128x1xf32>
    %20 = arith.subf %18, %19 : vector<128x1xf32>
    %cst_14 = arith.constant 0.000000e+00 : f32
    %21 = vector.broadcast %cst_14 : f32 to vector<128x1xf32>
    %22 = arith.maximumf %20, %21 : vector<128x1xf32>
    %23 = vector.broadcast %13 : vector<128x1xf32> to vector<128x128xf32>
    %24 = arith.subf %7, %23 : vector<128x128xf32>
    %cst_15 = arith.constant 9.99999974E-6 : f32
    %25 = vector.broadcast %cst_15 : f32 to vector<128x1xf32>
    %26 = arith.addf %22, %25 : vector<128x1xf32>
    %27 = math.rsqrt %26 : vector<128x1xf32>
    %28 = vector.broadcast %27 : vector<128x1xf32> to vector<128x128xf32>
    %29 = arith.mulf %24, %28 : vector<128x128xf32>
    %30 = vector.broadcast %8 : vector<1x128xf32> to vector<128x128xf32>
    %31 = arith.mulf %29, %30 : vector<128x128xf32>
    %32 = vector.broadcast %9 : vector<1x128xf32> to vector<128x128xf32>
    %33 = arith.addf %31, %32 : vector<128x128xf32>
    %cst_16 = arith.constant 0.000000e+00 : f32
    %34 = vector.broadcast %cst_16 : f32 to vector<128x128xf32>
    %35 = arith.maximumf %33, %34 : vector<128x128xf32>
    %36 = arith.truncf %35 : vector<128x128xf32> to vector<128x128xbf16>
    %c1 = arith.constant 1 : index
    %c0_17 = arith.constant 0 : index
    %c0_18 = arith.constant 0 : index
    %37 = vector.load %arg3[%c1, %c0_17, %c0_18] : memref<6x128x128xbf16, #tpu.memory_space<vmem>>, vector<1x128x128xbf16>
    %38 = vector.shape_cast %37 : vector<1x128x128xbf16> to vector<128x128xbf16>
    %cst_19 = arith.constant dense<0.000000e+00> : vector<128x128xf32>
    %39 = tpu.matmul %36, %38, %cst_19 {dimension_numbers = #tpu.dot_dimension_numbers<[1], [0], [0], [1], [0, 0, 1, 1], [], []>} : vector<128x128xbf16>, vector<128x128xbf16>, vector<128x128xf32> -> vector<128x128xf32>
    %c1_20 = arith.constant 1 : index
    %c0_21 = arith.constant 0 : index
    %40 = vector.load %arg4[%c1_20, %c0_21] : memref<6x128xf32, #tpu.memory_space<vmem>>, vector<1x128xf32>
    %41 = vector.broadcast %40 : vector<1x128xf32> to vector<128x128xf32>
    %42 = arith.addf %39, %41 : vector<128x128xf32>
    %c1_22 = arith.constant 1 : index
    %c0_23 = arith.constant 0 : index
    %43 = vector.load %arg5[%c1_22, %c0_23] : memref<6x128xf32, #tpu.memory_space<vmem>>, vector<1x128xf32>
    %c1_24 = arith.constant 1 : index
    %c0_25 = arith.constant 0 : index
    %44 = vector.load %arg6[%c1_24, %c0_25] : memref<6x128xf32, #tpu.memory_space<vmem>>, vector<1x128xf32>
    %cst_26 = arith.constant dense<0.000000e+00> : vector<128xf32>
    %45 = vector.multi_reduction <add>, %42, %cst_26 [1] : vector<128x128xf32> to vector<128xf32>
    %46 = vector.shape_cast %45 : vector<128xf32> to vector<128x1xf32>
    %cst_27 = arith.constant 3.125000e-02 : f32
    %47 = vector.broadcast %cst_27 : f32 to vector<128x1xf32>
    %48 = arith.mulf %46, %47 : vector<128x1xf32>
    %49 = arith.mulf %42, %42 : vector<128x128xf32>
    %cst_28 = arith.constant dense<0.000000e+00> : vector<128xf32>
    %50 = vector.multi_reduction <add>, %49, %cst_28 [1] : vector<128x128xf32> to vector<128xf32>
    %51 = vector.shape_cast %50 : vector<128xf32> to vector<128x1xf32>
    %cst_29 = arith.constant 3.125000e-02 : f32
    %52 = vector.broadcast %cst_29 : f32 to vector<128x1xf32>
    %53 = arith.mulf %51, %52 : vector<128x1xf32>
    %54 = arith.mulf %48, %48 : vector<128x1xf32>
    %55 = arith.subf %53, %54 : vector<128x1xf32>
    %cst_30 = arith.constant 0.000000e+00 : f32
    %56 = vector.broadcast %cst_30 : f32 to vector<128x1xf32>
    %57 = arith.maximumf %55, %56 : vector<128x1xf32>
    %58 = vector.broadcast %48 : vector<128x1xf32> to vector<128x128xf32>
    %59 = arith.subf %42, %58 : vector<128x128xf32>
    %cst_31 = arith.constant 9.99999974E-6 : f32
    %60 = vector.broadcast %cst_31 : f32 to vector<128x1xf32>
    %61 = arith.addf %57, %60 : vector<128x1xf32>
    %62 = math.rsqrt %61 : vector<128x1xf32>
    %63 = vector.broadcast %62 : vector<128x1xf32> to vector<128x128xf32>
    %64 = arith.mulf %59, %63 : vector<128x128xf32>
    %65 = vector.broadcast %43 : vector<1x128xf32> to vector<128x128xf32>
    %66 = arith.mulf %64, %65 : vector<128x128xf32>
    %67 = vector.broadcast %44 : vector<1x128xf32> to vector<128x128xf32>
    %68 = arith.addf %66, %67 : vector<128x128xf32>
    %69 = arith.addf %0, %68 : vector<128x128xf32>
    %cst_32 = arith.constant 0.000000e+00 : f32
    %70 = vector.broadcast %cst_32 : f32 to vector<128x128xf32>
    %71 = arith.maximumf %69, %70 : vector<128x128xf32>
    %72 = arith.truncf %71 : vector<128x128xf32> to vector<128x128xbf16>
    %c2 = arith.constant 2 : index
    %c0_33 = arith.constant 0 : index
    %c0_34 = arith.constant 0 : index
    %73 = vector.load %arg3[%c2, %c0_33, %c0_34] : memref<6x128x128xbf16, #tpu.memory_space<vmem>>, vector<1x128x128xbf16>
    %74 = vector.shape_cast %73 : vector<1x128x128xbf16> to vector<128x128xbf16>
    %cst_35 = arith.constant dense<0.000000e+00> : vector<128x128xf32>
    %75 = tpu.matmul %72, %74, %cst_35 {dimension_numbers = #tpu.dot_dimension_numbers<[1], [0], [0], [1], [0, 0, 1, 1], [], []>} : vector<128x128xbf16>, vector<128x128xbf16>, vector<128x128xf32> -> vector<128x128xf32>
    %c2_36 = arith.constant 2 : index
    %c0_37 = arith.constant 0 : index
    %76 = vector.load %arg4[%c2_36, %c0_37] : memref<6x128xf32, #tpu.memory_space<vmem>>, vector<1x128xf32>
    %77 = vector.broadcast %76 : vector<1x128xf32> to vector<128x128xf32>
    %78 = arith.addf %75, %77 : vector<128x128xf32>
    %c2_38 = arith.constant 2 : index
    %c0_39 = arith.constant 0 : index
    %79 = vector.load %arg5[%c2_38, %c0_39] : memref<6x128xf32, #tpu.memory_space<vmem>>, vector<1x128xf32>
    %c2_40 = arith.constant 2 : index
    %c0_41 = arith.constant 0 : index
    %80 = vector.load %arg6[%c2_40, %c0_41] : memref<6x128xf32, #tpu.memory_space<vmem>>, vector<1x128xf32>
    %cst_42 = arith.constant dense<0.000000e+00> : vector<128xf32>
    %81 = vector.multi_reduction <add>, %78, %cst_42 [1] : vector<128x128xf32> to vector<128xf32>
    %82 = vector.shape_cast %81 : vector<128xf32> to vector<128x1xf32>
    %cst_43 = arith.constant 3.125000e-02 : f32
    %83 = vector.broadcast %cst_43 : f32 to vector<128x1xf32>
    %84 = arith.mulf %82, %83 : vector<128x1xf32>
    %85 = arith.mulf %78, %78 : vector<128x128xf32>
    %cst_44 = arith.constant dense<0.000000e+00> : vector<128xf32>
    %86 = vector.multi_reduction <add>, %85, %cst_44 [1] : vector<128x128xf32> to vector<128xf32>
    %87 = vector.shape_cast %86 : vector<128xf32> to vector<128x1xf32>
    %cst_45 = arith.constant 3.125000e-02 : f32
    %88 = vector.broadcast %cst_45 : f32 to vector<128x1xf32>
    %89 = arith.mulf %87, %88 : vector<128x1xf32>
    %90 = arith.mulf %84, %84 : vector<128x1xf32>
    %91 = arith.subf %89, %90 : vector<128x1xf32>
    %cst_46 = arith.constant 0.000000e+00 : f32
    %92 = vector.broadcast %cst_46 : f32 to vector<128x1xf32>
    %93 = arith.maximumf %91, %92 : vector<128x1xf32>
    %94 = vector.broadcast %84 : vector<128x1xf32> to vector<128x128xf32>
    %95 = arith.subf %78, %94 : vector<128x128xf32>
    %cst_47 = arith.constant 9.99999974E-6 : f32
    %96 = vector.broadcast %cst_47 : f32 to vector<128x1xf32>
    %97 = arith.addf %93, %96 : vector<128x1xf32>
    %98 = math.rsqrt %97 : vector<128x1xf32>
    %99 = vector.broadcast %98 : vector<128x1xf32> to vector<128x128xf32>
    %100 = arith.mulf %95, %99 : vector<128x128xf32>
    %101 = vector.broadcast %79 : vector<1x128xf32> to vector<128x128xf32>
    %102 = arith.mulf %100, %101 : vector<128x128xf32>
    %103 = vector.broadcast %80 : vector<1x128xf32> to vector<128x128xf32>
    %104 = arith.addf %102, %103 : vector<128x128xf32>
    %cst_48 = arith.constant 0.000000e+00 : f32
    %105 = vector.broadcast %cst_48 : f32 to vector<128x128xf32>
    %106 = arith.maximumf %104, %105 : vector<128x128xf32>
    %107 = arith.truncf %106 : vector<128x128xf32> to vector<128x128xbf16>
    %c3 = arith.constant 3 : index
    %c0_49 = arith.constant 0 : index
    %c0_50 = arith.constant 0 : index
    %108 = vector.load %arg3[%c3, %c0_49, %c0_50] : memref<6x128x128xbf16, #tpu.memory_space<vmem>>, vector<1x128x128xbf16>
    %109 = vector.shape_cast %108 : vector<1x128x128xbf16> to vector<128x128xbf16>
    %cst_51 = arith.constant dense<0.000000e+00> : vector<128x128xf32>
    %110 = tpu.matmul %107, %109, %cst_51 {dimension_numbers = #tpu.dot_dimension_numbers<[1], [0], [0], [1], [0, 0, 1, 1], [], []>} : vector<128x128xbf16>, vector<128x128xbf16>, vector<128x128xf32> -> vector<128x128xf32>
    %c3_52 = arith.constant 3 : index
    %c0_53 = arith.constant 0 : index
    %111 = vector.load %arg4[%c3_52, %c0_53] : memref<6x128xf32, #tpu.memory_space<vmem>>, vector<1x128xf32>
    %112 = vector.broadcast %111 : vector<1x128xf32> to vector<128x128xf32>
    %113 = arith.addf %110, %112 : vector<128x128xf32>
    %c3_54 = arith.constant 3 : index
    %c0_55 = arith.constant 0 : index
    %114 = vector.load %arg5[%c3_54, %c0_55] : memref<6x128xf32, #tpu.memory_space<vmem>>, vector<1x128xf32>
    %c3_56 = arith.constant 3 : index
    %c0_57 = arith.constant 0 : index
    %115 = vector.load %arg6[%c3_56, %c0_57] : memref<6x128xf32, #tpu.memory_space<vmem>>, vector<1x128xf32>
    %cst_58 = arith.constant dense<0.000000e+00> : vector<128xf32>
    %116 = vector.multi_reduction <add>, %113, %cst_58 [1] : vector<128x128xf32> to vector<128xf32>
    %117 = vector.shape_cast %116 : vector<128xf32> to vector<128x1xf32>
    %cst_59 = arith.constant 3.125000e-02 : f32
    %118 = vector.broadcast %cst_59 : f32 to vector<128x1xf32>
    %119 = arith.mulf %117, %118 : vector<128x1xf32>
    %120 = arith.mulf %113, %113 : vector<128x128xf32>
    %cst_60 = arith.constant dense<0.000000e+00> : vector<128xf32>
    %121 = vector.multi_reduction <add>, %120, %cst_60 [1] : vector<128x128xf32> to vector<128xf32>
    %122 = vector.shape_cast %121 : vector<128xf32> to vector<128x1xf32>
    %cst_61 = arith.constant 3.125000e-02 : f32
    %123 = vector.broadcast %cst_61 : f32 to vector<128x1xf32>
    %124 = arith.mulf %122, %123 : vector<128x1xf32>
    %125 = arith.mulf %119, %119 : vector<128x1xf32>
    %126 = arith.subf %124, %125 : vector<128x1xf32>
    %cst_62 = arith.constant 0.000000e+00 : f32
    %127 = vector.broadcast %cst_62 : f32 to vector<128x1xf32>
    %128 = arith.maximumf %126, %127 : vector<128x1xf32>
    %129 = vector.broadcast %119 : vector<128x1xf32> to vector<128x128xf32>
    %130 = arith.subf %113, %129 : vector<128x128xf32>
    %cst_63 = arith.constant 9.99999974E-6 : f32
    %131 = vector.broadcast %cst_63 : f32 to vector<128x1xf32>
    %132 = arith.addf %128, %131 : vector<128x1xf32>
    %133 = math.rsqrt %132 : vector<128x1xf32>
    %134 = vector.broadcast %133 : vector<128x1xf32> to vector<128x128xf32>
    %135 = arith.mulf %130, %134 : vector<128x128xf32>
    %136 = vector.broadcast %114 : vector<1x128xf32> to vector<128x128xf32>
    %137 = arith.mulf %135, %136 : vector<128x128xf32>
    %138 = vector.broadcast %115 : vector<1x128xf32> to vector<128x128xf32>
    %139 = arith.addf %137, %138 : vector<128x128xf32>
    %140 = arith.addf %71, %139 : vector<128x128xf32>
    %cst_64 = arith.constant 0.000000e+00 : f32
    %141 = vector.broadcast %cst_64 : f32 to vector<128x128xf32>
    %142 = arith.maximumf %140, %141 : vector<128x128xf32>
    %143 = arith.truncf %142 : vector<128x128xf32> to vector<128x128xbf16>
    %c4 = arith.constant 4 : index
    %c0_65 = arith.constant 0 : index
    %c0_66 = arith.constant 0 : index
    %144 = vector.load %arg3[%c4, %c0_65, %c0_66] : memref<6x128x128xbf16, #tpu.memory_space<vmem>>, vector<1x128x128xbf16>
    %145 = vector.shape_cast %144 : vector<1x128x128xbf16> to vector<128x128xbf16>
    %cst_67 = arith.constant dense<0.000000e+00> : vector<128x128xf32>
    %146 = tpu.matmul %143, %145, %cst_67 {dimension_numbers = #tpu.dot_dimension_numbers<[1], [0], [0], [1], [0, 0, 1, 1], [], []>} : vector<128x128xbf16>, vector<128x128xbf16>, vector<128x128xf32> -> vector<128x128xf32>
    %c4_68 = arith.constant 4 : index
    %c0_69 = arith.constant 0 : index
    %147 = vector.load %arg4[%c4_68, %c0_69] : memref<6x128xf32, #tpu.memory_space<vmem>>, vector<1x128xf32>
    %148 = vector.broadcast %147 : vector<1x128xf32> to vector<128x128xf32>
    %149 = arith.addf %146, %148 : vector<128x128xf32>
    %c4_70 = arith.constant 4 : index
    %c0_71 = arith.constant 0 : index
    %150 = vector.load %arg5[%c4_70, %c0_71] : memref<6x128xf32, #tpu.memory_space<vmem>>, vector<1x128xf32>
    %c4_72 = arith.constant 4 : index
    %c0_73 = arith.constant 0 : index
    %151 = vector.load %arg6[%c4_72, %c0_73] : memref<6x128xf32, #tpu.memory_space<vmem>>, vector<1x128xf32>
    %cst_74 = arith.constant dense<0.000000e+00> : vector<128xf32>
    %152 = vector.multi_reduction <add>, %149, %cst_74 [1] : vector<128x128xf32> to vector<128xf32>
    %153 = vector.shape_cast %152 : vector<128xf32> to vector<128x1xf32>
    %cst_75 = arith.constant 3.125000e-02 : f32
    %154 = vector.broadcast %cst_75 : f32 to vector<128x1xf32>
    %155 = arith.mulf %153, %154 : vector<128x1xf32>
    %156 = arith.mulf %149, %149 : vector<128x128xf32>
    %cst_76 = arith.constant dense<0.000000e+00> : vector<128xf32>
    %157 = vector.multi_reduction <add>, %156, %cst_76 [1] : vector<128x128xf32> to vector<128xf32>
    %158 = vector.shape_cast %157 : vector<128xf32> to vector<128x1xf32>
    %cst_77 = arith.constant 3.125000e-02 : f32
    %159 = vector.broadcast %cst_77 : f32 to vector<128x1xf32>
    %160 = arith.mulf %158, %159 : vector<128x1xf32>
    %161 = arith.mulf %155, %155 : vector<128x1xf32>
    %162 = arith.subf %160, %161 : vector<128x1xf32>
    %cst_78 = arith.constant 0.000000e+00 : f32
    %163 = vector.broadcast %cst_78 : f32 to vector<128x1xf32>
    %164 = arith.maximumf %162, %163 : vector<128x1xf32>
    %165 = vector.broadcast %155 : vector<128x1xf32> to vector<128x128xf32>
    %166 = arith.subf %149, %165 : vector<128x128xf32>
    %cst_79 = arith.constant 9.99999974E-6 : f32
    %167 = vector.broadcast %cst_79 : f32 to vector<128x1xf32>
    %168 = arith.addf %164, %167 : vector<128x1xf32>
    %169 = math.rsqrt %168 : vector<128x1xf32>
    %170 = vector.broadcast %169 : vector<128x1xf32> to vector<128x128xf32>
    %171 = arith.mulf %166, %170 : vector<128x128xf32>
    %172 = vector.broadcast %150 : vector<1x128xf32> to vector<128x128xf32>
    %173 = arith.mulf %171, %172 : vector<128x128xf32>
    %174 = vector.broadcast %151 : vector<1x128xf32> to vector<128x128xf32>
    %175 = arith.addf %173, %174 : vector<128x128xf32>
    %cst_80 = arith.constant 0.000000e+00 : f32
    %176 = vector.broadcast %cst_80 : f32 to vector<128x128xf32>
    %177 = arith.maximumf %175, %176 : vector<128x128xf32>
    %178 = arith.truncf %177 : vector<128x128xf32> to vector<128x128xbf16>
    %c5 = arith.constant 5 : index
    %c0_81 = arith.constant 0 : index
    %c0_82 = arith.constant 0 : index
    %179 = vector.load %arg3[%c5, %c0_81, %c0_82] : memref<6x128x128xbf16, #tpu.memory_space<vmem>>, vector<1x128x128xbf16>
    %180 = vector.shape_cast %179 : vector<1x128x128xbf16> to vector<128x128xbf16>
    %cst_83 = arith.constant dense<0.000000e+00> : vector<128x128xf32>
    %181 = tpu.matmul %178, %180, %cst_83 {dimension_numbers = #tpu.dot_dimension_numbers<[1], [0], [0], [1], [0, 0, 1, 1], [], []>} : vector<128x128xbf16>, vector<128x128xbf16>, vector<128x128xf32> -> vector<128x128xf32>
    %c5_84 = arith.constant 5 : index
    %c0_85 = arith.constant 0 : index
    %182 = vector.load %arg4[%c5_84, %c0_85] : memref<6x128xf32, #tpu.memory_space<vmem>>, vector<1x128xf32>
    %183 = vector.broadcast %182 : vector<1x128xf32> to vector<128x128xf32>
    %184 = arith.addf %181, %183 : vector<128x128xf32>
    %c5_86 = arith.constant 5 : index
    %c0_87 = arith.constant 0 : index
    %185 = vector.load %arg5[%c5_86, %c0_87] : memref<6x128xf32, #tpu.memory_space<vmem>>, vector<1x128xf32>
    %c5_88 = arith.constant 5 : index
    %c0_89 = arith.constant 0 : index
    %186 = vector.load %arg6[%c5_88, %c0_89] : memref<6x128xf32, #tpu.memory_space<vmem>>, vector<1x128xf32>
    %cst_90 = arith.constant dense<0.000000e+00> : vector<128xf32>
    %187 = vector.multi_reduction <add>, %184, %cst_90 [1] : vector<128x128xf32> to vector<128xf32>
    %188 = vector.shape_cast %187 : vector<128xf32> to vector<128x1xf32>
    %cst_91 = arith.constant 3.125000e-02 : f32
    %189 = vector.broadcast %cst_91 : f32 to vector<128x1xf32>
    %190 = arith.mulf %188, %189 : vector<128x1xf32>
    %191 = arith.mulf %184, %184 : vector<128x128xf32>
    %cst_92 = arith.constant dense<0.000000e+00> : vector<128xf32>
    %192 = vector.multi_reduction <add>, %191, %cst_92 [1] : vector<128x128xf32> to vector<128xf32>
    %193 = vector.shape_cast %192 : vector<128xf32> to vector<128x1xf32>
    %cst_93 = arith.constant 3.125000e-02 : f32
    %194 = vector.broadcast %cst_93 : f32 to vector<128x1xf32>
    %195 = arith.mulf %193, %194 : vector<128x1xf32>
    %196 = arith.mulf %190, %190 : vector<128x1xf32>
    %197 = arith.subf %195, %196 : vector<128x1xf32>
    %cst_94 = arith.constant 0.000000e+00 : f32
    %198 = vector.broadcast %cst_94 : f32 to vector<128x1xf32>
    %199 = arith.maximumf %197, %198 : vector<128x1xf32>
    %200 = vector.broadcast %190 : vector<128x1xf32> to vector<128x128xf32>
    %201 = arith.subf %184, %200 : vector<128x128xf32>
    %cst_95 = arith.constant 9.99999974E-6 : f32
    %202 = vector.broadcast %cst_95 : f32 to vector<128x1xf32>
    %203 = arith.addf %199, %202 : vector<128x1xf32>
    %204 = math.rsqrt %203 : vector<128x1xf32>
    %205 = vector.broadcast %204 : vector<128x1xf32> to vector<128x128xf32>
    %206 = arith.mulf %201, %205 : vector<128x128xf32>
    %207 = vector.broadcast %185 : vector<1x128xf32> to vector<128x128xf32>
    %208 = arith.mulf %206, %207 : vector<128x128xf32>
    %209 = vector.broadcast %186 : vector<1x128xf32> to vector<128x128xf32>
    %210 = arith.addf %208, %209 : vector<128x128xf32>
    %211 = arith.addf %142, %210 : vector<128x128xf32>
    %cst_96 = arith.constant 0.000000e+00 : f32
    %212 = vector.broadcast %cst_96 : f32 to vector<128x128xf32>
    %213 = arith.maximumf %211, %212 : vector<128x128xf32>
    %c0_97 = arith.constant 0 : index
    %c0_98 = arith.constant 0 : index
    %214 = vector.load %arg7[%c0_97, %c0_98] : memref<9x128xbf16, #tpu.memory_space<vmem>>, vector<9x128xbf16>
    %215 = arith.truncf %213 : vector<128x128xf32> to vector<128x128xbf16>
    %cst_99 = arith.constant dense<0.000000e+00> : vector<9x128xf32>
    %216 = tpu.matmul %214, %215, %cst_99 {dimension_numbers = #tpu.dot_dimension_numbers<[1], [1], [0], [0], [0, 0, 1, 0], [], []>} : vector<9x128xbf16>, vector<128x128xbf16>, vector<9x128xf32> -> vector<9x128xf32>
    %c0_100 = arith.constant 0 : index
    %c0_101 = arith.constant 0 : index
    %217 = vector.load %arg8[%c0_100, %c0_101] : memref<9x1xf32, #tpu.memory_space<vmem>>, vector<9x1xf32>
    %218 = vector.broadcast %217 : vector<9x1xf32> to vector<9x128xf32>
    %219 = arith.addf %216, %218 : vector<9x128xf32>
    %c0_102 = arith.constant 0 : index
    %c0_103 = arith.constant 0 : index
    %220 = vector.load %arg2[%c0_102, %c0_103] : memref<12x128xf32, #tpu.memory_space<vmem>>, vector<12x128xf32>
    %221 = vector.extract_strided_slice %220 {offsets = [0, 0], sizes = [3, 128], strides = [1, 1]} : vector<12x128xf32> to vector<3x128xf32>
    %222 = vector.extract_strided_slice %220 {offsets = [3, 0], sizes = [3, 128], strides = [1, 1]} : vector<12x128xf32> to vector<3x128xf32>
    %223 = vector.extract_strided_slice %220 {offsets = [6, 0], sizes = [3, 128], strides = [1, 1]} : vector<12x128xf32> to vector<3x128xf32>
    %224 = vector.extract_strided_slice %220 {offsets = [9, 0], sizes = [3, 128], strides = [1, 1]} : vector<12x128xf32> to vector<3x128xf32>
    %225 = vector.extract_strided_slice %219 {offsets = [0, 0], sizes = [3, 128], strides = [1, 1]} : vector<9x128xf32> to vector<3x128xf32>
    %226 = vector.extract_strided_slice %225 {offsets = [0, 0], sizes = [1, 128], strides = [1, 1]} : vector<3x128xf32> to vector<1x128xf32>
    %227 = vector.broadcast %226 : vector<1x128xf32> to vector<3x128xf32>
    %228 = arith.mulf %221, %227 : vector<3x128xf32>
    %229 = arith.addf %224, %228 : vector<3x128xf32>
    %230 = vector.extract_strided_slice %225 {offsets = [1, 0], sizes = [1, 128], strides = [1, 1]} : vector<3x128xf32> to vector<1x128xf32>
    %231 = vector.broadcast %230 : vector<1x128xf32> to vector<3x128xf32>
    %232 = arith.mulf %222, %231 : vector<3x128xf32>
    %233 = arith.addf %229, %232 : vector<3x128xf32>
    %234 = vector.extract_strided_slice %225 {offsets = [2, 0], sizes = [1, 128], strides = [1, 1]} : vector<3x128xf32> to vector<1x128xf32>
    %235 = vector.broadcast %234 : vector<1x128xf32> to vector<3x128xf32>
    %236 = arith.mulf %223, %235 : vector<3x128xf32>
    %237 = arith.addf %233, %236 : vector<3x128xf32>
    %238 = vector.extract_strided_slice %219 {offsets = [3, 0], sizes = [3, 128], strides = [1, 1]} : vector<9x128xf32> to vector<3x128xf32>
    %239 = vector.extract_strided_slice %238 {offsets = [0, 0], sizes = [1, 128], strides = [1, 1]} : vector<3x128xf32> to vector<1x128xf32>
    %240 = vector.broadcast %239 : vector<1x128xf32> to vector<3x128xf32>
    %241 = arith.mulf %221, %240 : vector<3x128xf32>
    %242 = arith.addf %224, %241 : vector<3x128xf32>
    %243 = vector.extract_strided_slice %238 {offsets = [1, 0], sizes = [1, 128], strides = [1, 1]} : vector<3x128xf32> to vector<1x128xf32>
    %244 = vector.broadcast %243 : vector<1x128xf32> to vector<3x128xf32>
    %245 = arith.mulf %222, %244 : vector<3x128xf32>
    %246 = arith.addf %242, %245 : vector<3x128xf32>
    %247 = vector.extract_strided_slice %238 {offsets = [2, 0], sizes = [1, 128], strides = [1, 1]} : vector<3x128xf32> to vector<1x128xf32>
    %248 = vector.broadcast %247 : vector<1x128xf32> to vector<3x128xf32>
    %249 = arith.mulf %223, %248 : vector<3x128xf32>
    %250 = arith.addf %246, %249 : vector<3x128xf32>
    %251 = vector.extract_strided_slice %219 {offsets = [6, 0], sizes = [3, 128], strides = [1, 1]} : vector<9x128xf32> to vector<3x128xf32>
    %252 = vector.extract_strided_slice %251 {offsets = [0, 0], sizes = [1, 128], strides = [1, 1]} : vector<3x128xf32> to vector<1x128xf32>
    %253 = vector.broadcast %252 : vector<1x128xf32> to vector<3x128xf32>
    %254 = arith.mulf %221, %253 : vector<3x128xf32>
    %255 = arith.addf %224, %254 : vector<3x128xf32>
    %256 = vector.extract_strided_slice %251 {offsets = [1, 0], sizes = [1, 128], strides = [1, 1]} : vector<3x128xf32> to vector<1x128xf32>
    %257 = vector.broadcast %256 : vector<1x128xf32> to vector<3x128xf32>
    %258 = arith.mulf %222, %257 : vector<3x128xf32>
    %259 = arith.addf %255, %258 : vector<3x128xf32>
    %260 = vector.extract_strided_slice %251 {offsets = [2, 0], sizes = [1, 128], strides = [1, 1]} : vector<3x128xf32> to vector<1x128xf32>
    %261 = vector.broadcast %260 : vector<1x128xf32> to vector<3x128xf32>
    %262 = arith.mulf %223, %261 : vector<3x128xf32>
    %263 = arith.addf %259, %262 : vector<3x128xf32>
    %264 = tpu.concatenate %237, %250, %263 in 0 : vector<3x128xf32>, vector<3x128xf32>, vector<3x128xf32> -> vector<9x128xf32>
    %c0_104 = arith.constant 0 : index
    %c0_105 = arith.constant 0 : index
    %265 = vector.load %arg9[%c0_104, %c0_105] : memref<9x128xf32, #tpu.memory_space<vmem>>, vector<9x128xf32>
    tpu.vector_store %arg9[%c0_104, %c0_105], %264 {strides = array<i32>} : memref<9x128xf32, #tpu.memory_space<vmem>>, vector<9x128xf32>,
    %266 = arith.subf %250, %263 : vector<3x128xf32>
    %267 = arith.subf %237, %250 : vector<3x128xf32>
    %268 = arith.mulf %266, %266 : vector<3x128xf32>
    %cst_106 = arith.constant dense<0.000000e+00> : vector<128xf32>
    %269 = vector.multi_reduction <add>, %268, %cst_106 [0] : vector<3x128xf32> to vector<128xf32>
    %270 = vector.shape_cast %269 : vector<128xf32> to vector<1x128xf32>
    %cst_107 = arith.constant 1.000000e-10 : f32
    %271 = vector.broadcast %cst_107 : f32 to vector<1x128xf32>
    %272 = arith.addf %270, %271 : vector<1x128xf32>
    %273 = math.rsqrt %272 : vector<1x128xf32>
    %274 = vector.broadcast %273 : vector<1x128xf32> to vector<3x128xf32>
    %275 = arith.mulf %266, %274 : vector<3x128xf32>
    %276 = arith.mulf %275, %267 : vector<3x128xf32>
    %cst_108 = arith.constant dense<0.000000e+00> : vector<128xf32>
    %277 = vector.multi_reduction <add>, %276, %cst_108 [0] : vector<3x128xf32> to vector<128xf32>
    %278 = vector.shape_cast %277 : vector<128xf32> to vector<1x128xf32>
    %279 = vector.broadcast %278 : vector<1x128xf32> to vector<3x128xf32>
    %280 = arith.mulf %279, %275 : vector<3x128xf32>
    %281 = arith.subf %267, %280 : vector<3x128xf32>
    %282 = arith.mulf %281, %281 : vector<3x128xf32>
    %cst_109 = arith.constant dense<0.000000e+00> : vector<128xf32>
    %283 = vector.multi_reduction <add>, %282, %cst_109 [0] : vector<3x128xf32> to vector<128xf32>
    %284 = vector.shape_cast %283 : vector<128xf32> to vector<1x128xf32>
    %cst_110 = arith.constant 1.000000e-10 : f32
    %285 = vector.broadcast %cst_110 : f32 to vector<1x128xf32>
    %286 = arith.addf %284, %285 : vector<1x128xf32>
    %287 = math.rsqrt %286 : vector<1x128xf32>
    %288 = vector.broadcast %287 : vector<1x128xf32> to vector<3x128xf32>
    %289 = arith.mulf %281, %288 : vector<3x128xf32>
    %290 = vector.extract_strided_slice %275 {offsets = [1, 0], sizes = [2, 128], strides = [1, 1]} : vector<3x128xf32> to vector<2x128xf32>
    %291 = vector.extract_strided_slice %275 {offsets = [0, 0], sizes = [1, 128], strides = [1, 1]} : vector<3x128xf32> to vector<1x128xf32>
    %292 = tpu.concatenate %290, %291 in 0 : vector<2x128xf32>, vector<1x128xf32> -> vector<3x128xf32>
    %293 = vector.extract_strided_slice %289 {offsets = [2, 0], sizes = [1, 128], strides = [1, 1]} : vector<3x128xf32> to vector<1x128xf32>
    %294 = vector.extract_strided_slice %289 {offsets = [0, 0], sizes = [2, 128], strides = [1, 1]} : vector<3x128xf32> to vector<2x128xf32>
    %295 = tpu.concatenate %293, %294 in 0 : vector<1x128xf32>, vector<2x128xf32> -> vector<3x128xf32>
    %296 = arith.mulf %292, %295 : vector<3x128xf32>
    %297 = vector.extract_strided_slice %275 {offsets = [2, 0], sizes = [1, 128], strides = [1, 1]} : vector<3x128xf32> to vector<1x128xf32>
    %298 = vector.extract_strided_slice %275 {offsets = [0, 0], sizes = [2, 128], strides = [1, 1]} : vector<3x128xf32> to vector<2x128xf32>
    %299 = tpu.concatenate %297, %298 in 0 : vector<1x128xf32>, vector<2x128xf32> -> vector<3x128xf32>
    %300 = vector.extract_strided_slice %289 {offsets = [1, 0], sizes = [2, 128], strides = [1, 1]} : vector<3x128xf32> to vector<2x128xf32>
    %301 = vector.extract_strided_slice %289 {offsets = [0, 0], sizes = [1, 128], strides = [1, 1]} : vector<3x128xf32> to vector<1x128xf32>
    %302 = tpu.concatenate %300, %301 in 0 : vector<2x128xf32>, vector<1x128xf32> -> vector<3x128xf32>
    %303 = arith.mulf %299, %302 : vector<3x128xf32>
    %304 = arith.subf %296, %303 : vector<3x128xf32>
    %cst_111 = arith.constant 0.000000e+00 : f32
    %305 = vector.broadcast %cst_111 : f32 to vector<3x128xf32>
    %306 = arith.subf %305, %275 : vector<3x128xf32>
    %cst_112 = arith.constant 0.000000e+00 : f32
    %307 = vector.broadcast %cst_112 : f32 to vector<3x128xf32>
    %308 = arith.subf %307, %304 : vector<3x128xf32>
    %309 = tpu.concatenate %306, %289, %308, %250 in 0 : vector<3x128xf32>, vector<3x128xf32>, vector<3x128xf32>, vector<3x128xf32> -> vector<12x128xf32>
    %c0_113 = arith.constant 0 : index
    %c0_114 = arith.constant 0 : index
    %310 = vector.load %arg10[%c0_113, %c0_114] : memref<12x128xf32, #tpu.memory_space<vmem>>, vector<12x128xf32>
    tpu.vector_store %arg10[%c0_113, %c0_114], %309 {strides = array<i32>} : memref<12x128xf32, #tpu.memory_space<vmem>>, vector<12x128xf32>,
    return
  }
  func.func @transform_0(%arg0: i32) -> (i32, i32) {
    %c0_i32 = arith.constant 0 : i32
    %c0_i32_0 = arith.constant 0 : i32
    return %arg0, %c0_i32 : i32, i32
  }
  func.func @transform_1(%arg0: i32) -> (i32, i32) {
    %c0_i32 = arith.constant 0 : i32
    %c0_i32_0 = arith.constant 0 : i32
    return %c0_i32, %arg0 : i32, i32
  }
  func.func @transform_2(%arg0: i32) -> (i32, i32, i32) {
    %c0_i32 = arith.constant 0 : i32
    %c0_i32_0 = arith.constant 0 : i32
    %c0_i32_1 = arith.constant 0 : i32
    %c0_i32_2 = arith.constant 0 : i32
    return %c0_i32, %c0_i32_0, %c0_i32_1 : i32, i32, i32
  }
  func.func @transform_3(%arg0: i32) -> (i32, i32) {
    %c0_i32 = arith.constant 0 : i32
    %c0_i32_0 = arith.constant 0 : i32
    %c0_i32_1 = arith.constant 0 : i32
    return %c0_i32, %c0_i32_0 : i32, i32
  }
  func.func @transform_4(%arg0: i32) -> (i32, i32) {
    %c0_i32 = arith.constant 0 : i32
    %c0_i32_0 = arith.constant 0 : i32
    %c0_i32_1 = arith.constant 0 : i32
    return %c0_i32, %c0_i32_0 : i32, i32
  }
  func.func @transform_5(%arg0: i32) -> (i32, i32) {
    %c0_i32 = arith.constant 0 : i32
    %c0_i32_0 = arith.constant 0 : i32
    %c0_i32_1 = arith.constant 0 : i32
    return %c0_i32, %c0_i32_0 : i32, i32
  }
  func.func @transform_6(%arg0: i32) -> (i32, i32) {
    %c0_i32 = arith.constant 0 : i32
    %c0_i32_0 = arith.constant 0 : i32
    %c0_i32_1 = arith.constant 0 : i32
    return %c0_i32, %c0_i32_0 : i32, i32
  }
  func.func @transform_7(%arg0: i32) -> (i32, i32) {
    %c0_i32 = arith.constant 0 : i32
    %c0_i32_0 = arith.constant 0 : i32
    %c0_i32_1 = arith.constant 0 : i32
    return %c0_i32, %c0_i32_0 : i32, i32
  }
  func.func @transform_8(%arg0: i32) -> (i32, i32) {
    %c0_i32 = arith.constant 0 : i32
    %c0_i32_0 = arith.constant 0 : i32
    return %c0_i32, %arg0 : i32, i32
  }
  func.func @transform_9(%arg0: i32) -> (i32, i32) {
    %c0_i32 = arith.constant 0 : i32
    %c0_i32_0 = arith.constant 0 : i32
    return %c0_i32, %arg0 : i32, i32
  }
}

</mosaic_0001>

<bundles_post_ra>
// kernel: tpu_custom_call.1
= control target key start
LH: loop header
LB: loop body
LE: loop exit
PB: predicated region body
PF: predicated region fallthrough
CT: control target
= control target key end

     0   :  { %15 = vsyncpa [#allocation3], 0  ;;  %s5768_s0 = inlined_call_operand.hbm [shape: f32[128,128], index: 0, kind: input, shape index: {}]   ;;  %s5769_s1 = inlined_call_operand.vmem [shape: f32[12,128], index: 1, kind: input, shape index: {}]   ;;  %s5770_s2 = inlined_call_operand.hbm [shape: bf16[6,128,128], index: 2, kind: input, shape index: {}]   ;;  %s5771_s3 = inlined_call_operand.hbm [shape: f32[6,128], index: 3, kind: input, shape index: {}]   ;;  %s5772_s4 = inlined_call_operand.vmem [shape: f32[6,128], index: 4, kind: input, shape index: {}]   ;;  %s5773_s5 = inlined_call_operand.hbm [shape: f32[6,128], index: 5, kind: input, shape index: {}]   ;;  %s5774_s6 = inlined_call_operand.hbm [shape: bf16[9,128], index: 6, kind: input, shape index: {}]   ;;  %s5775_s7 = inlined_call_operand.vmem [shape: f32[9,1], index: 7, kind: input, shape index: {}]   ;;  %s5776_s8 = inlined_call_operand.hbm [shape: f32[9,128], index: 8, kind: output, shape index: {0}]   ;;  %s5777_s9 = inlined_call_operand.hbm [shape: f32[12,128], index: 9, kind: output, shape index: {1}]  }
   0x1   :  { %16 = vsyncpa [#allocation6], 0 }
   0x2   :  { %17 = vsyncpa [#allocation9], 0 }
   0x3   :  { %18 = vsyncpa [#allocation4], 0 }
   0x4   :  { %19 = vsyncpa [#allocation13], 0  ;;  %s4009_s30 = smov [#allocation5]  }
   0x5   :  { %s39_s10 = sshll.u32 %s4009_s30, 4  ;;  %s40_s10 = int_to_ptr.vmem [resolvable:$true] %s39_s10 }
   0x6   :  { %s3867_s11 = scalar_lea.vmem %s40_s10, 6144  ;;  %p3872_p1 = scmp.lt.s32.totalorder %s40_s10, %s40_s10 }
   0x7   :  { %p3868_p0 = scmp.ne.s32.totalorder %s40_s10, %s3867_s11  ;;  %p3873_p2 = scmp.lt.s32.totalorder %s3867_s11, %s3867_s11 }
   0x9   :  { %p3874_p3 = por %p3873_p2, %p3872_p1 }
   0xb   :  { %p3875_p4 = pnand %p3874_p3, %p3868_p0 }
   0xd   :  { %3878 = shalt.err (!%p3875_p4)
}
   0xe   :  { %s4010_s12 = smov 64   ;;  %s4011_s13 = smov 4  }
   0xf   :  { %45 = dma.hbm_to_vmem [thread:$0]  %s5770_s2, 6144, %s40_s10, [#allocation6], %s4010_s12, %s4010_s12, %s4011_s13  }
  0x10   :  { %s4012_s16 = smov [#allocation8]   ;;  %s4013_s18 = smov [#allocation2]  }
  0x11   :  { %s64_s17 = sshll.u32 %s4012_s16, 4  ;;  %s25_s19 = sshll.u32 %s4013_s18, 4  ;;  %s65_s17 = int_to_ptr.vmem [resolvable:$true] %s64_s17  ;;  %s26_s19 = int_to_ptr.vmem [resolvable:$true] %s25_s19 }
  0x12   :  { %s3887_s20 = scalar_lea.vmem %s65_s17, 128  ;;  %p3892_p6 = scmp.lt.s32.totalorder %s65_s17, %s65_s17 }
  0x13   :  { %p3888_p5 = scmp.ne.s32.totalorder %s65_s17, %s3887_s20  ;;  %p3893_p7 = scmp.lt.s32.totalorder %s3887_s20, %s3887_s20 }
  0x15   :  { %p3894_p8 = por %p3893_p7, %p3892_p6 }
  0x17   :  { %p3895_p9 = pnand %p3894_p8, %p3888_p5 }
  0x19   :  { %3898 = shalt.err (!%p3895_p9)
}
  0x1a   :  { %67 = dma.hbm_to_vmem [thread:$0]  %s5773_s5, 128, %s65_s17, [#allocation9]  }
  0x1b   :  { %s3907_s23 = scalar_lea.vmem %s26_s19, 2048  ;;  %p3912_p11 = scmp.lt.s32.totalorder %s26_s19, %s26_s19 }
  0x1c   :  { %p3908_p10 = scmp.ne.s32.totalorder %s26_s19, %s3907_s23  ;;  %p3913_p12 = scmp.lt.s32.totalorder %s3907_s23, %s3907_s23 }
  0x1e   :  { %p3914_p13 = por %p3913_p12, %p3912_p11 }
  0x20   :  { %p3915_p0 = pnand %p3914_p13, %p3908_p10 }
  0x22   :  { %3918 = shalt.err (!%p3915_p0)
}
  0x23   :  { %s4014_s2 = smov 128   ;;  %s4015_s24 = smov 8  }
  0x24   :  { %31 = dma.hbm_to_vmem [thread:$0]  %s5768_s0, 2048, %s26_s19, [#allocation3], %s4014_s2, %s4014_s2, %s4015_s24  }
  0x25   :  { %s4016_s27 = smov [#allocation7]   ;;  %s4017_s5 = smov [#allocation10]  }
  0x26   :  { %s52_s28 = sshll.u32 %s4016_s27, 4  ;;  %s73_s29 = sshll.u32 %s4017_s5, 4  ;;  %s53_s28 = int_to_ptr.vmem [resolvable:$true] %s52_s28  ;;  %s74_s29 = int_to_ptr.vmem [resolvable:$true] %s73_s29 }
  0x27   :  { %s3927_s30 = scalar_lea.vmem %s53_s28, 128  ;;  %p3932_p2 = scmp.lt.s32.totalorder %s53_s28, %s53_s28 }
  0x28   :  { %p3928_p1 = scmp.ne.s32.totalorder %s53_s28, %s3927_s30  ;;  %p3933_p3 = scmp.lt.s32.totalorder %s3927_s30, %s3927_s30 }
  0x2a   :  { %p3934_p4 = por %p3933_p3, %p3932_p2 }
  0x2c   :  { %p3935_p5 = pnand %p3934_p4, %p3928_p1 }
  0x2e   :  { %3938 = shalt.err (!%p3935_p5)
}
  0x2f   :  { %55 = dma.hbm_to_vmem [thread:$0]  %s5771_s3, 128, %s53_s28, [#allocation6]  }
  0x30   :  { %s3947_s14 = scalar_lea.vmem %s74_s29, 128  ;;  %p3952_p7 = scmp.lt.s32.totalorder %s74_s29, %s74_s29 }
  0x31   :  { %p3948_p6 = scmp.ne.s32.totalorder %s74_s29, %s3947_s14  ;;  %p3953_p8 = scmp.lt.s32.totalorder %s3947_s14, %s3947_s14 }
  0x33   :  { %p3954_p9 = por %p3953_p8, %p3952_p7 }
  0x35   :  { %p3955_p10 = pnand %p3954_p9, %p3948_p6 }
  0x37   :  { %3958 = shalt.err (!%p3955_p10)
}
  0x38   :  { %79 = dma.hbm_to_vmem [thread:$0]  %s5774_s6, 128, %s74_s29, [#allocation9], %s4010_s12, %s4010_s12, %s4011_s13  }
  0x39   :  { %3999 = dma.done.wait [#allocation3], 2048  }
  0x3a   :  { %4000 = vsyncadd [#allocation3], 4294965248 }
  0x3b   :  { %4001 = dma.done.wait [#allocation6], 6272  }
  0x3c   :  { %4002 = vsyncadd [#allocation6], 4294961024 }
  0x3d   :  { %4003 = dma.done.wait [#allocation9], 256  }
  0x3e   :  { %4004 = vsyncadd [#allocation9], 4294967040  ;;  %v3598_v0 = vld [vmem:[#allocation5 + $0x38] sm:$0xff]   ;;  %v3599_v1 = vld [vmem:[#allocation5 + $0x30] sm:$0xff]   ;;  %vm4019_vm0 = vmmov 0   ;;  %vm3000_vm1 = vcmask 1042432  }
  0x3f   :  { %3370 = vmatprep.subr.bf16.mxu1 %v3598_v0  ;;  %v3600_v2 = vld [vmem:[#allocation5 + $0x28] sm:$0xff]   ;;  %v3601_v3 = vld [vmem:[#allocation5 + $0x20] sm:$0xff]   ;;  %v3602_v7 = vld [vmem:[#allocation5 + $0x18] sm:$0xff]   ;;  %vm3078_vm2 = vcmask 1045504  }
  0x40   :  { %3371 = vmatpush3.bf16.msra.mxu1 %v3598_v0  ;;  %v98_v4 = vld [vmem:[#allocation2] sm:$0xff]  ;;  %v99_v5 = vld [vmem:[#allocation2 + $0x8] sm:$0xff]  ;;  %v3603_v8 = vld [vmem:[#allocation5 + $0x10] sm:$0xff]  }
  0x41   :  { %3372 = vmatprep.subr.bf16.mxu1 %v3599_v1  ;;  %v114_v6 = vpack.c.bf16 %v99_v5, %v98_v4  ;;  %v3604_v9 = vld [vmem:[#allocation5 + $0x8] sm:$0xff]   ;;  %v3605_v10 = vld [vmem:[#allocation5] sm:$0xff]   ;;  %v100_v11 = vld [vmem:[#allocation2 + $0x10] sm:$0xff] }
  0x42   :  { %v101_v12 = vld [vmem:[#allocation2 + $0x18] sm:$0xff]  ;;  %v102_v13 = vld [vmem:[#allocation2 + $0x20] sm:$0xff]  ;;  %v103_v14 = vld [vmem:[#allocation2 + $0x28] sm:$0xff] }
  0x43   :  { %3386 = vmatprep.mubr.bf16.mxu1 %v114_v6  ;;  %v115_v15 = vpack.c.bf16 %v101_v12, %v100_v11  ;;  %v116_v16 = vpack.c.bf16 %v103_v14, %v102_v13  ;;  %v104_v17 = vld [vmem:[#allocation2 + $0x30] sm:$0xff]  ;;  %v105_v18 = vld [vmem:[#allocation2 + $0x38] sm:$0xff]  ;;  %v106_v19 = vld [vmem:[#allocation2 + $0x40] sm:$0xff] }
  0x44   :  { %3373 = vmatpush3.bf16.msra.mxu1 %v3599_v1  ;;  %v107_v20 = vld [vmem:[#allocation2 + $0x48] sm:$0xff]  ;;  %v117_v21 = vpack.c.bf16 %v105_v18, %v104_v17  ;;  %v108_v23 = vld [vmem:[#allocation2 + $0x50] sm:$0xff]  ;;  %v109_v24 = vld [vmem:[#allocation2 + $0x58] sm:$0xff] }
  0x45   :  { %3374 = vmatprep.subr.bf16.mxu1 %v3600_v2  ;;  %v118_v22 = vpack.c.bf16 %v107_v20, %v106_v19  ;;  %v110_v25 = vld [vmem:[#allocation2 + $0x60] sm:$0xff]  ;;  %v111_v26 = vld [vmem:[#allocation2 + $0x68] sm:$0xff]  ;;  %v119_v27 = vpack.c.bf16 %v109_v24, %v108_v23  ;;  %v112_v29 = vld [vmem:[#allocation2 + $0x70] sm:$0xff] }
  0x46   :  { %v120_v28 = vpack.c.bf16 %v111_v26, %v110_v25  ;;  %v113_v30 = vld [vmem:[#allocation2 + $0x78] sm:$0xff]  ;;  %v4097_v32 = vld [vmem:[#allocation7] ss:$0 sm:$0xff]  ;;  %v3607_v62 = vld [vmem:[#allocation5 + $0x70] sm:$0xff]  }
  0x47   :  { %v121_v31 = vpack.c.bf16 %v113_v30, %v112_v29  ;;  %v3606_v58 = vld [vmem:[#allocation5 + $0x78] sm:$0xff]   ;;  %v3612_v18 = vld [vmem:[#allocation5 + $0x48] sm:$0xff]  }
  0x48   :  { %3375 = vmatpush3.bf16.msra.mxu1 %v3600_v2  ;;  %v3610_v11 = vld [vmem:[#allocation5 + $0x58] sm:$0xff]  }
  0x49   :  { %3376 = vmatprep.subr.bf16.mxu1 %v3601_v3 }
  0x4c   :  { %3377 = vmatpush3.bf16.msra.mxu1 %v3601_v3  ;;  %v3608_v3 = vld [vmem:[#allocation5 + $0x68] sm:$0xff]  }
  0x4d   :  { %3378 = vmatprep.subr.bf16.mxu1 %v3602_v7 }
  0x50   :  { %3379 = vmatpush3.bf16.msra.mxu1 %v3602_v7  ;;  %v3609_v7 = vld [vmem:[#allocation5 + $0x60] sm:$0xff]  }
  0x51   :  { %3380 = vmatprep.subr.bf16.mxu1 %v3603_v8 }
  0x54   :  { %3381 = vmatpush3.bf16.msra.mxu1 %v3603_v8 }
  0x55   :  { %3382 = vmatprep.subr.bf16.mxu1 %v3604_v9 }
  0x58   :  { %3383 = vmatpush3.bf16.msra.mxu1 %v3604_v9 }
  0x59   :  { %3384 = vmatprep.subr.bf16.mxu1 %v3605_v10 }
  0x5c   :  { %3385 = vmatpush3.bf16.msra.mxu1 %v3605_v10 }
  0x5d   :  { %3402 = vmatprep.subr.bf16.mxu1 %v3606_v58 }
  0x5f   :  { %3387 = vmatmul.mubr.bf16.vlgmr.msra.gmra.mxu1 %v115_v15 }
  0x60   :  { %3390 = vmatprep.mubr.bf16.mxu1 %v116_v16  ;;  %3403 = vmatpush3.bf16.msra.mxu1 %v3606_v58  ;;  %v3611_v16 = vld [vmem:[#allocation5 + $0x50] sm:$0xff]  }
  0x61   :  { %3404 = vmatprep.subr.bf16.mxu1 %v3607_v62 }
  0x64   :  { %3405 = vmatpush3.bf16.msra.mxu1 %v3607_v62 }
  0x65   :  { %3406 = vmatprep.subr.bf16.mxu1 %v3608_v3 }
  0x67   :  { %3391 = vmatmul.mubr.bf16.gmra.mxu1 %v117_v21  ;;  %v3613_v21 = vld [vmem:[#allocation5 + $0x40] sm:$0xff]  }
  0x68   :  { %3394 = vmatprep.mubr.bf16.mxu1 %v118_v22  ;;  %3407 = vmatpush3.bf16.msra.mxu1 %v3608_v3 }
  0x69   :  { %3408 = vmatprep.subr.bf16.mxu1 %v3609_v7 }
  0x6c   :  { %3409 = vmatpush3.bf16.msra.mxu1 %v3609_v7 }
  0x6d   :  { %3410 = vmatprep.subr.bf16.mxu1 %v3610_v11 }
  0x6f   :  { %3395 = vmatmul.mubr.bf16.gmra.mxu1 %v119_v27 }
  0x70   :  { %3398 = vmatprep.mubr.bf16.mxu1 %v120_v28  ;;  %3411 = vmatpush3.bf16.msra.mxu1 %v3610_v11 }
  0x71   :  { %3412 = vmatprep.subr.bf16.mxu1 %v3611_v16 }
  0x74   :  { %3413 = vmatpush3.bf16.msra.mxu1 %v3611_v16 }
  0x75   :  { %3414 = vmatprep.subr.bf16.mxu1 %v3612_v18 }
  0x77   :  { %3399 = vmatmul.mubr.bf16.gmra.mxu1 %v121_v31 }
  0x78   :  { %3415 = vmatpush3.bf16.msra.mxu1 %v3612_v18 }
  0x79   :  { %3416 = vmatprep.subr.bf16.mxu1 %v3613_v21 }
  0x7c   :  { %3417 = vmatpush3.bf16.msra.mxu1 %v3613_v21 }
 0x11f   :  { %v3388_v33 = vpop.f32.mrf.mxu1 }
 0x120   :  { %v4100_v34 = vadd.f32 %v3388_v33, %v4097_v32 }
 0x121   :  { %v225_v35 = vpop.f32.mrf.mxu1 }
 0x122   :  { %v4103_v36 = vadd.f32 %v4097_v32, %v225_v35  ;;  %294 = vadd.xlane.f32.xlu1 %v4100_v34  ;;  %v340_v40 = vmul.f32 %v4100_v34, %v4100_v34 }
 0x123   :  { %v3389_v37 = vpop.f32.mrf.mxu1 }
 0x124   :  { %v4107_v38 = vadd.f32 %v3389_v37, %v4097_v32  ;;  %290 = vadd.xlane.f32.xlu0 %v4103_v36  ;;  %v338_v45 = vmul.f32 %v4103_v36, %v4103_v36 }
 0x125   :  { %v228_v39 = vpop.f32.mrf.mxu1 }
 0x126   :  { %296 = vadd.xlane.f32.xlu1 %v4107_v38  ;;  %v4114_v42 = vadd.f32 %v4097_v32, %v228_v39  ;;  %v341_v43 = vmul.f32 %v4107_v38, %v4107_v38 }
 0x127   :  { %v3392_v41 = vpop.f32.mrf.mxu1 }
 0x128   :  { %358 = vadd.xlane.f32.xlu0 %v340_v40  ;;  %v339_v46 = vmul.f32 %v4114_v42, %v4114_v42  ;;  %v4127_v50 = vadd.f32 %v3392_v41, %v4097_v32 }
 0x129   :  { %v241_v44 = vpop.f32.mrf.mxu1 }
 0x12a   :  { %360 = vadd.xlane.f32.xlu1 %v341_v43  ;;  %v4135_v53 = vadd.f32 %v4097_v32, %v241_v44  ;;  %v344_v56 = vmul.f32 %v4127_v50, %v4127_v50 }
 0x12b   :  { %v3393_v47 = vpop.f32.mrf.mxu1 }
 0x12c   :  { %354 = vadd.xlane.f32.xlu0 %v338_v45  ;;  %v4123_v48 = vadd.f32 %v3393_v47, %v4097_v32  ;;  %v342_v61 = vmul.f32 %v4135_v53, %v4135_v53 }
 0x12d   :  { %v244_v49 = vpop.f32.mrf.mxu1 }
 0x12e   :  { %356 = vadd.xlane.f32.xlu1 %v339_v46  ;;  %v4131_v51 = vadd.f32 %v4097_v32, %v244_v49  ;;  %v345_v54 = vmul.f32 %v4123_v48, %v4123_v48 }
 0x12f   :  { %v3396_v52 = vpop.f32.mrf.mxu1 }
 0x130   :  { %292 = vadd.xlane.f32.xlu0 %v4114_v42  ;;  %v343_v57 = vmul.f32 %v4131_v51, %v4131_v51  ;;  %v4151_v0 = vadd.f32 %v3396_v52, %v4097_v32 }
 0x131   :  { %v257_v55 = vpop.f32.mrf.mxu1 }
 0x132   :  { %304 = vadd.xlane.f32.xlu1 %v4123_v48  ;;  %v4159_v4 = vadd.f32 %v4097_v32, %v257_v55  ;;  %v348_v8 = vmul.f32 %v4151_v0, %v4151_v0 }
 0x133   :  { %v3397_v59 = vpop.f32.mrf.mxu1 }
 0x134   :  { %302 = vadd.xlane.f32.xlu0 %v4127_v50  ;;  %v4146_v60 = vadd.f32 %v3397_v59, %v4097_v32  ;;  %v346_v13 = vmul.f32 %v4159_v4, %v4159_v4 }
 0x135   :  { %v260_v63 = vpop.f32.mrf.mxu1 }
 0x136   :  { %300 = vadd.xlane.f32.xlu1 %v4131_v51  ;;  %v4155_v2 = vadd.f32 %v4097_v32, %v260_v63  ;;  %v349_v6 = vmul.f32 %v4146_v60, %v4146_v60 }
 0x137   :  { %v3400_v1 = vpop.f32.mrf.mxu1 }
 0x138   :  { %298 = vadd.xlane.f32.xlu0 %v4135_v53  ;;  %v347_v10 = vmul.f32 %v4155_v2, %v4155_v2  ;;  %v4175_v15 = vadd.f32 %v3400_v1, %v4097_v32 }
 0x139   :  { %v273_v5 = vpop.f32.mrf.mxu1 }
 0x13a   :  { %368 = vadd.xlane.f32.xlu1 %v345_v54  ;;  %v4183_v19 = vadd.f32 %v4097_v32, %v273_v5  ;;  %v352_v24 = vmul.f32 %v4175_v15, %v4175_v15 }
 0x13b   :  { %v3401_v9 = vpop.f32.mrf.mxu1 }
 0x13c   :  { %366 = vadd.xlane.f32.xlu0 %v344_v56  ;;  %v4170_v12 = vadd.f32 %v3401_v9, %v4097_v32  ;;  %v350_v22 = vmul.f32 %v4183_v19, %v4183_v19 }
 0x13d   :  { %v276_v14 = vpop.f32.mrf.mxu1 }
 0x13e   :  { %364 = vadd.xlane.f32.xlu1 %v343_v57  ;;  %v4179_v17 = vadd.f32 %v4097_v32, %v276_v14  ;;  %v353_v23 = vmul.f32 %v4170_v12, %v4170_v12 }
 0x140   :  { %362 = vadd.xlane.f32.xlu0 %v342_v61  ;;  %v351_v20 = vmul.f32 %v4179_v17, %v4179_v17 }
 0x142   :  { %312 = vadd.xlane.f32.xlu1 %v4146_v60 }
 0x144   :  { %310 = vadd.xlane.f32.xlu0 %v4151_v0 }
 0x146   :  { %308 = vadd.xlane.f32.xlu1 %v4155_v2 }
 0x148   :  { %306 = vadd.xlane.f32.xlu0 %v4159_v4 }
 0x14a   :  { %376 = vadd.xlane.f32.xlu1 %v349_v6 }
 0x14c   :  { %374 = vadd.xlane.f32.xlu0 %v348_v8 }
 0x14e   :  { %372 = vadd.xlane.f32.xlu1 %v347_v10 }
 0x150   :  { %370 = vadd.xlane.f32.xlu0 %v346_v13 }
 0x152   :  { %320 = vadd.xlane.f32.xlu1 %v4170_v12 }
 0x154   :  { %318 = vadd.xlane.f32.xlu0 %v4175_v15 }
 0x156   :  { %316 = vadd.xlane.f32.xlu1 %v4179_v17 }
 0x158   :  { %314 = vadd.xlane.f32.xlu0 %v4183_v19 }
 0x15a   :  { %380 = vadd.xlane.f32.xlu1 %v351_v20 }
 0x15c   :  { %378 = vadd.xlane.f32.xlu0 %v350_v22 }
 0x15e   :  { %384 = vadd.xlane.f32.xlu1 %v353_v23 }
 0x160   :  { %382 = vadd.xlane.f32.xlu0 %v352_v24 }
 0x1ab   :  { %v295_v25 = vpop.xlane.xlu1 %294 }
 0x1ac   :  { %v4195_v27 = vmul.f32 0.03125, %v295_v25 }
 0x1ad   :  { %v291_v26 = vpop.xlane.xlu0 %290 }
 0x1ae   :  { %v404_v31 = vmul.f32 %v4195_v27, %v4195_v27  ;;  %v4201_v32 = vmul.f32 0.03125, %v291_v26 }
 0x1af   :  { %v297_v28 = vpop.xlane.xlu1 %296 }
 0x1b0   :  { %v4197_v29 = vmul.f32 0.03125, %v297_v28  ;;  %v402_v43 = vmul.f32 %v4201_v32, %v4201_v32 }
 0x1b1   :  { %v359_v30 = vpop.xlane.xlu0 %358 }
 0x1b2   :  { %v388_v33 = vmul.f32 0.03125, %v359_v30  ;;  %v405_v37 = vmul.f32 %v4197_v29, %v4197_v29 }
 0x1b3   :  { %v361_v35 = vpop.xlane.xlu1 %360 }
 0x1b4   :  { %v420_v39 = vsub.f32 %v388_v33, %v404_v31  ;;  %v389_v40 = vmul.f32 0.03125, %v361_v35  ;;  %v453_v33 = vsub.f32 %v4107_v38, %v4197_v29 }
 0x1b5   :  { %v355_v41 = vpop.xlane.xlu0 %354 }
 0x1b6   :  { %v436_v44 = vmax.f32 %v420_v39, 0.0  ;;  %v421_v45 = vsub.f32 %v389_v40, %v405_v37  ;;  %v386_v46 = vmul.f32 0.03125, %v355_v41 }
 0x1b7   :  { %v357_v47 = vpop.xlane.xlu1 %356 }
 0x1b8   :  { %v437_v49 = vmax.f32 %v421_v45, 0.0  ;;  %v418_v52 = vsub.f32 %v386_v46, %v402_v43  ;;  %v468_v54 = vadd.f32 1e-05, %v436_v44  ;;  %v387_v62 = vmul.f32 0.03125, %v357_v47 }
 0x1b9   :  { %v293_v55 = vpop.xlane.xlu0 %292  ;;  %v452_v46 = vsub.f32 %v4100_v34, %v4195_v27  ;;  %v450_v47 = vsub.f32 %v4103_v36, %v4201_v32 }
 0x1ba   :  { %v469_v56 = vadd.f32 1e-05, %v437_v49  ;;  %v434_v57 = vmax.f32 %v418_v52, 0.0  ;;  %v4207_v58 = vmul.f32 0.03125, %v293_v55 }
 0x1bb   :  { %v305_v59 = vpop.xlane.xlu1 %304 }
 0x1bc   :  { %3647 = vrsqrt.f32 %v469_v56  ;;  %v466_v61 = vadd.f32 1e-05, %v434_v57  ;;  %v403_v63 = vmul.f32 %v4207_v58, %v4207_v58  ;;  %v4211_v7 = vmul.f32 0.03125, %v305_v59  ;;  %v4236_v59 = vld [vmem:[%s5772_s4] ss:$0 sm:$0xff] }
 0x1bd   :  { %3649 = vrsqrt.f32 %v468_v54  ;;  %v303_v1 = vpop.xlane.xlu0 %302  ;;  %v451_v32 = vsub.f32 %v4114_v42, %v4207_v58 }
 0x1be   :  { %3651 = vrsqrt.f32 %v466_v61  ;;  %v419_v3 = vsub.f32 %v387_v62, %v403_v63  ;;  %v4213_v10 = vmul.f32 0.03125, %v303_v1  ;;  %v409_v13 = vmul.f32 %v4211_v7, %v4211_v7 }
 0x1bf   :  { %v301_v5 = vpop.xlane.xlu1 %300 }
 0x1c0   :  { %v435_v6 = vmax.f32 %v419_v3, 0.0  ;;  %v4217_v14 = vmul.f32 0.03125, %v301_v5  ;;  %v408_v21 = vmul.f32 %v4213_v10, %v4213_v10 }
 0x1c1   :  { %v299_v8 = vpop.xlane.xlu0 %298 }
 0x1c2   :  { %v467_v9 = vadd.f32 1e-05, %v435_v6  ;;  %v4219_v18 = vmul.f32 0.03125, %v299_v8  ;;  %v407_v25 = vmul.f32 %v4217_v14, %v4217_v14 }
 0x1c3   :  { %v369_v11 = vpop.xlane.xlu1 %368 }
 0x1c4   :  { %3653 = vrsqrt.f32 %v467_v9  ;;  %v393_v16 = vmul.f32 0.03125, %v369_v11  ;;  %v406_v35 = vmul.f32 %v4219_v18, %v4219_v18  ;;  %v4247_v11 = vld [vmem:[#allocation8] ss:$0 sm:$0xff] }
 0x1c5   :  { %v367_v20 = vpop.xlane.xlu0 %366 }
 0x1c6   :  { %v425_v22 = vsub.f32 %v393_v16, %v409_v13  ;;  %v392_v23 = vmul.f32 0.03125, %v367_v20 }
 0x1c7   :  { %v365_v24 = vpop.xlane.xlu1 %364 }
 0x1c8   :  { %v441_v26 = vmax.f32 %v425_v22, 0.0  ;;  %v424_v28 = vsub.f32 %v392_v23, %v408_v21  ;;  %v391_v30 = vmul.f32 0.03125, %v365_v24 }
 0x1c9   :  { %v3648_v31 = vpop.eup %3647  ;;  %v363_v37 = vpop.xlane.xlu0 %362 }
 0x1ca   :  { %v3650_v39 = vpop.eup %3649  ;;  %v473_v40 = vadd.f32 1e-05, %v441_v26  ;;  %v440_v41 = vmax.f32 %v424_v28, 0.0  ;;  %v423_v43 = vsub.f32 %v391_v30, %v407_v25  ;;  %v390_v44 = vmul.f32 0.03125, %v363_v37 }
 0x1cb   :  { %v3652_v45 = vpop.eup %3651  ;;  %v313_v49 = vpop.xlane.xlu1 %312  ;;  %v501_v52 = vmul.f32 %v3648_v31, %v453_v33  ;;  %v500_v57 = vmul.f32 %v3650_v39, %v452_v46 }
 0x1cc   :  { %3655 = vrsqrt.f32 %v473_v40  ;;  %v472_v38 = vadd.f32 1e-05, %v440_v41  ;;  %v439_v29 = vmax.f32 %v423_v43, 0.0  ;;  %v422_v54 = vsub.f32 %v390_v44, %v406_v35 }
 0x1cd   :  { %v311_v55 = vpop.xlane.xlu0 %310  ;;  %v498_v56 = vmul.f32 %v3652_v45, %v450_v47  ;;  %v521_v36 = vmul.f32 %v4236_v59, %v501_v52  ;;  %v4241_v63 = vmul.f32 0.03125, %v313_v49  ;;  %v520_v6 = vmul.f32 %v4236_v59, %v500_v57 }
 0x1ce   :  { %3657 = vrsqrt.f32 %v472_v38  ;;  %v471_v61 = vadd.f32 1e-05, %v439_v29  ;;  %v438_v34 = vmax.f32 %v422_v54, 0.0  ;;  %v4245_v9 = vmul.f32 0.03125, %v311_v55 }
 0x1cf   :  { %v309_v27 = vpop.xlane.xlu1 %308  ;;  %v518_v5 = vmul.f32 %v4236_v59, %v498_v56  ;;  %v541_v42 = vadd.f32 %v4247_v11, %v521_v36  ;;  %v413_v20 = vmul.f32 %v4241_v63, %v4241_v63  ;;  %v540_v25 = vadd.f32 %v4247_v11, %v520_v6 }
 0x1d0   :  { %3659 = vrsqrt.f32 %v471_v61  ;;  %v470_v62 = vadd.f32 1e-05, %v438_v34  ;;  %v4249_v13 = vmul.f32 0.03125, %v309_v27  ;;  %v412_v26 = vmul.f32 %v4245_v9, %v4245_v9 }
 0x1d1   :  { %v3654_v1 = vpop.eup %3653  ;;  %v307_v3 = vpop.xlane.xlu0 %306  ;;  %v538_v24 = vadd.f32 %v4247_v11, %v518_v5  ;;  %v557_v37 = vmax.f32 %v541_v42, 0.0  ;;  %v457_v45 = vsub.f32 %v4123_v48, %v4211_v7  ;;  %v556_v52 = vmax.f32 %v540_v25, 0.0 }
 0x1d2   :  { %v499_v8 = vmul.f32 %v3654_v1, %v451_v32  ;;  %3661 = vrsqrt.f32 %v470_v62  ;;  %v4255_v22 = vmul.f32 0.03125, %v307_v3  ;;  %v411_v33 = vmul.f32 %v4249_v13, %v4249_v13 }
 0x1d3   :  { %v377_v16 = vpop.xlane.xlu1 %376  ;;  %v554_v49 = vmax.f32 %v538_v24, 0.0  ;;  %v456_v57 = vsub.f32 %v4127_v50, %v4213_v10  ;;  %v571_v27 = vpack.c.bf16 %v557_v37, %v556_v52  ;;  %v455_v1 = vsub.f32 %v4131_v51, %v4217_v14 }
 0x1d4   :  { %v519_v58 = vmul.f32 %v4236_v59, %v499_v8  ;;  %v397_v21 = vmul.f32 0.03125, %v377_v16  ;;  %v410_v46 = vmul.f32 %v4255_v22, %v4255_v22  ;;  %v454_v10 = vsub.f32 %v4135_v53, %v4219_v18 }
 0x1d5   :  { %v375_v23 = vpop.xlane.xlu0 %374 }
 0x1d6   :  { %v429_v28 = vsub.f32 %v397_v21, %v413_v20  ;;  %v396_v30 = vmul.f32 0.03125, %v375_v23  ;;  %v539_v31 = vadd.f32 %v4247_v11, %v519_v58 }
 0x1d7   :  { %v373_v35 = vpop.xlane.xlu1 %372 }
 0x1d8   :  { %v445_v39 = vmax.f32 %v429_v28, 0.0  ;;  %v428_v40 = vsub.f32 %v396_v30, %v412_v26  ;;  %v395_v41 = vmul.f32 0.03125, %v373_v35  ;;  %v555_v43 = vmax.f32 %v539_v31, 0.0 }
 0x1d9   :  { %v3656_v44 = vpop.eup %3655  ;;  %v371_v47 = vpop.xlane.xlu0 %370 }
 0x1da   :  { %v477_v38 = vadd.f32 1e-05, %v445_v39  ;;  %v444_v29 = vmax.f32 %v428_v40, 0.0  ;;  %v427_v54 = vsub.f32 %v395_v41, %v411_v33  ;;  %v394_v55 = vmul.f32 0.03125, %v371_v47 }
 0x1db   :  { %v3658_v56 = vpop.eup %3657  ;;  %v321_v61 = vpop.xlane.xlu1 %320  ;;  %v570_v34 = vpack.c.bf16 %v555_v43, %v554_v49  ;;  %v505_v36 = vmul.f32 %v3656_v44, %v457_v45 }
 0x1dc   :  { %3663 = vrsqrt.f32 %v477_v38  ;;  %v476_v48 = vadd.f32 1e-05, %v444_v29  ;;  %v443_v7 = vmax.f32 %v427_v54, 0.0  ;;  %v426_v32 = vsub.f32 %v394_v55, %v410_v46 }
 0x1dd   :  { %v3660_v62 = vpop.eup %3659  ;;  %3418 = vmatprep.mubr.bf16.mxu1 %v570_v34  ;;  %v319_v3 = vpop.xlane.xlu0 %318  ;;  %v504_v5 = vmul.f32 %v3658_v56, %v456_v57  ;;  %v525_v20 = vmul.f32 %v4236_v59, %v505_v36  ;;  %v4288_v40 = vmul.f32 0.03125, %v321_v61  ;;  %v461_v57 = vsub.f32 %v4146_v60, %v4241_v63 }
 0x1de   :  { %3665 = vrsqrt.f32 %v476_v48  ;;  %v475_v6 = vadd.f32 1e-05, %v443_v7  ;;  %v442_v8 = vmax.f32 %v426_v32, 0.0  ;;  %3419 = vmatmul.mubr.bf16.vlgmr.msra.gmra.mxu1 %v571_v27  ;;  %v503_v42 = vmul.f32 %v3660_v62, %v455_v1 }
 0x1df   :  { %v3662_v50 = vpop.eup %3661  ;;  %v317_v16 = vpop.xlane.xlu1 %316  ;;  %v524_v58 = vmul.f32 %v4236_v59, %v504_v5  ;;  %v545_v30 = vadd.f32 %v4247_v11, %v525_v20  ;;  %v4292_v45 = vmul.f32 0.03125, %v319_v3  ;;  %v417_v38 = vmul.f32 %v4288_v40, %v4288_v40 }
 0x1e0   :  { %3667 = vrsqrt.f32 %v475_v6  ;;  %v474_v21 = vadd.f32 1e-05, %v442_v8  ;;  %v4276_v51 = vmul.f32 0.03125, %v317_v16  ;;  %v502_v23 = vmul.f32 %v3662_v50, %v454_v10 }
 0x1e1   :  { %v315_v14 = vpop.xlane.xlu0 %314  ;;  %v523_v24 = vmul.f32 %v4236_v59, %v503_v42  ;;  %v544_v25 = vadd.f32 %v4247_v11, %v524_v58  ;;  %v561_v52 = vmax.f32 %v545_v30, 0.0  ;;  %v416_v61 = vmul.f32 %v4292_v45, %v4292_v45 }
 0x1e2   :  { %3669 = vrsqrt.f32 %v474_v21  ;;  %v4280_v26 = vmul.f32 0.03125, %v315_v14  ;;  %v522_v18 = vmul.f32 %v4236_v59, %v502_v23  ;;  %v415_v31 = vmul.f32 %v4276_v51, %v4276_v51 }
 0x1e3   :  { %v381_v53 = vpop.xlane.xlu1 %380  ;;  %v543_v28 = vadd.f32 %v4247_v11, %v523_v24  ;;  %v560_v39 = vmax.f32 %v544_v25, 0.0  ;;  %v460_v3 = vsub.f32 %v4151_v0, %v4245_v9  ;;  %v459_v5 = vsub.f32 %v4155_v2, %v4249_v13 }
 0x1e4   :  { %v399_v33 = vmul.f32 0.03125, %v381_v53  ;;  %v542_v37 = vadd.f32 %v4247_v11, %v522_v18  ;;  %v414_v41 = vmul.f32 %v4280_v26, %v4280_v26  ;;  %v458_v10 = vsub.f32 %v4159_v4, %v4255_v22 }
 0x1e5   :  { %v379_v35 = vpop.xlane.xlu0 %378  ;;  %v559_v49 = vmax.f32 %v543_v28, 0.0  ;;  %v573_v36 = vpack.c.bf16 %v561_v52, %v560_v39  ;;  %v462_v39 = vsub.f32 %v4183_v19, %v4280_v26 }
 0x1e6   :  { %v431_v43 = vsub.f32 %v399_v33, %v415_v31  ;;  %v398_v44 = vmul.f32 0.03125, %v379_v35  ;;  %v558_v47 = vmax.f32 %v542_v37, 0.0  ;;  %v463_v31 = vsub.f32 %v4179_v17, %v4276_v51 }
 0x1e7   :  { %v385_v46 = vpop.xlane.xlu1 %384  ;;  %v464_v17 = vsub.f32 %v4175_v15, %v4292_v45 }
 0x1e8   :  { %v447_v29 = vmax.f32 %v431_v43, 0.0  ;;  %v430_v54 = vsub.f32 %v398_v44, %v414_v41  ;;  %v401_v55 = vmul.f32 0.03125, %v385_v46  ;;  %v572_v27 = vpack.c.bf16 %v559_v49, %v558_v47 }
 0x1e9   :  { %v3664_v56 = vpop.eup %3663  ;;  %v383_v34 = vpop.xlane.xlu0 %382  ;;  %v465_v44 = vsub.f32 %v4170_v12, %v4288_v40 }
 0x1ea   :  { %v479_v48 = vadd.f32 1e-05, %v447_v29  ;;  %v446_v7 = vmax.f32 %v430_v54, 0.0  ;;  %v433_v32 = vsub.f32 %v401_v55, %v417_v38  ;;  %v400_v62 = vmul.f32 0.03125, %v383_v34  ;;  %3422 = vmatprep.mubr.bf16.mxu1 %v572_v27  ;;  %v4330_v27 = vld [vmem:[#allocation7 + $0x1] ss:$0 sm:$0xff] }
 0x1eb   :  { %v3666_v1 = vpop.eup %3665  ;;  %v509_v6 = vmul.f32 %v3664_v56, %v461_v57  ;;  %3423 = vmatmul.mubr.bf16.gmra.mxu1 %v573_v36 }
 0x1ec   :  { %3671 = vrsqrt.f32 %v479_v48  ;;  %v478_v60 = vadd.f32 1e-05, %v446_v7  ;;  %v449_v63 = vmax.f32 %v433_v32, 0.0  ;;  %v432_v8 = vsub.f32 %v400_v62, %v416_v61 }
 0x1ed   :  { %v3668_v50 = vpop.eup %3667  ;;  %v508_v16 = vmul.f32 %v3666_v1, %v460_v3  ;;  %v529_v2 = vmul.f32 %v4236_v59, %v509_v6 }
 0x1ee   :  { %3673 = vrsqrt.f32 %v478_v60  ;;  %v481_v42 = vadd.f32 1e-05, %v449_v63  ;;  %v448_v58 = vmax.f32 %v432_v8, 0.0  ;;  %v507_v20 = vmul.f32 %v3668_v50, %v459_v5 }
 0x1ef   :  { %v3670_v0 = vpop.eup %3669  ;;  %v528_v9 = vmul.f32 %v4236_v59, %v508_v16  ;;  %v549_v24 = vadd.f32 %v4247_v11, %v529_v2 }
 0x1f0   :  { %3675 = vrsqrt.f32 %v481_v42  ;;  %v480_v13 = vadd.f32 1e-05, %v448_v58  ;;  %v506_v21 = vmul.f32 %v3670_v0, %v458_v10  ;;  %v527_v14 = vmul.f32 %v4236_v59, %v507_v20 }
 0x1f1   :  { %v548_v23 = vadd.f32 %v4247_v11, %v528_v9  ;;  %v565_v30 = vmax.f32 %v549_v24, 0.0 }
 0x1f2   :  { %3677 = vrsqrt.f32 %v480_v13  ;;  %v526_v4 = vmul.f32 %v4236_v59, %v506_v21  ;;  %v547_v22 = vadd.f32 %v4247_v11, %v527_v14 }
 0x1f3   :  { %v564_v53 = vmax.f32 %v548_v23, 0.0 }
 0x1f4   :  { %v546_v25 = vadd.f32 %v4247_v11, %v526_v4  ;;  %v563_v28 = vmax.f32 %v547_v22, 0.0  ;;  %v3614_v22 = vld [vmem:[#allocation5 + $0xb8] sm:$0xff]  }
 0x1f5   :  { %v575_v37 = vpack.c.bf16 %v565_v30, %v564_v53  ;;  %3434 = vmatprep.subr.bf16.mxu0 %v3614_v22  ;;  %v3615_v53 = vld [vmem:[#allocation5 + $0xb0] sm:$0xff]  }
 0x1f6   :  { %v562_v18 = vmax.f32 %v546_v25, 0.0  ;;  %3435 = vmatpush3.bf16.msra.mxu0 %v3614_v22 }
 0x1f7   :  { %3436 = vmatprep.subr.bf16.mxu0 %v3615_v53 }
 0x1f8   :  { %v574_v33 = vpack.c.bf16 %v563_v28, %v562_v18 }
 0x1f9   :  { %v3672_v35 = vpop.eup %3671 }
 0x1fa   :  { %3426 = vmatprep.mubr.bf16.mxu1 %v574_v33  ;;  %v511_v41 = vmul.f32 %v3672_v35, %v463_v31  ;;  %3437 = vmatpush3.bf16.msra.mxu0 %v3615_v53  ;;  %v3616_v31 = vld [vmem:[#allocation5 + $0xa8] sm:$0xff]  }
 0x1fb   :  { %v3674_v43 = vpop.eup %3673  ;;  %3427 = vmatmul.mubr.bf16.gmra.mxu1 %v575_v37  ;;  %3438 = vmatprep.subr.bf16.mxu0 %v3616_v31 }
 0x1fc   :  { %v510_v46 = vmul.f32 %v3674_v43, %v462_v39  ;;  %v531_v47 = vmul.f32 %v4236_v59, %v511_v41  ;;  %v3617_v41 = vld [vmem:[#allocation5 + $0xa0] sm:$0xff]  }
 0x1fd   :  { %v3676_v49 = vpop.eup %3675 }
 0x1fe   :  { %v530_v51 = vmul.f32 %v4236_v59, %v510_v46  ;;  %v551_v52 = vadd.f32 %v4247_v11, %v531_v47  ;;  %v513_v38 = vmul.f32 %v3676_v49, %v465_v44  ;;  %3439 = vmatpush3.bf16.msra.mxu0 %v3616_v31  ;;  %v3618_v47 = vld [vmem:[#allocation5 + $0x98] sm:$0xff]  }
 0x1ff   :  { %v3678_v19 = vpop.eup %3677  ;;  %3440 = vmatprep.subr.bf16.mxu0 %v3617_v41 }
 0x200   :  { %v550_v26 = vadd.f32 %v4247_v11, %v530_v51  ;;  %v512_v29 = vmul.f32 %v3678_v19, %v464_v17  ;;  %v533_v54 = vmul.f32 %v4236_v59, %v513_v38  ;;  %v567_v12 = vmax.f32 %v551_v52, 0.0  ;;  %v3619_v51 = vld [vmem:[#allocation5 + $0x90] sm:$0xff]  }
 0x202   :  { %v566_v55 = vmax.f32 %v550_v26, 0.0  ;;  %v532_v40 = vmul.f32 %v4236_v59, %v512_v29  ;;  %v553_v56 = vadd.f32 %v4247_v11, %v533_v54  ;;  %3441 = vmatpush3.bf16.msra.mxu0 %v3617_v41  ;;  %v3620_v26 = vld [vmem:[#allocation5 + $0x88] sm:$0xff]  }
 0x203   :  { %3442 = vmatprep.subr.bf16.mxu0 %v3618_v47 }
 0x204   :  { %v576_v57 = vpack.c.bf16 %v567_v12, %v566_v55  ;;  %v552_v15 = vadd.f32 %v4247_v11, %v532_v40  ;;  %v569_v61 = vmax.f32 %v553_v56, 0.0  ;;  %v3621_v55 = vld [vmem:[#allocation5 + $0x80] sm:$0xff]  }
 0x206   :  { %3430 = vmatprep.mubr.bf16.mxu1 %v576_v57  ;;  %v568_v45 = vmax.f32 %v552_v15, 0.0  ;;  %3443 = vmatpush3.bf16.msra.mxu0 %v3618_v47 }
 0x207   :  { %3444 = vmatprep.subr.bf16.mxu0 %v3619_v51 }
 0x208   :  { %v577_v34 = vpack.c.bf16 %v569_v61, %v568_v45 }
 0x20a   :  { %3431 = vmatmul.mubr.bf16.gmra.mxu1 %v577_v34  ;;  %3445 = vmatpush3.bf16.msra.mxu0 %v3619_v51 }
 0x20b   :  { %3446 = vmatprep.subr.bf16.mxu0 %v3620_v26 }
 0x20e   :  { %3447 = vmatpush3.bf16.msra.mxu0 %v3620_v26 }
 0x20f   :  { %3448 = vmatprep.subr.bf16.mxu0 %v3621_v55 }
 0x212   :  { %3449 = vmatpush3.bf16.msra.mxu0 %v3621_v55 }
 0x29e   :  { %v3420_v36 = vpop.f32.mrf.mxu1 }
 0x29f   :  { %v4333_v48 = vadd.f32 %v3420_v36, %v4330_v27 }
 0x2a0   :  { %v682_v7 = vpop.f32.mrf.mxu1 }
 0x2a1   :  { %751 = vadd.xlane.f32.xlu0 %v4333_v48  ;;  %v4337_v32 = vadd.f32 %v4330_v27, %v682_v7  ;;  %v797_v3 = vmul.f32 %v4333_v48, %v4333_v48 }
 0x2a2   :  { %v3421_v59 = vpop.f32.mrf.mxu1 }
 0x2a3   :  { %v4340_v11 = vadd.f32 %v3421_v59, %v4330_v27  ;;  %v795_v6 = vmul.f32 %v4337_v32, %v4337_v32 }
 0x2a4   :  { %v685_v62 = vpop.f32.mrf.mxu1 }
 0x2a5   :  { %753 = vadd.xlane.f32.xlu1 %v4340_v11  ;;  %747 = vadd.xlane.f32.xlu0 %v4337_v32  ;;  %v4345_v1 = vadd.f32 %v4330_v27, %v685_v62  ;;  %v798_v5 = vmul.f32 %v4340_v11, %v4340_v11 }
 0x2a7   :  { %v796_v50 = vmul.f32 %v4345_v1, %v4345_v1 }
 0x2a9   :  { %749 = vadd.xlane.f32.xlu1 %v4345_v1  ;;  %815 = vadd.xlane.f32.xlu0 %v797_v3 }
 0x2ab   :  { %v3424_v60 = vpop.f32.mrf.mxu1 }
 0x2ac   :  { %v4355_v8 = vadd.f32 %v3424_v60, %v4330_v27 }
 0x2ad   :  { %817 = vadd.xlane.f32.xlu1 %v798_v5  ;;  %811 = vadd.xlane.f32.xlu0 %v795_v6  ;;  %v698_v63 = vpop.f32.mrf.mxu1 }
 0x2ae   :  { %v4361_v16 = vadd.f32 %v4330_v27, %v698_v63  ;;  %v801_v0 = vmul.f32 %v4355_v8, %v4355_v8 }
 0x2af   :  { %v3425_v10 = vpop.f32.mrf.mxu1 }
 0x2b0   :  { %v4364_v42 = vadd.f32 %v3425_v10, %v4330_v27  ;;  %v799_v13 = vmul.f32 %v4361_v16, %v4361_v16 }
 0x2b1   :  { %813 = vadd.xlane.f32.xlu1 %v796_v50  ;;  %759 = vadd.xlane.f32.xlu0 %v4355_v8  ;;  %v701_v58 = vpop.f32.mrf.mxu1 }
 0x2b2   :  { %v4369_v20 = vadd.f32 %v4330_v27, %v701_v58  ;;  %v802_v2 = vmul.f32 %v4364_v42, %v4364_v42 }
 0x2b4   :  { %v800_v23 = vmul.f32 %v4369_v20, %v4369_v20 }
 0x2b5   :  { %761 = vadd.xlane.f32.xlu1 %v4364_v42  ;;  %755 = vadd.xlane.f32.xlu0 %v4361_v16 }
 0x2b9   :  { %757 = vadd.xlane.f32.xlu1 %v4369_v20  ;;  %823 = vadd.xlane.f32.xlu0 %v801_v0 }
 0x2bb   :  { %v3428_v9 = vpop.f32.mrf.mxu1 }
 0x2bc   :  { %v4379_v14 = vadd.f32 %v3428_v9, %v4330_v27 }
 0x2bd   :  { %825 = vadd.xlane.f32.xlu1 %v802_v2  ;;  %819 = vadd.xlane.f32.xlu0 %v799_v13  ;;  %v714_v21 = vpop.f32.mrf.mxu1 }
 0x2be   :  { %v4385_v24 = vadd.f32 %v4330_v27, %v714_v21  ;;  %v805_v30 = vmul.f32 %v4379_v14, %v4379_v14 }
 0x2bf   :  { %v3429_v4 = vpop.f32.mrf.mxu1 }
 0x2c0   :  { %v4388_v25 = vadd.f32 %v3429_v4, %v4330_v27  ;;  %v803_v37 = vmul.f32 %v4385_v24, %v4385_v24 }
 0x2c1   :  { %821 = vadd.xlane.f32.xlu1 %v800_v23  ;;  %767 = vadd.xlane.f32.xlu0 %v4379_v14  ;;  %v717_v18 = vpop.f32.mrf.mxu1 }
 0x2c2   :  { %v4393_v28 = vadd.f32 %v4330_v27, %v717_v18  ;;  %v806_v35 = vmul.f32 %v4388_v25, %v4388_v25 }
 0x2c4   :  { %v804_v44 = vmul.f32 %v4393_v28, %v4393_v28 }
 0x2c5   :  { %769 = vadd.xlane.f32.xlu1 %v4388_v25  ;;  %763 = vadd.xlane.f32.xlu0 %v4385_v24 }
 0x2c9   :  { %765 = vadd.xlane.f32.xlu1 %v4393_v28  ;;  %831 = vadd.xlane.f32.xlu0 %v805_v30 }
 0x2ca   :  { %v3432_v33 = vpop.f32.mrf.mxu1 }
 0x2cb   :  { %v4403_v43 = vadd.f32 %v3432_v33, %v4330_v27 }
 0x2cc   :  { %v730_v39 = vpop.f32.mrf.mxu1 }
 0x2cd   :  { %833 = vadd.xlane.f32.xlu1 %v806_v35  ;;  %827 = vadd.xlane.f32.xlu0 %v803_v37  ;;  %v4409_v49 = vadd.f32 %v4330_v27, %v730_v39  ;;  %v809_v54 = vmul.f32 %v4403_v43, %v4403_v43 }
 0x2ce   :  { %v3433_v46 = vpop.f32.mrf.mxu1 }
 0x2cf   :  { %v4412_v17 = vadd.f32 %v3433_v46, %v4330_v27  ;;  %v807_v19 = vmul.f32 %v4409_v49, %v4409_v49 }
 0x2d0   :  { %v733_v52 = vpop.f32.mrf.mxu1 }
 0x2d1   :  { %829 = vadd.xlane.f32.xlu1 %v804_v44  ;;  %775 = vadd.xlane.f32.xlu0 %v4403_v43  ;;  %v4417_v38 = vadd.f32 %v4330_v27, %v733_v52  ;;  %v810_v12 = vmul.f32 %v4412_v17, %v4412_v17 }
 0x2d3   :  { %v808_v29 = vmul.f32 %v4417_v38, %v4417_v38 }
 0x2d5   :  { %777 = vadd.xlane.f32.xlu1 %v4412_v17  ;;  %771 = vadd.xlane.f32.xlu0 %v4409_v49 }
 0x2d9   :  { %773 = vadd.xlane.f32.xlu1 %v4417_v38  ;;  %835 = vadd.xlane.f32.xlu0 %v807_v19 }
 0x2dd   :  { %837 = vadd.xlane.f32.xlu1 %v808_v29  ;;  %839 = vadd.xlane.f32.xlu0 %v809_v54 }
 0x2e1   :  { %841 = vadd.xlane.f32.xlu1 %v810_v12 }
 0x32a   :  { %v752_v40 = vpop.xlane.xlu0 %751 }
 0x32b   :  { %v781_v15 = vmul.f32 0.03125, %v752_v40 }
 0x32d   :  { %v861_v27 = vmul.f32 %v781_v15, %v781_v15  ;;  %v909_v26 = vsub.f32 %v4333_v48, %v781_v15  ;;  %v4458_v48 = vld [vmem:[%s5772_s4 + $0x1] ss:$0 sm:$0xff] }
 0x32e   :  { %v754_v56 = vpop.xlane.xlu1 %753  ;;  %v748_v57 = vpop.xlane.xlu0 %747 }
 0x32f   :  { %v4428_v45 = vmul.f32 0.03125, %v754_v56  ;;  %v4430_v36 = vmul.f32 0.03125, %v748_v57 }
 0x331   :  { %v862_v62 = vmul.f32 %v4428_v45, %v4428_v45  ;;  %v859_v60 = vmul.f32 %v4430_v36, %v4430_v36 }
 0x332   :  { %v750_v61 = vpop.xlane.xlu1 %749  ;;  %v816_v34 = vpop.xlane.xlu0 %815 }
 0x333   :  { %v845_v7 = vmul.f32 0.03125, %v816_v34  ;;  %v4434_v3 = vmul.f32 0.03125, %v750_v61 }
 0x335   :  { %v877_v59 = vsub.f32 %v845_v7, %v861_v27  ;;  %v860_v2 = vmul.f32 %v4434_v3, %v4434_v3 }
 0x336   :  { %v818_v5 = vpop.xlane.xlu1 %817  ;;  %v812_v6 = vpop.xlane.xlu0 %811 }
 0x337   :  { %v893_v63 = vmax.f32 %v877_v59, 0.0  ;;  %v846_v50 = vmul.f32 0.03125, %v818_v5  ;;  %v843_v10 = vmul.f32 0.03125, %v812_v6 }
 0x339   :  { %v925_v58 = vadd.f32 1e-05, %v893_v63  ;;  %v878_v0 = vsub.f32 %v846_v50, %v862_v62  ;;  %v875_v9 = vsub.f32 %v843_v10, %v859_v60  ;;  %v910_v62 = vsub.f32 %v4340_v11, %v4428_v45 }
 0x33a   :  { %v814_v13 = vpop.xlane.xlu1 %813  ;;  %v760_v21 = vpop.xlane.xlu0 %759 }
 0x33b   :  { %3679 = vrsqrt.f32 %v925_v58  ;;  %v894_v23 = vmax.f32 %v878_v0, 0.0  ;;  %v891_v4 = vmax.f32 %v875_v9, 0.0  ;;  %v844_v22 = vmul.f32 0.03125, %v814_v13 }
 0x33c   :  { %v4440_v37 = vmul.f32 0.03125, %v760_v21  ;;  %v907_v0 = vsub.f32 %v4337_v32, %v4430_v36  ;;  %v908_v32 = vsub.f32 %v4345_v1, %v4434_v3 }
 0x33d   :  { %v926_v53 = vadd.f32 1e-05, %v894_v23  ;;  %v923_v18 = vadd.f32 1e-05, %v891_v4  ;;  %v876_v30 = vsub.f32 %v844_v22, %v860_v2  ;;  %v4467_v22 = vld [vmem:[#allocation8 + $0x1] ss:$0 sm:$0xff] }
 0x33e   :  { %v762_v31 = vpop.xlane.xlu1 %761  ;;  %v756_v33 = vpop.xlane.xlu0 %755  ;;  %v865_v47 = vmul.f32 %v4440_v37, %v4440_v37 }
 0x33f   :  { %3681 = vrsqrt.f32 %v926_v53  ;;  %v892_v35 = vmax.f32 %v876_v30, 0.0  ;;  %v4442_v41 = vmul.f32 0.03125, %v762_v31  ;;  %v4446_v51 = vmul.f32 0.03125, %v756_v33 }
 0x340   :  { %3683 = vrsqrt.f32 %v923_v18 }
 0x341   :  { %v924_v39 = vadd.f32 1e-05, %v892_v35  ;;  %v866_v29 = vmul.f32 %v4442_v41, %v4442_v41  ;;  %v863_v40 = vmul.f32 %v4446_v51, %v4446_v51 }
 0x342   :  { %v758_v44 = vpop.xlane.xlu1 %757  ;;  %v824_v46 = vpop.xlane.xlu0 %823 }
 0x343   :  { %3685 = vrsqrt.f32 %v924_v39  ;;  %v849_v52 = vmul.f32 0.03125, %v824_v46  ;;  %v4451_v54 = vmul.f32 0.03125, %v758_v44 }
 0x345   :  { %v881_v19 = vsub.f32 %v849_v52, %v865_v47  ;;  %v864_v5 = vmul.f32 %v4451_v54, %v4451_v54 }
 0x346   :  { %v826_v55 = vpop.xlane.xlu1 %825  ;;  %v820_v12 = vpop.xlane.xlu0 %819 }
 0x347   :  { %v897_v56 = vmax.f32 %v881_v19, 0.0  ;;  %v850_v57 = vmul.f32 0.03125, %v826_v55  ;;  %v847_v61 = vmul.f32 0.03125, %v820_v12  ;;  %v3843_v12 = vld [vmem:[#allocation2 + $0x18] sm:$0xff] }
 0x348   :  { %v3680_v34 = vpop.eup %3679 }
 0x349   :  { %v929_v27 = vadd.f32 1e-05, %v897_v56  ;;  %v882_v7 = vsub.f32 %v850_v57, %v866_v29  ;;  %v879_v59 = vsub.f32 %v847_v61, %v863_v40  ;;  %v957_v15 = vmul.f32 %v3680_v34, %v909_v26  ;;  %v3844_v57 = vld [vmem:[#allocation2 + $0x10] sm:$0xff] }
 0x34a   :  { %v822_v6 = vpop.xlane.xlu1 %821  ;;  %v768_v60 = vpop.xlane.xlu0 %767 }
 0x34b   :  { %3687 = vrsqrt.f32 %v929_v27  ;;  %v898_v63 = vmax.f32 %v882_v7, 0.0  ;;  %v895_v50 = vmax.f32 %v879_v59, 0.0  ;;  %v848_v10 = vmul.f32 0.03125, %v822_v6 }
 0x34c   :  { %v3682_v58 = vpop.eup %3681  ;;  %v977_v9 = vmul.f32 %v4458_v48, %v957_v15  ;;  %v4469_v30 = vmul.f32 0.03125, %v768_v60 }
 0x34d   :  { %v3684_v2 = vpop.eup %3683  ;;  %v930_v13 = vadd.f32 1e-05, %v898_v63  ;;  %v927_v21 = vadd.f32 1e-05, %v895_v50  ;;  %v880_v23 = vsub.f32 %v848_v10, %v864_v5  ;;  %v958_v11 = vmul.f32 %v3682_v58, %v910_v62  ;;  %v3845_v62 = vld [vmem:[#allocation2] sm:$0xff] }
 0x34e   :  { %v770_v45 = vpop.xlane.xlu1 %769  ;;  %v764_v4 = vpop.xlane.xlu0 %763  ;;  %v955_v53 = vmul.f32 %v3684_v2, %v907_v0  ;;  %v997_v39 = vadd.f32 %v4467_v22, %v977_v9  ;;  %v869_v1 = vmul.f32 %v4469_v30, %v4469_v30  ;;  %v913_v58 = vsub.f32 %v4355_v8, %v4440_v37  ;;  %v3846_v9 = vld [vmem:[#allocation2 + $0x8] sm:$0xff] }
 0x34f   :  { %3689 = vrsqrt.f32 %v930_v13  ;;  %v896_v18 = vmax.f32 %v880_v23, 0.0  ;;  %v978_v33 = vmul.f32 %v4458_v48, %v958_v11  ;;  %v4476_v44 = vmul.f32 0.03125, %v770_v45 }
 0x350   :  { %v3686_v31 = vpop.eup %3685  ;;  %3691 = vrsqrt.f32 %v927_v21  ;;  %v975_v36 = vmul.f32 %v4458_v48, %v955_v53  ;;  %v4482_v3 = vmul.f32 0.03125, %v764_v4  ;;  %v4487_v61 = vadd.f32 %v3844_v57, %v997_v39 }
 0x351   :  { %v928_v35 = vadd.f32 1e-05, %v896_v18  ;;  %v956_v52 = vmul.f32 %v3686_v31, %v908_v32  ;;  %v998_v26 = vadd.f32 %v4467_v22, %v978_v33  ;;  %v870_v34 = vmul.f32 %v4476_v44, %v4476_v44 }
 0x352   :  { %v766_v46 = vpop.xlane.xlu1 %765  ;;  %v832_v47 = vpop.xlane.xlu0 %831  ;;  %v995_v19 = vadd.f32 %v4467_v22, %v975_v36  ;;  %v867_v6 = vmul.f32 %v4482_v3, %v4482_v3  ;;  %v914_v0 = vsub.f32 %v4364_v42, %v4442_v41  ;;  %v1029_v45 = vmax.f32 %v4487_v61, 0.0 }
 0x353   :  { %3693 = vrsqrt.f32 %v928_v35  ;;  %v853_v29 = vmul.f32 0.03125, %v832_v47  ;;  %v976_v55 = vmul.f32 %v4458_v48, %v956_v52  ;;  %v4485_v40 = vadd.f32 %v3843_v12, %v998_v26 }
 0x354   :  { %v4491_v27 = vmul.f32 0.03125, %v766_v46  ;;  %v4494_v5 = vadd.f32 %v3845_v62, %v995_v19  ;;  %v911_v33 = vsub.f32 %v4361_v16, %v4446_v51  ;;  %v912_v57 = vsub.f32 %v4369_v20, %v4451_v54 }
 0x355   :  { %v885_v56 = vsub.f32 %v853_v29, %v869_v1  ;;  %v996_v15 = vadd.f32 %v4467_v22, %v976_v55  ;;  %v1030_v13 = vmax.f32 %v4485_v40, 0.0 }
 0x356   :  { %v834_v7 = vpop.xlane.xlu1 %833  ;;  %v828_v59 = vpop.xlane.xlu0 %827  ;;  %v868_v4 = vmul.f32 %v4491_v27, %v4491_v27  ;;  %v5791_v8 = vmax.f32 %v4494_v5, 0.0 }
 0x357   :  { %v901_v60 = vmax.f32 %v885_v56, 0.0  ;;  %v854_v63 = vmul.f32 0.03125, %v834_v7  ;;  %v851_v50 = vmul.f32 0.03125, %v828_v59  ;;  %v4502_v2 = vadd.f32 %v3846_v9, %v996_v15  ;;  %v3847_v9 = vld [vmem:[#allocation2 + $0x38] sm:$0xff] }
 0x358   :  { %v3688_v10 = vpop.eup %3687  ;;  %v1044_v39 = vpack.c.bf16 %v1030_v13, %v1029_v45 }
 0x359   :  { %v933_v21 = vadd.f32 1e-05, %v901_v60  ;;  %v886_v23 = vsub.f32 %v854_v63, %v870_v34  ;;  %v883_v11 = vsub.f32 %v851_v50, %v867_v6  ;;  %v5790_v37 = vmax.f32 %v4502_v2, 0.0 }
 0x35a   :  { %v830_v53 = vpop.xlane.xlu1 %829  ;;  %v776_v18 = vpop.xlane.xlu0 %775  ;;  %v961_v42 = vmul.f32 %v3688_v10, %v913_v58 }
 0x35b   :  { %3695 = vrsqrt.f32 %v933_v21  ;;  %v902_v41 = vmax.f32 %v886_v23, 0.0  ;;  %v899_v31 = vmax.f32 %v883_v11, 0.0  ;;  %v852_v32 = vmul.f32 0.03125, %v830_v53 }
 0x35c   :  { %v3690_v36 = vpop.eup %3689  ;;  %v1043_v35 = vpack.c.bf16 %v5790_v37, %v5791_v8  ;;  %v981_v16 = vmul.f32 %v4458_v48, %v961_v42  ;;  %v4527_v15 = vmul.f32 0.03125, %v776_v18 }
 0x35d   :  { %v3692_v46 = vpop.eup %3691  ;;  %v934_v47 = vadd.f32 1e-05, %v902_v41  ;;  %v931_v52 = vadd.f32 1e-05, %v899_v31  ;;  %v884_v19 = vsub.f32 %v852_v32, %v868_v4  ;;  %v962_v26 = vmul.f32 %v3690_v36, %v914_v0  ;;  %v3848_v41 = vld [vmem:[#allocation2 + $0x20] sm:$0xff]  ;;  %v3849_v32 = vld [vmem:[#allocation2 + $0x30] sm:$0xff] }
 0x35e   :  { %3450 = vmatprep.mubr.bf16.mxu0 %v1043_v35  ;;  %v778_v1 = vpop.xlane.xlu1 %777  ;;  %v772_v29 = vpop.xlane.xlu0 %771  ;;  %v959_v55 = vmul.f32 %v3692_v46, %v911_v33  ;;  %v1001_v50 = vadd.f32 %v4467_v22, %v981_v16  ;;  %v873_v4 = vmul.f32 %v4527_v15, %v4527_v15 }
 0x35f   :  { %3697 = vrsqrt.f32 %v934_v47  ;;  %v900_v51 = vmax.f32 %v884_v19, 0.0  ;;  %3451 = vmatmul.mubr.bf16.vlgmr.msra.gmra.mxu0 %v1044_v39  ;;  %v4521_v12 = vmul.f32 0.03125, %v772_v29  ;;  %v982_v7 = vmul.f32 %v4458_v48, %v962_v26  ;;  %v3850_v26 = vld [vmem:[#allocation2 + $0x28] sm:$0xff] }
 0x360   :  { %v3694_v56 = vpop.eup %3693  ;;  %3699 = vrsqrt.f32 %v931_v52  ;;  %v979_v34 = vmul.f32 %v4458_v48, %v959_v55  ;;  %v4539_v23 = vmul.f32 0.03125, %v778_v1  ;;  %v4546_v36 = vadd.f32 %v3849_v32, %v1001_v50 }
 0x361   :  { %v932_v59 = vadd.f32 1e-05, %v900_v51  ;;  %v960_v60 = vmul.f32 %v3694_v56, %v912_v57  ;;  %v1002_v10 = vadd.f32 %v4467_v22, %v982_v7  ;;  %v871_v20 = vmul.f32 %v4521_v12, %v4521_v12 }
 0x362   :  { %v774_v62 = vpop.xlane.xlu1 %773  ;;  %v836_v6 = vpop.xlane.xlu0 %835  ;;  %v999_v63 = vadd.f32 %v4467_v22, %v979_v34  ;;  %v917_v52 = vsub.f32 %v4379_v14, %v4469_v30  ;;  %v918_v19 = vsub.f32 %v4388_v25, %v4476_v44  ;;  %v874_v55 = vmul.f32 %v4539_v23, %v4539_v23 }
 0x363   :  { %3701 = vrsqrt.f32 %v932_v59  ;;  %v4534_v54 = vmul.f32 0.03125, %v774_v62  ;;  %v855_v58 = vmul.f32 0.03125, %v836_v6  ;;  %v980_v0 = vmul.f32 %v4458_v48, %v960_v60 }
 0x364   :  { %v4537_v21 = vadd.f32 %v3847_v9, %v1002_v10  ;;  %v4544_v31 = vadd.f32 %v3848_v41, %v999_v63  ;;  %v5787_v14 = vmax.f32 %v4546_v36, 0.0  ;;  %v915_v6 = vsub.f32 %v4385_v24, %v4482_v3 }
 0x365   :  { %v887_v11 = vsub.f32 %v855_v58, %v871_v20  ;;  %v1000_v42 = vadd.f32 %v4467_v22, %v980_v0  ;;  %v872_v33 = vmul.f32 %v4534_v54, %v4534_v54  ;;  %v916_v24 = vsub.f32 %v4393_v28, %v4491_v27  ;;  %v3851_v27 = vld [vmem:[#allocation2 + $0x58] sm:$0xff] }
 0x366   :  { %v838_v53 = vpop.xlane.xlu1 %837  ;;  %v840_v18 = vpop.xlane.xlu0 %839  ;;  %v5789_v29 = vmax.f32 %v4537_v21, 0.0  ;;  %v5788_v34 = vmax.f32 %v4544_v31, 0.0 }
 0x367   :  { %v903_v35 = vmax.f32 %v887_v11, 0.0  ;;  %v856_v39 = vmul.f32 0.03125, %v838_v53  ;;  %v857_v46 = vmul.f32 0.03125, %v840_v18  ;;  %v4554_v1 = vadd.f32 %v3850_v26, %v1000_v42 }
 0x368   :  { %v3696_v47 = vpop.eup %3695  ;;  %v1046_v63 = vpack.c.bf16 %v5789_v29, %v5787_v14 }
 0x369   :  { %v935_v16 = vadd.f32 1e-05, %v903_v35  ;;  %v888_v51 = vsub.f32 %v856_v39, %v872_v33  ;;  %v889_v56 = vsub.f32 %v857_v46, %v873_v4  ;;  %v5786_v7 = vmax.f32 %v4554_v1, 0.0 }
 0x36a   :  { %v842_v57 = vpop.xlane.xlu1 %841  ;;  %v965_v30 = vmul.f32 %v3696_v47, %v917_v52  ;;  %v3852_v47 = vld [vmem:[#allocation2 + $0x40] sm:$0xff] }
 0x36b   :  { %3703 = vrsqrt.f32 %v935_v16  ;;  %v904_v25 = vmax.f32 %v888_v51, 0.0  ;;  %v905_v44 = vmax.f32 %v889_v56, 0.0  ;;  %v858_v59 = vmul.f32 0.03125, %v842_v57  ;;  %v3854_v16 = vld [vmem:[#allocation2 + $0x48] sm:$0xff] }
 0x36c   :  { %v3698_v62 = vpop.eup %3697  ;;  %v1045_v60 = vpack.c.bf16 %v5786_v7, %v5788_v34  ;;  %v985_v11 = vmul.f32 %v4458_v48, %v965_v30 }
 0x36d   :  { %v3700_v50 = vpop.eup %3699  ;;  %v936_v10 = vadd.f32 1e-05, %v904_v25  ;;  %v937_v20 = vadd.f32 1e-05, %v905_v44  ;;  %v890_v58 = vsub.f32 %v858_v59, %v874_v55  ;;  %v966_v0 = vmul.f32 %v3698_v62, %v918_v19  ;;  %v3853_v19 = vld [vmem:[#allocation2 + $0x50] sm:$0xff] }
 0x36e   :  { %3454 = vmatprep.mubr.bf16.mxu0 %v1045_v60  ;;  %v963_v9 = vmul.f32 %v3700_v50, %v915_v6  ;;  %v1005_v35 = vadd.f32 %v4467_v22, %v985_v11  ;;  %v919_v55 = vsub.f32 %v4409_v49, %v4521_v12  ;;  %v920_v62 = vsub.f32 %v4417_v38, %v4534_v54 }
 0x36f   :  { %3705 = vrsqrt.f32 %v936_v10  ;;  %v906_v3 = vmax.f32 %v890_v58, 0.0  ;;  %3455 = vmatmul.mubr.bf16.gmra.mxu0 %v1046_v63  ;;  %v986_v4 = vmul.f32 %v4458_v48, %v966_v0  ;;  %v921_v60 = vsub.f32 %v4403_v43, %v4527_v15 }
 0x370   :  { %v3702_v53 = vpop.eup %3701  ;;  %3707 = vrsqrt.f32 %v937_v20  ;;  %v983_v18 = vmul.f32 %v4458_v48, %v963_v9  ;;  %v4586_v26 = vadd.f32 %v3853_v19, %v1005_v35  ;;  %v922_v20 = vsub.f32 %v4412_v17, %v4539_v23  ;;  %v3855_v9 = vld [vmem:[#allocation2 + $0x60] sm:$0xff]  ;;  %v3858_v35 = vld [vmem:[#allocation2 + $0x78] sm:$0xff] }
 0x371   :  { %v938_v42 = vadd.f32 1e-05, %v906_v3  ;;  %v964_v41 = vmul.f32 %v3702_v53, %v916_v24  ;;  %v1006_v32 = vadd.f32 %v4467_v22, %v986_v4  ;;  %v3856_v4 = vld [vmem:[#allocation2 + $0x68] sm:$0xff] }
 0x372   :  { %v1003_v33 = vadd.f32 %v4467_v22, %v983_v18  ;;  %v5783_v59 = vmax.f32 %v4586_v26, 0.0 }
 0x373   :  { %3709 = vrsqrt.f32 %v938_v42  ;;  %v984_v28 = vmul.f32 %v4458_v48, %v964_v41  ;;  %v4581_v39 = vadd.f32 %v3851_v27, %v1006_v32  ;;  %v3857_v41 = vld [vmem:[#allocation2 + $0x70] sm:$0xff] }
 0x374   :  { %v4584_v52 = vadd.f32 %v3852_v47, %v1003_v33 }
 0x375   :  { %v1004_v46 = vadd.f32 %v4467_v22, %v984_v28  ;;  %v5785_v57 = vmax.f32 %v4581_v39, 0.0 }
 0x376   :  { %v5784_v30 = vmax.f32 %v4584_v52, 0.0 }
 0x377   :  { %v4590_v51 = vadd.f32 %v3854_v16, %v1004_v46  ;;  %v1048_v63 = vpack.c.bf16 %v5785_v57, %v5783_v59  ;;  %v4638_v46 = vld [vmem:[#allocation7 + $0x2] ss:$0 sm:$0xff] }
 0x378   :  { %v3704_v56 = vpop.eup %3703 }
 0x379   :  { %v5782_v25 = vmax.f32 %v4590_v51, 0.0  ;;  %v967_v44 = vmul.f32 %v3704_v56, %v919_v55 }
 0x37b   :  { %v1047_v49 = vpack.c.bf16 %v5782_v25, %v5784_v30  ;;  %v987_v12 = vmul.f32 %v4458_v48, %v967_v44 }
 0x37c   :  { %v3706_v6 = vpop.eup %3705 }
 0x37d   :  { %v3708_v50 = vpop.eup %3707  ;;  %3458 = vmatprep.mubr.bf16.mxu0 %v1047_v49  ;;  %v968_v10 = vmul.f32 %v3706_v6, %v920_v62  ;;  %v1007_v38 = vadd.f32 %v4467_v22, %v987_v12 }
 0x37e   :  { %3459 = vmatmul.mubr.bf16.gmra.mxu0 %v1048_v63  ;;  %v969_v54 = vmul.f32 %v3708_v50, %v921_v60 }
 0x37f   :  { %v988_v58 = vmul.f32 %v4458_v48, %v968_v10  ;;  %v4615_v11 = vadd.f32 %v3855_v9, %v1007_v38 }
 0x380   :  { %v3710_v0 = vpop.eup %3709  ;;  %v989_v43 = vmul.f32 %v4458_v48, %v969_v54 }
 0x381   :  { %v1008_v15 = vadd.f32 %v4467_v22, %v988_v58  ;;  %v970_v24 = vmul.f32 %v3710_v0, %v922_v20  ;;  %v5781_v17 = vmax.f32 %v4615_v11, 0.0 }
 0x382   :  { %v1009_v3 = vadd.f32 %v4467_v22, %v989_v43 }
 0x383   :  { %v4618_v53 = vadd.f32 %v3856_v4, %v1008_v15  ;;  %v990_v18 = vmul.f32 %v4458_v48, %v970_v24  ;;  %v3622_v4 = vld [vmem:[#allocation5 + $0xf8] sm:$0xff]  }
 0x384   :  { %v4624_v32 = vadd.f32 %v3857_v41, %v1009_v3  ;;  %3466 = vmatprep.subr.bf16.mxu1 %v3622_v4 }
 0x385   :  { %v5780_v23 = vmax.f32 %v4618_v53, 0.0  ;;  %v1010_v42 = vadd.f32 %v4467_v22, %v990_v18  ;;  %3467 = vmatpush3.bf16.msra.mxu1 %v3622_v4 }
 0x386   :  { %v5779_v48 = vmax.f32 %v4624_v32, 0.0 }
 0x387   :  { %v1049_v33 = vpack.c.bf16 %v5780_v23, %v5781_v17  ;;  %v4630_v28 = vadd.f32 %v3858_v35, %v1010_v42  ;;  %v3623_v35 = vld [vmem:[#allocation5 + $0xf0] sm:$0xff]  }
 0x388   :  { %3468 = vmatprep.subr.bf16.mxu1 %v3623_v35 }
 0x389   :  { %3462 = vmatprep.mubr.bf16.mxu0 %v1049_v33  ;;  %v5778_v27 = vmax.f32 %v4630_v28, 0.0  ;;  %3469 = vmatpush3.bf16.msra.mxu1 %v3623_v35 }
 0x38b   :  { %v1050_v22 = vpack.c.bf16 %v5778_v27, %v5779_v48 }
 0x38d   :  { %3463 = vmatmul.mubr.bf16.gmra.mxu0 %v1050_v22 }
 0x41f   :  { %v3452_v47 = vpop.f32.mrf.mxu0 }
 0x420   :  { %v4641_v19 = vadd.f32 %v3452_v47, %v4638_v46 }
 0x421   :  { %v1155_v55 = vpop.f32.mrf.mxu0 }
 0x422   :  { %1224 = vadd.xlane.f32.xlu0 %v4641_v19  ;;  %v4645_v56 = vadd.f32 %v4638_v46, %v1155_v55  ;;  %v1270_v12 = vmul.f32 %v4641_v19, %v4641_v19 }
 0x423   :  { %v3453_v16 = vpop.f32.mrf.mxu0 }
 0x424   :  { %v4648_v44 = vadd.f32 %v3453_v16, %v4638_v46  ;;  %v1268_v60 = vmul.f32 %v4645_v56, %v4645_v56  ;;  %v3624_v16 = vld [vmem:[#allocation5 + $0xe8] sm:$0xff]  }
 0x425   :  { %v1158_v62 = vpop.f32.mrf.mxu0  ;;  %3470 = vmatprep.subr.bf16.mxu1 %v3624_v16 }
 0x426   :  { %1226 = vadd.xlane.f32.xlu1 %v4648_v44  ;;  %1220 = vadd.xlane.f32.xlu0 %v4645_v56  ;;  %v4653_v49 = vadd.f32 %v4638_v46, %v1158_v62  ;;  %v1271_v6 = vmul.f32 %v4648_v44, %v4648_v44 }
 0x427   :  { %3471 = vmatpush3.bf16.msra.mxu1 %v3624_v16 }
 0x428   :  { %v1269_v10 = vmul.f32 %v4653_v49, %v4653_v49 }
 0x42a   :  { %1222 = vadd.xlane.f32.xlu1 %v4653_v49  ;;  %1288 = vadd.xlane.f32.xlu0 %v1270_v12 }
 0x42e   :  { %1290 = vadd.xlane.f32.xlu1 %v1271_v6  ;;  %1284 = vadd.xlane.f32.xlu0 %v1268_v60  ;;  %v3625_v6 = vld [vmem:[#allocation5 + $0xe0] sm:$0xff]  }
 0x42f   :  { %v3456_v63 = vpop.f32.mrf.mxu0  ;;  %3472 = vmatprep.subr.bf16.mxu1 %v3625_v6 }
 0x430   :  { %v4663_v50 = vadd.f32 %v3456_v63, %v4638_v46  ;;  %3473 = vmatpush3.bf16.msra.mxu1 %v3625_v6 }
 0x431   :  { %v1171_v38 = vpop.f32.mrf.mxu0 }
 0x432   :  { %1286 = vadd.xlane.f32.xlu1 %v1269_v10  ;;  %1232 = vadd.xlane.f32.xlu0 %v4663_v50  ;;  %v4669_v20 = vadd.f32 %v4638_v46, %v1171_v38  ;;  %v1274_v15 = vmul.f32 %v4663_v50, %v4663_v50 }
 0x433   :  { %v3457_v54 = vpop.f32.mrf.mxu0 }
 0x434   :  { %v4672_v58 = vadd.f32 %v3457_v54, %v4638_v46  ;;  %v1272_v24 = vmul.f32 %v4669_v20, %v4669_v20  ;;  %v3626_v54 = vld [vmem:[#allocation5 + $0xd8] sm:$0xff]  }
 0x435   :  { %v1174_v0 = vpop.f32.mrf.mxu0  ;;  %3474 = vmatprep.subr.bf16.mxu1 %v3626_v54 }
 0x436   :  { %1234 = vadd.xlane.f32.xlu1 %v4672_v58  ;;  %1228 = vadd.xlane.f32.xlu0 %v4669_v20  ;;  %v4677_v43 = vadd.f32 %v4638_v46, %v1174_v0  ;;  %v1275_v9 = vmul.f32 %v4672_v58, %v4672_v58 }
 0x437   :  { %3475 = vmatpush3.bf16.msra.mxu1 %v3626_v54 }
 0x438   :  { %v1273_v41 = vmul.f32 %v4677_v43, %v4677_v43 }
 0x43a   :  { %1230 = vadd.xlane.f32.xlu1 %v4677_v43  ;;  %1296 = vadd.xlane.f32.xlu0 %v1274_v15 }
 0x43e   :  { %1298 = vadd.xlane.f32.xlu1 %v1275_v9  ;;  %1292 = vadd.xlane.f32.xlu0 %v1272_v24  ;;  %v3460_v3 = vpop.f32.mrf.mxu0 }
 0x43f   :  { %v4687_v18 = vadd.f32 %v3460_v3, %v4638_v46  ;;  %v3627_v3 = vld [vmem:[#allocation5 + $0xd0] sm:$0xff]  }
 0x440   :  { %v1187_v42 = vpop.f32.mrf.mxu0  ;;  %3476 = vmatprep.subr.bf16.mxu1 %v3627_v3 }
 0x441   :  { %v4696_v47 = vadd.f32 %v4638_v46, %v1187_v42  ;;  %v1278_v12 = vmul.f32 %v4687_v18, %v4687_v18  ;;  %3477 = vmatpush3.bf16.msra.mxu1 %v3627_v3 }
 0x442   :  { %1294 = vadd.xlane.f32.xlu1 %v1273_v41  ;;  %1240 = vadd.xlane.f32.xlu0 %v4687_v18  ;;  %v3461_v33 = vpop.f32.mrf.mxu0  ;;  %v3628_v41 = vld [vmem:[#allocation5 + $0xc8] sm:$0xff]  }
 0x443   :  { %v4693_v22 = vadd.f32 %v3461_v33, %v4638_v46  ;;  %v1276_v63 = vmul.f32 %v4696_v47, %v4696_v47  ;;  %3478 = vmatprep.subr.bf16.mxu1 %v3628_v41 }
 0x444   :  { %v1190_v55 = vpop.f32.mrf.mxu0 }
 0x445   :  { %v4701_v62 = vadd.f32 %v4638_v46, %v1190_v55  ;;  %v1279_v60 = vmul.f32 %v4693_v22, %v4693_v22  ;;  %3479 = vmatpush3.bf16.msra.mxu1 %v3628_v41  ;;  %v3629_v55 = vld [vmem:[#allocation5 + $0xc0] sm:$0xff]  }
 0x446   :  { %1242 = vadd.xlane.f32.xlu1 %v4693_v22  ;;  %1236 = vadd.xlane.f32.xlu0 %v4696_v47 }
 0x447   :  { %v1277_v15 = vmul.f32 %v4701_v62, %v4701_v62  ;;  %3480 = vmatprep.subr.bf16.mxu1 %v3629_v55 }
 0x449   :  { %3481 = vmatpush3.bf16.msra.mxu1 %v3629_v55 }
 0x44a   :  { %1238 = vadd.xlane.f32.xlu1 %v4701_v62  ;;  %1304 = vadd.xlane.f32.xlu0 %v1278_v12 }
 0x44d   :  { %v3464_v10 = vpop.f32.mrf.mxu0 }
 0x44e   :  { %1306 = vadd.xlane.f32.xlu1 %v1279_v60  ;;  %1300 = vadd.xlane.f32.xlu0 %v1276_v63  ;;  %v4711_v38 = vadd.f32 %v3464_v10, %v4638_v46 }
 0x44f   :  { %v1203_v0 = vpop.f32.mrf.mxu0 }
 0x450   :  { %v4720_v4 = vadd.f32 %v4638_v46, %v1203_v0  ;;  %v1282_v12 = vmul.f32 %v4711_v38, %v4711_v38 }
 0x451   :  { %v3465_v9 = vpop.f32.mrf.mxu0 }
 0x452   :  { %1302 = vadd.xlane.f32.xlu1 %v1277_v15  ;;  %1248 = vadd.xlane.f32.xlu0 %v4711_v38  ;;  %v4717_v24 = vadd.f32 %v3465_v9, %v4638_v46  ;;  %v1280_v35 = vmul.f32 %v4720_v4, %v4720_v4 }
 0x453   :  { %v1206_v42 = vpop.f32.mrf.mxu0 }
 0x454   :  { %v4725_v33 = vadd.f32 %v4638_v46, %v1206_v42  ;;  %v1283_v46 = vmul.f32 %v4717_v24, %v4717_v24 }
 0x456   :  { %1250 = vadd.xlane.f32.xlu1 %v4717_v24  ;;  %1244 = vadd.xlane.f32.xlu0 %v4720_v4  ;;  %v1281_v16 = vmul.f32 %v4725_v33, %v4725_v33 }
 0x45a   :  { %1246 = vadd.xlane.f32.xlu1 %v4725_v33  ;;  %1308 = vadd.xlane.f32.xlu0 %v1280_v35 }
 0x45e   :  { %1310 = vadd.xlane.f32.xlu1 %v1281_v16  ;;  %1312 = vadd.xlane.f32.xlu0 %v1282_v12 }
 0x462   :  { %1314 = vadd.xlane.f32.xlu1 %v1283_v46 }
 0x4ab   :  { %v1225_v6 = vpop.xlane.xlu0 %1224 }
 0x4ac   :  { %v4736_v10 = vmul.f32 0.03125, %v1225_v6 }
 0x4ae   :  { %v1334_v3 = vmul.f32 %v4736_v10, %v4736_v10 }
 0x4af   :  { %v1227_v60 = vpop.xlane.xlu1 %1226  ;;  %v1221_v63 = vpop.xlane.xlu0 %1220 }
 0x4b0   :  { %v4738_v54 = vmul.f32 0.03125, %v1227_v60  ;;  %v4740_v0 = vmul.f32 0.03125, %v1221_v63 }
 0x4b2   :  { %v1335_v35 = vmul.f32 %v4738_v54, %v4738_v54  ;;  %v1332_v55 = vmul.f32 %v4740_v0, %v4740_v0 }
 0x4b3   :  { %v1223_v15 = vpop.xlane.xlu1 %1222  ;;  %v1289_v9 = vpop.xlane.xlu0 %1288 }
 0x4b4   :  { %v1318_v42 = vmul.f32 0.03125, %v1289_v9  ;;  %v4748_v46 = vmul.f32 0.03125, %v1223_v15 }
 0x4b6   :  { %v1350_v41 = vsub.f32 %v1318_v42, %v1334_v3  ;;  %v1333_v9 = vmul.f32 %v4748_v46, %v4748_v46 }
 0x4b7   :  { %v1291_v16 = vpop.xlane.xlu1 %1290  ;;  %v1285_v12 = vpop.xlane.xlu0 %1284 }
 0x4b8   :  { %v1366_v6 = vmax.f32 %v1350_v41, 0.0  ;;  %v1319_v60 = vmul.f32 0.03125, %v1291_v16  ;;  %v1316_v63 = vmul.f32 0.03125, %v1285_v12 }
 0x4ba   :  { %v1398_v27 = vadd.f32 1e-05, %v1366_v6  ;;  %v1351_v48 = vsub.f32 %v1319_v60, %v1335_v35  ;;  %v1348_v23 = vsub.f32 %v1316_v63, %v1332_v55 }
 0x4bb   :  { %v1287_v17 = vpop.xlane.xlu1 %1286  ;;  %v1233_v25 = vpop.xlane.xlu0 %1232 }
 0x4bc   :  { %v1367_v3 = vmax.f32 %v1351_v48, 0.0  ;;  %v1364_v42 = vmax.f32 %v1348_v23, 0.0  ;;  %v1317_v59 = vmul.f32 0.03125, %v1287_v17  ;;  %3711 = vrsqrt.f32 %v1398_v27 }
 0x4bd   :  { %v4752_v16 = vmul.f32 0.03125, %v1233_v25 }
 0x4be   :  { %v1399_v30 = vadd.f32 1e-05, %v1367_v3  ;;  %v1396_v57 = vadd.f32 1e-05, %v1364_v42  ;;  %v1349_v7 = vsub.f32 %v1317_v59, %v1333_v9 }
 0x4bf   :  { %v1235_v15 = vpop.xlane.xlu1 %1234  ;;  %v1229_v14 = vpop.xlane.xlu0 %1228  ;;  %v1338_v17 = vmul.f32 %v4752_v16, %v4752_v16  ;;  %v1386_v37 = vsub.f32 %v4663_v50, %v4752_v16 }
 0x4c0   :  { %3713 = vrsqrt.f32 %v1399_v30  ;;  %v1365_v41 = vmax.f32 %v1349_v7, 0.0  ;;  %v4754_v55 = vmul.f32 0.03125, %v1235_v15  ;;  %v4756_v12 = vmul.f32 0.03125, %v1229_v14 }
 0x4c1   :  { %3715 = vrsqrt.f32 %v1396_v57 }
 0x4c2   :  { %v1397_v35 = vadd.f32 1e-05, %v1365_v41  ;;  %v1339_v30 = vmul.f32 %v4754_v55, %v4754_v55  ;;  %v1336_v7 = vmul.f32 %v4756_v12, %v4756_v12  ;;  %v1382_v41 = vsub.f32 %v4641_v19, %v4736_v10 }
 0x4c3   :  { %v1231_v6 = vpop.xlane.xlu1 %1230  ;;  %v1297_v48 = vpop.xlane.xlu0 %1296 }
 0x4c4   :  { %3717 = vrsqrt.f32 %v1397_v35  ;;  %v1322_v23 = vmul.f32 0.03125, %v1297_v48  ;;  %v4764_v27 = vmul.f32 0.03125, %v1231_v6  ;;  %v1383_v35 = vsub.f32 %v4648_v44, %v4738_v54 }
 0x4c6   :  { %v1354_v59 = vsub.f32 %v1322_v23, %v1338_v17  ;;  %v1337_v23 = vmul.f32 %v4764_v27, %v4764_v27 }
 0x4c7   :  { %v1299_v57 = vpop.xlane.xlu1 %1298  ;;  %v1293_v25 = vpop.xlane.xlu0 %1292 }
 0x4c8   :  { %v1370_v14 = vmax.f32 %v1354_v59, 0.0  ;;  %v1323_v60 = vmul.f32 0.03125, %v1299_v57  ;;  %v1320_v63 = vmul.f32 0.03125, %v1293_v25  ;;  %v1380_v25 = vsub.f32 %v4645_v56, %v4740_v0 }
 0x4c9   :  { %v3712_v9 = vpop.eup %3711  ;;  %v1381_v0 = vsub.f32 %v4653_v49, %v4748_v46 }
 0x4ca   :  { %v1402_v3 = vadd.f32 1e-05, %v1370_v14  ;;  %v1355_v42 = vsub.f32 %v1323_v60, %v1339_v30  ;;  %v1352_v15 = vsub.f32 %v1320_v63, %v1336_v7  ;;  %v1430_v30 = vmul.f32 %v3712_v9, %v1382_v41  ;;  %v4777_v63 = vld [vmem:[%s5772_s4 + $0x2] ss:$0 sm:$0xff] }
 0x4cb   :  { %v1295_v48 = vpop.xlane.xlu1 %1294  ;;  %v1241_v17 = vpop.xlane.xlu0 %1240 }
 0x4cc   :  { %v1371_v6 = vmax.f32 %v1355_v42, 0.0  ;;  %v1368_v34 = vmax.f32 %v1352_v15, 0.0  ;;  %v1321_v59 = vmul.f32 0.03125, %v1295_v48  ;;  %3719 = vrsqrt.f32 %v1402_v3 }
 0x4cd   :  { %v3714_v57 = vpop.eup %3713  ;;  %v4779_v48 = vmul.f32 0.03125, %v1241_v17  ;;  %v1450_v41 = vmul.f32 %v4777_v63, %v1430_v30  ;;  %v4790_v17 = vld [vmem:[#allocation8 + $0x2] ss:$0 sm:$0xff] }
 0x4ce   :  { %v3716_v7 = vpop.eup %3715  ;;  %v1403_v14 = vadd.f32 1e-05, %v1371_v6  ;;  %v1400_v19 = vadd.f32 1e-05, %v1368_v34  ;;  %v1353_v10 = vsub.f32 %v1321_v59, %v1337_v23  ;;  %v1431_v60 = vmul.f32 %v3714_v57, %v1383_v35 }
 0x4cf   :  { %v1243_v44 = vpop.xlane.xlu1 %1242  ;;  %v1237_v54 = vpop.xlane.xlu0 %1236  ;;  %v1428_v42 = vmul.f32 %v3716_v7, %v1380_v25  ;;  %v1342_v49 = vmul.f32 %v4779_v48, %v4779_v48 }
 0x4d0   :  { %3721 = vrsqrt.f32 %v1403_v14  ;;  %v1369_v15 = vmax.f32 %v1353_v10, 0.0  ;;  %v1451_v9 = vmul.f32 %v4777_v63, %v1431_v60  ;;  %v4786_v35 = vmul.f32 0.03125, %v1243_v44 }
 0x4d1   :  { %v3718_v56 = vpop.eup %3717  ;;  %3723 = vrsqrt.f32 %v1400_v19  ;;  %v1448_v34 = vmul.f32 %v4777_v63, %v1428_v42  ;;  %v4788_v23 = vmul.f32 0.03125, %v1237_v54  ;;  %v1470_v19 = vadd.f32 %v4790_v17, %v1450_v41 }
 0x4d2   :  { %v1401_v3 = vadd.f32 1e-05, %v1369_v15  ;;  %v1429_v57 = vmul.f32 %v3718_v56, %v1381_v0  ;;  %v1471_v25 = vadd.f32 %v4790_v17, %v1451_v9  ;;  %v1343_v10 = vmul.f32 %v4786_v35, %v4786_v35 }
 0x4d3   :  { %v1239_v6 = vpop.xlane.xlu1 %1238  ;;  %v1305_v59 = vpop.xlane.xlu0 %1304  ;;  %v1468_v30 = vadd.f32 %v4790_v17, %v1448_v34  ;;  %v1340_v60 = vmul.f32 %v4788_v23, %v4788_v23  ;;  %v1486_v29 = vmax.f32 %v1470_v19, 0.0  ;;  %v1384_v19 = vsub.f32 %v4669_v20, %v4756_v12 }
 0x4d4   :  { %3725 = vrsqrt.f32 %v1401_v3  ;;  %v1326_v46 = vmul.f32 0.03125, %v1305_v59  ;;  %v1449_v7 = vmul.f32 %v4777_v63, %v1429_v57  ;;  %v4802_v44 = vmul.f32 0.03125, %v1239_v6 }
 0x4d5   :  { %v1487_v3 = vmax.f32 %v1471_v25, 0.0  ;;  %v1484_v34 = vmax.f32 %v1468_v30, 0.0  ;;  %v1387_v6 = vsub.f32 %v4672_v58, %v4754_v55 }
 0x4d6   :  { %v1358_v14 = vsub.f32 %v1326_v46, %v1342_v49  ;;  %v1469_v15 = vadd.f32 %v4790_v17, %v1449_v7  ;;  %v1341_v7 = vmul.f32 %v4802_v44, %v4802_v44 }
 0x4d7   :  { %v1307_v54 = vpop.xlane.xlu1 %1306  ;;  %v1301_v42 = vpop.xlane.xlu0 %1300  ;;  %v1501_v8 = vpack.c.bf16 %v1487_v3, %v1486_v29 }
 0x4d8   :  { %v1374_v56 = vmax.f32 %v1358_v14, 0.0  ;;  %v1327_v0 = vmul.f32 0.03125, %v1307_v54  ;;  %v1324_v9 = vmul.f32 0.03125, %v1301_v42  ;;  %v1485_v59 = vmax.f32 %v1469_v15, 0.0 }
 0x4d9   :  { %v3720_v57 = vpop.eup %3719 }
 0x4da   :  { %v1406_v41 = vadd.f32 1e-05, %v1374_v56  ;;  %v1359_v49 = vsub.f32 %v1327_v0, %v1343_v10  ;;  %v1356_v46 = vsub.f32 %v1324_v9, %v1340_v60  ;;  %v1500_v42 = vpack.c.bf16 %v1485_v59, %v1484_v34 }
 0x4db   :  { %v1303_v14 = vpop.xlane.xlu1 %1302  ;;  %v1249_v54 = vpop.xlane.xlu0 %1248  ;;  %v1434_v50 = vmul.f32 %v3720_v57, %v1386_v37  ;;  %v1385_v59 = vsub.f32 %v4677_v43, %v4764_v27 }
 0x4dc   :  { %v1375_v25 = vmax.f32 %v1359_v49, 0.0  ;;  %v1372_v30 = vmax.f32 %v1356_v46, 0.0  ;;  %v1325_v15 = vmul.f32 0.03125, %v1303_v14  ;;  %3727 = vrsqrt.f32 %v1406_v41  ;;  %3482 = vmatprep.mubr.bf16.mxu1 %v1500_v42 }
 0x4dd   :  { %v3722_v56 = vpop.eup %3721  ;;  %3483 = vmatmul.mubr.bf16.vlgmr.msra.gmra.mxu1 %v1501_v8  ;;  %v1454_v12 = vmul.f32 %v4777_v63, %v1434_v50  ;;  %v4820_v41 = vmul.f32 0.03125, %v1249_v54 }
 0x4de   :  { %v3724_v16 = vpop.eup %3723  ;;  %v1407_v10 = vadd.f32 1e-05, %v1375_v25  ;;  %v1404_v58 = vadd.f32 1e-05, %v1372_v30  ;;  %v1357_v55 = vsub.f32 %v1325_v15, %v1341_v7  ;;  %v1435_v60 = vmul.f32 %v3722_v56, %v1387_v6 }
 0x4df   :  { %v1251_v0 = vpop.xlane.xlu1 %1250  ;;  %v1245_v9 = vpop.xlane.xlu0 %1244  ;;  %v1432_v34 = vmul.f32 %v3724_v16, %v1384_v19  ;;  %v1474_v30 = vadd.f32 %v4790_v17, %v1454_v12  ;;  %v1346_v15 = vmul.f32 %v4820_v41, %v4820_v41 }
 0x4e0   :  { %3729 = vrsqrt.f32 %v1407_v10  ;;  %v1373_v29 = vmax.f32 %v1357_v55, 0.0  ;;  %v4815_v3 = vmul.f32 0.03125, %v1245_v9  ;;  %v1455_v57 = vmul.f32 %v4777_v63, %v1435_v60 }
 0x4e1   :  { %v3726_v20 = vpop.eup %3725  ;;  %3731 = vrsqrt.f32 %v1404_v58  ;;  %v1452_v37 = vmul.f32 %v4777_v63, %v1432_v34  ;;  %v4832_v56 = vmul.f32 0.03125, %v1251_v0 }
 0x4e2   :  { %v1405_v8 = vadd.f32 1e-05, %v1373_v29  ;;  %v1433_v6 = vmul.f32 %v3726_v20, %v1385_v59  ;;  %v1475_v43 = vadd.f32 %v4790_v17, %v1455_v57  ;;  %v1344_v27 = vmul.f32 %v4815_v3, %v4815_v3 }
 0x4e3   :  { %v1247_v49 = vpop.xlane.xlu1 %1246  ;;  %v1309_v46 = vpop.xlane.xlu0 %1308  ;;  %v1472_v25 = vadd.f32 %v4790_v17, %v1452_v37  ;;  %v1490_v29 = vmax.f32 %v1474_v30, 0.0  ;;  %v1390_v37 = vsub.f32 %v4687_v18, %v4779_v48  ;;  %v1388_v18 = vsub.f32 %v4696_v47, %v4788_v23 }
 0x4e4   :  { %3733 = vrsqrt.f32 %v1405_v8  ;;  %v4825_v7 = vmul.f32 0.03125, %v1247_v49  ;;  %v1328_v14 = vmul.f32 0.03125, %v1309_v46  ;;  %v1453_v42 = vmul.f32 %v4777_v63, %v1433_v6 }
 0x4e5   :  { %v1491_v10 = vmax.f32 %v1475_v43, 0.0  ;;  %v1488_v34 = vmax.f32 %v1472_v25, 0.0  ;;  %v1391_v8 = vsub.f32 %v4693_v22, %v4786_v35  ;;  %v1347_v49 = vmul.f32 %v4832_v56, %v4832_v56 }
 0x4e6   :  { %v1360_v54 = vsub.f32 %v1328_v14, %v1344_v27  ;;  %v1473_v16 = vadd.f32 %v4790_v17, %v1453_v42  ;;  %v1345_v58 = vmul.f32 %v4825_v7, %v4825_v7 }
 0x4e7   :  { %v1311_v19 = vpop.xlane.xlu1 %1310  ;;  %v1313_v50 = vpop.xlane.xlu0 %1312  ;;  %v1503_v43 = vpack.c.bf16 %v1491_v10, %v1490_v29 }
 0x4e8   :  { %v1376_v55 = vmax.f32 %v1360_v54, 0.0  ;;  %v1329_v60 = vmul.f32 0.03125, %v1311_v19  ;;  %v1330_v9 = vmul.f32 0.03125, %v1313_v50  ;;  %v1489_v59 = vmax.f32 %v1473_v16, 0.0 }
 0x4e9   :  { %v3728_v20 = vpop.eup %3727  ;;  %v1389_v50 = vsub.f32 %v4701_v62, %v4802_v44 }
 0x4ea   :  { %v1408_v0 = vadd.f32 1e-05, %v1376_v55  ;;  %v1361_v12 = vsub.f32 %v1329_v60, %v1345_v58  ;;  %v1362_v57 = vsub.f32 %v1330_v9, %v1346_v15  ;;  %v1502_v6 = vpack.c.bf16 %v1489_v59, %v1488_v34 }
 0x4eb   :  { %v1315_v46 = vpop.xlane.xlu1 %1314  ;;  %v1438_v48 = vmul.f32 %v3728_v20, %v1390_v37  ;;  %v1392_v20 = vsub.f32 %v4720_v4, %v4815_v3 }
 0x4ec   :  { %3735 = vrsqrt.f32 %v1408_v0  ;;  %v1377_v27 = vmax.f32 %v1361_v12, 0.0  ;;  %v1378_v14 = vmax.f32 %v1362_v57, 0.0  ;;  %v1331_v42 = vmul.f32 0.03125, %v1315_v46  ;;  %3486 = vmatprep.mubr.bf16.mxu1 %v1502_v6 }
 0x4ed   :  { %v3730_v25 = vpop.eup %3729  ;;  %3487 = vmatmul.mubr.bf16.gmra.mxu1 %v1503_v43  ;;  %v1458_v23 = vmul.f32 %v4777_v63, %v1438_v48  ;;  %v1393_v6 = vsub.f32 %v4725_v33, %v4825_v7 }
 0x4ee   :  { %v3732_v30 = vpop.eup %3731  ;;  %v1409_v54 = vadd.f32 1e-05, %v1377_v27  ;;  %v1410_v15 = vadd.f32 1e-05, %v1378_v14  ;;  %v1363_v22 = vsub.f32 %v1331_v42, %v1347_v49  ;;  %v1439_v35 = vmul.f32 %v3730_v25, %v1391_v8 }
 0x4ef   :  { %v1436_v19 = vmul.f32 %v3732_v30, %v1388_v18  ;;  %v1478_v62 = vadd.f32 %v4790_v17, %v1458_v23  ;;  %v1394_v14 = vsub.f32 %v4711_v38, %v4820_v41  ;;  %v1395_v25 = vsub.f32 %v4717_v24, %v4832_v56 }
 0x4f0   :  { %3737 = vrsqrt.f32 %v1409_v54  ;;  %v1379_v16 = vmax.f32 %v1363_v22, 0.0  ;;  %v1459_v10 = vmul.f32 %v4777_v63, %v1439_v35 }
 0x4f1   :  { %v3734_v58 = vpop.eup %3733  ;;  %3739 = vrsqrt.f32 %v1410_v15  ;;  %v1456_v47 = vmul.f32 %v4777_v63, %v1436_v19  ;;  %v1494_v57 = vmax.f32 %v1478_v62, 0.0 }
 0x4f2   :  { %v1411_v55 = vadd.f32 1e-05, %v1379_v16  ;;  %v1437_v60 = vmul.f32 %v3734_v58, %v1389_v50  ;;  %v1479_v9 = vadd.f32 %v4790_v17, %v1459_v10  ;;  %v4871_v16 = vld [vmem:[#allocation7 + $0x3] ss:$0 sm:$0xff] }
 0x4f3   :  { %v1476_v59 = vadd.f32 %v4790_v17, %v1456_v47 }
 0x4f4   :  { %3741 = vrsqrt.f32 %v1411_v55  ;;  %v1457_v34 = vmul.f32 %v4777_v63, %v1437_v60  ;;  %v1495_v29 = vmax.f32 %v1479_v9, 0.0 }
 0x4f5   :  { %v1492_v37 = vmax.f32 %v1476_v59, 0.0 }
 0x4f6   :  { %v1477_v44 = vadd.f32 %v4790_v17, %v1457_v34  ;;  %v1505_v46 = vpack.c.bf16 %v1495_v29, %v1494_v57 }
 0x4f8   :  { %v1493_v0 = vmax.f32 %v1477_v44, 0.0 }
 0x4f9   :  { %v3736_v12 = vpop.eup %3735 }
 0x4fa   :  { %v1504_v8 = vpack.c.bf16 %v1493_v0, %v1492_v37  ;;  %v1440_v49 = vmul.f32 %v3736_v12, %v1392_v20 }
 0x4fc   :  { %3490 = vmatprep.mubr.bf16.mxu1 %v1504_v8  ;;  %v1460_v43 = vmul.f32 %v4777_v63, %v1440_v49 }
 0x4fd   :  { %v3738_v27 = vpop.eup %3737  ;;  %3491 = vmatmul.mubr.bf16.gmra.mxu1 %v1505_v46 }
 0x4fe   :  { %v3740_v42 = vpop.eup %3739  ;;  %v1441_v4 = vmul.f32 %v3738_v27, %v1393_v6  ;;  %v1480_v48 = vadd.f32 %v4790_v17, %v1460_v43 }
 0x4ff   :  { %v1442_v3 = vmul.f32 %v3740_v42, %v1394_v14  ;;  %v3630_v14 = vld [vmem:[#allocation5 + $0x138] sm:$0xff]  }
 0x500   :  { %v1461_v18 = vmul.f32 %v4777_v63, %v1441_v4  ;;  %v1496_v15 = vmax.f32 %v1480_v48, 0.0  ;;  %3498 = vmatprep.subr.bf16.mxu0 %v3630_v14 }
 0x501   :  { %v3742_v30 = vpop.eup %3741  ;;  %v1462_v33 = vmul.f32 %v4777_v63, %v1442_v3  ;;  %3499 = vmatpush3.bf16.msra.mxu0 %v3630_v14 }
 0x502   :  { %v1481_v7 = vadd.f32 %v4790_v17, %v1461_v18  ;;  %v1443_v54 = vmul.f32 %v3742_v30, %v1395_v25  ;;  %v3631_v18 = vld [vmem:[#allocation5 + $0x130] sm:$0xff]  }
 0x503   :  { %v1482_v41 = vadd.f32 %v4790_v17, %v1462_v33  ;;  %3500 = vmatprep.subr.bf16.mxu0 %v3631_v18  ;;  %v3632_v33 = vld [vmem:[#allocation5 + $0x128] sm:$0xff]  }
 0x504   :  { %v1497_v22 = vmax.f32 %v1481_v7, 0.0  ;;  %v1463_v38 = vmul.f32 %v4777_v63, %v1443_v54 }
 0x505   :  { %v1498_v24 = vmax.f32 %v1482_v41, 0.0  ;;  %3501 = vmatpush3.bf16.msra.mxu0 %v3631_v18 }
 0x506   :  { %v1506_v35 = vpack.c.bf16 %v1497_v22, %v1496_v15  ;;  %v1483_v19 = vadd.f32 %v4790_v17, %v1463_v38  ;;  %3502 = vmatprep.subr.bf16.mxu0 %v3632_v33  ;;  %v3633_v15 = vld [vmem:[#allocation5 + $0x120] sm:$0xff]  }
 0x508   :  { %3494 = vmatprep.mubr.bf16.mxu1 %v1506_v35  ;;  %v1499_v56 = vmax.f32 %v1483_v19, 0.0 }
 0x509   :  { %3503 = vmatpush3.bf16.msra.mxu0 %v3632_v33 }
 0x50a   :  { %v1507_v50 = vpack.c.bf16 %v1499_v56, %v1498_v24  ;;  %3504 = vmatprep.subr.bf16.mxu0 %v3633_v15  ;;  %v3634_v24 = vld [vmem:[#allocation5 + $0x118] sm:$0xff]  }
 0x50c   :  { %3495 = vmatmul.mubr.bf16.gmra.mxu1 %v1507_v50 }
 0x50d   :  { %3505 = vmatpush3.bf16.msra.mxu0 %v3633_v15 }
 0x50e   :  { %3506 = vmatprep.subr.bf16.mxu0 %v3634_v24 }
 0x511   :  { %3507 = vmatpush3.bf16.msra.mxu0 %v3634_v24 }
 0x59d   :  { %v3484_v10 = vpop.f32.mrf.mxu1 }
 0x59e   :  { %v4874_v58 = vadd.f32 %v3484_v10, %v4871_v16 }
 0x59f   :  { %v1612_v47 = vpop.f32.mrf.mxu1 }
 0x5a0   :  { %1681 = vadd.xlane.f32.xlu0 %v4874_v58  ;;  %v4878_v23 = vadd.f32 %v4871_v16, %v1612_v47  ;;  %v1727_v9 = vmul.f32 %v4874_v58, %v4874_v58  ;;  %v3635_v47 = vld [vmem:[#allocation5 + $0x110] sm:$0xff]  }
 0x5a1   :  { %v3485_v63 = vpop.f32.mrf.mxu1  ;;  %3508 = vmatprep.subr.bf16.mxu0 %v3635_v47 }
 0x5a2   :  { %v4881_v17 = vadd.f32 %v3485_v63, %v4871_v16  ;;  %v1725_v59 = vmul.f32 %v4878_v23, %v4878_v23  ;;  %3509 = vmatpush3.bf16.msra.mxu0 %v3635_v47 }
 0x5a3   :  { %v1615_v55 = vpop.f32.mrf.mxu1 }
 0x5a4   :  { %1683 = vadd.xlane.f32.xlu1 %v4881_v17  ;;  %1677 = vadd.xlane.f32.xlu0 %v4878_v23  ;;  %v4886_v60 = vadd.f32 %v4871_v16, %v1615_v55  ;;  %v1728_v34 = vmul.f32 %v4881_v17, %v4881_v17 }
 0x5a6   :  { %v1726_v29 = vmul.f32 %v4886_v60, %v4886_v60 }
 0x5a8   :  { %1679 = vadd.xlane.f32.xlu1 %v4886_v60  ;;  %1745 = vadd.xlane.f32.xlu0 %v1727_v9  ;;  %v3636_v9 = vld [vmem:[#allocation5 + $0x108] sm:$0xff]  }
 0x5a9   :  { %3510 = vmatprep.subr.bf16.mxu0 %v3636_v9 }
 0x5aa   :  { %3511 = vmatpush3.bf16.msra.mxu0 %v3636_v9 }
 0x5ac   :  { %1747 = vadd.xlane.f32.xlu1 %v1728_v34  ;;  %1741 = vadd.xlane.f32.xlu0 %v1725_v59 }
 0x5ad   :  { %v3488_v62 = vpop.f32.mrf.mxu1 }
 0x5ae   :  { %v4896_v44 = vadd.f32 %v3488_v62, %v4871_v16  ;;  %v3637_v62 = vld [vmem:[#allocation5 + $0x100] sm:$0xff]  }
 0x5af   :  { %v1628_v20 = vpop.f32.mrf.mxu1  ;;  %3512 = vmatprep.subr.bf16.mxu0 %v3637_v62 }
 0x5b0   :  { %1743 = vadd.xlane.f32.xlu1 %v1726_v29  ;;  %1689 = vadd.xlane.f32.xlu0 %v4896_v44  ;;  %v4902_v0 = vadd.f32 %v4871_v16, %v1628_v20  ;;  %v1731_v49 = vmul.f32 %v4896_v44, %v4896_v44 }
 0x5b1   :  { %v3489_v37 = vpop.f32.mrf.mxu1  ;;  %3513 = vmatpush3.bf16.msra.mxu0 %v3637_v62 }
 0x5b2   :  { %v4905_v12 = vadd.f32 %v3489_v37, %v4871_v16  ;;  %v1729_v6 = vmul.f32 %v4902_v0, %v4902_v0 }
 0x5b3   :  { %v1631_v57 = vpop.f32.mrf.mxu1 }
 0x5b4   :  { %1691 = vadd.xlane.f32.xlu1 %v4905_v12  ;;  %1685 = vadd.xlane.f32.xlu0 %v4902_v0  ;;  %v4910_v8 = vadd.f32 %v4871_v16, %v1631_v57  ;;  %v1732_v46 = vmul.f32 %v4905_v12, %v4905_v12 }
 0x5b6   :  { %v1730_v4 = vmul.f32 %v4910_v8, %v4910_v8 }
 0x5b8   :  { %1687 = vadd.xlane.f32.xlu1 %v4910_v8  ;;  %1753 = vadd.xlane.f32.xlu0 %v1731_v49 }
 0x5bc   :  { %1755 = vadd.xlane.f32.xlu1 %v1732_v46  ;;  %1749 = vadd.xlane.f32.xlu0 %v1729_v6 }
 0x5bd   :  { %v3492_v43 = vpop.f32.mrf.mxu1 }
 0x5be   :  { %v4920_v27 = vadd.f32 %v3492_v43, %v4871_v16 }
 0x5bf   :  { %v1644_v42 = vpop.f32.mrf.mxu1 }
 0x5c0   :  { %1751 = vadd.xlane.f32.xlu1 %v1730_v4  ;;  %1697 = vadd.xlane.f32.xlu0 %v4920_v27  ;;  %v4929_v48 = vadd.f32 %v4871_v16, %v1644_v42  ;;  %v1735_v54 = vmul.f32 %v4920_v27, %v4920_v27 }
 0x5c1   :  { %v3493_v3 = vpop.f32.mrf.mxu1 }
 0x5c2   :  { %v4926_v25 = vadd.f32 %v3493_v3, %v4871_v16  ;;  %v1733_v38 = vmul.f32 %v4929_v48, %v4929_v48 }
 0x5c3   :  { %v1647_v30 = vpop.f32.mrf.mxu1 }
 0x5c4   :  { %1699 = vadd.xlane.f32.xlu1 %v4926_v25  ;;  %1693 = vadd.xlane.f32.xlu0 %v4929_v48  ;;  %v4934_v7 = vadd.f32 %v4871_v16, %v1647_v30  ;;  %v1736_v22 = vmul.f32 %v4926_v25, %v4926_v25 }
 0x5c6   :  { %v1734_v56 = vmul.f32 %v4934_v7, %v4934_v7 }
 0x5c8   :  { %1695 = vadd.xlane.f32.xlu1 %v4934_v7  ;;  %1761 = vadd.xlane.f32.xlu0 %v1735_v54 }
 0x5cc   :  { %v3496_v41 = vpop.f32.mrf.mxu1  ;;  %1763 = vadd.xlane.f32.xlu1 %v1736_v22  ;;  %1757 = vadd.xlane.f32.xlu0 %v1733_v38 }
 0x5cd   :  { %v4944_v35 = vadd.f32 %v3496_v41, %v4871_v16 }
 0x5ce   :  { %v1660_v19 = vpop.f32.mrf.mxu1 }
 0x5cf   :  { %v4953_v63 = vadd.f32 %v4871_v16, %v1660_v19  ;;  %v1739_v20 = vmul.f32 %v4944_v35, %v4944_v35 }
 0x5d0   :  { %v3497_v50 = vpop.f32.mrf.mxu1  ;;  %1759 = vadd.xlane.f32.xlu1 %v1734_v56  ;;  %1705 = vadd.xlane.f32.xlu0 %v4944_v35 }
 0x5d1   :  { %v4950_v10 = vadd.f32 %v3497_v50, %v4871_v16  ;;  %v1737_v59 = vmul.f32 %v4953_v63, %v4953_v63 }
 0x5d2   :  { %v1663_v55 = vpop.f32.mrf.mxu1 }
 0x5d3   :  { %v4958_v34 = vadd.f32 %v4871_v16, %v1663_v55  ;;  %v1740_v16 = vmul.f32 %v4950_v10, %v4950_v10 }
 0x5d4   :  { %1707 = vadd.xlane.f32.xlu1 %v4950_v10  ;;  %1701 = vadd.xlane.f32.xlu0 %v4953_v63 }
 0x5d5   :  { %v1738_v29 = vmul.f32 %v4958_v34, %v4958_v34 }
 0x5d8   :  { %1703 = vadd.xlane.f32.xlu1 %v4958_v34  ;;  %1765 = vadd.xlane.f32.xlu0 %v1737_v59 }
 0x5dc   :  { %1767 = vadd.xlane.f32.xlu1 %v1738_v29  ;;  %1769 = vadd.xlane.f32.xlu0 %v1739_v20 }
 0x5e0   :  { %1771 = vadd.xlane.f32.xlu1 %v1740_v16 }
 0x629   :  { %v1682_v37 = vpop.xlane.xlu0 %1681 }
 0x62a   :  { %v1711_v46 = vmul.f32 0.03125, %v1682_v37 }
 0x62c   :  { %v1791_v42 = vmul.f32 %v1711_v46, %v1711_v46 }
 0x62d   :  { %v1684_v57 = vpop.xlane.xlu1 %1683  ;;  %v1678_v49 = vpop.xlane.xlu0 %1677 }
 0x62e   :  { %v4969_v6 = vmul.f32 0.03125, %v1684_v57  ;;  %v4971_v4 = vmul.f32 0.03125, %v1678_v49 }
 0x630   :  { %v1792_v30 = vmul.f32 %v4969_v6, %v4969_v6  ;;  %v1789_v22 = vmul.f32 %v4971_v4, %v4971_v4 }
 0x631   :  { %v1680_v43 = vpop.xlane.xlu1 %1679  ;;  %v1746_v14 = vpop.xlane.xlu0 %1745 }
 0x632   :  { %v1775_v3 = vmul.f32 0.03125, %v1746_v14  ;;  %v4975_v33 = vmul.f32 0.03125, %v1680_v43 }
 0x634   :  { %v1807_v18 = vsub.f32 %v1775_v3, %v1791_v42  ;;  %v1790_v47 = vmul.f32 %v4975_v33, %v4975_v33 }
 0x635   :  { %v1748_v54 = vpop.xlane.xlu1 %1747  ;;  %v1742_v15 = vpop.xlane.xlu0 %1741 }
 0x636   :  { %v1823_v38 = vmax.f32 %v1807_v18, 0.0  ;;  %v1776_v41 = vmul.f32 0.03125, %v1748_v54  ;;  %v1773_v19 = vmul.f32 0.03125, %v1742_v15 }
 0x638   :  { %v1855_v24 = vadd.f32 1e-05, %v1823_v38  ;;  %v1808_v56 = vsub.f32 %v1776_v41, %v1792_v30  ;;  %v1805_v50 = vsub.f32 %v1773_v19, %v1789_v22  ;;  %v1839_v41 = vsub.f32 %v4874_v58, %v1711_v46  ;;  %v4999_v58 = vld [vmem:[%s5772_s4 + $0x3] ss:$0 sm:$0xff] }
 0x639   :  { %v1744_v55 = vpop.xlane.xlu1 %1743  ;;  %v1690_v9 = vpop.xlane.xlu0 %1689  ;;  %v1840_v46 = vsub.f32 %v4881_v17, %v4969_v6 }
 0x63a   :  { %3743 = vrsqrt.f32 %v1855_v24  ;;  %v1824_v59 = vmax.f32 %v1808_v56, 0.0  ;;  %v1821_v62 = vmax.f32 %v1805_v50, 0.0  ;;  %v1774_v29 = vmul.f32 0.03125, %v1744_v55 }
 0x63b   :  { %v4981_v14 = vmul.f32 0.03125, %v1690_v9 }
 0x63c   :  { %v1856_v20 = vadd.f32 1e-05, %v1824_v59  ;;  %v1853_v16 = vadd.f32 1e-05, %v1821_v62  ;;  %v1806_v37 = vsub.f32 %v1774_v29, %v1790_v47 }
 0x63d   :  { %v1692_v57 = vpop.xlane.xlu1 %1691  ;;  %v1686_v49 = vpop.xlane.xlu0 %1685  ;;  %v1795_v54 = vmul.f32 %v4981_v14, %v4981_v14 }
 0x63e   :  { %3745 = vrsqrt.f32 %v1856_v20  ;;  %v1822_v43 = vmax.f32 %v1806_v37, 0.0  ;;  %v4983_v3 = vmul.f32 0.03125, %v1692_v57  ;;  %v4987_v15 = vmul.f32 0.03125, %v1686_v49 }
 0x63f   :  { %3747 = vrsqrt.f32 %v1853_v16 }
 0x640   :  { %v1854_v42 = vadd.f32 1e-05, %v1822_v43  ;;  %v1796_v19 = vmul.f32 %v4983_v3, %v4983_v3  ;;  %v1793_v47 = vmul.f32 %v4987_v15, %v4987_v15 }
 0x641   :  { %v1688_v18 = vpop.xlane.xlu1 %1687  ;;  %v1754_v30 = vpop.xlane.xlu0 %1753 }
 0x642   :  { %3749 = vrsqrt.f32 %v1854_v42  ;;  %v1779_v22 = vmul.f32 0.03125, %v1754_v30  ;;  %v4992_v24 = vmul.f32 0.03125, %v1688_v18 }
 0x644   :  { %v1811_v38 = vsub.f32 %v1779_v22, %v1795_v54  ;;  %v1794_v57 = vmul.f32 %v4992_v24, %v4992_v24  ;;  %v1837_v22 = vsub.f32 %v4878_v23, %v4971_v4  ;;  %v1838_v23 = vsub.f32 %v4886_v60, %v4975_v33 }
 0x645   :  { %v1756_v56 = vpop.xlane.xlu1 %1755  ;;  %v1750_v50 = vpop.xlane.xlu0 %1749 }
 0x646   :  { %v1827_v55 = vmax.f32 %v1811_v38, 0.0  ;;  %v1780_v9 = vmul.f32 0.03125, %v1756_v56  ;;  %v1777_v59 = vmul.f32 0.03125, %v1750_v50 }
 0x647   :  { %v3744_v62 = vpop.eup %3743 }
 0x648   :  { %v1887_v29 = vmul.f32 %v3744_v62, %v1839_v41  ;;  %v1859_v20 = vadd.f32 1e-05, %v1827_v55  ;;  %v1812_v16 = vsub.f32 %v1780_v9, %v1796_v19  ;;  %v1809_v37 = vsub.f32 %v1777_v59, %v1793_v47  ;;  %v5008_v55 = vld [vmem:[#allocation8 + $0x3] ss:$0 sm:$0xff] }
 0x649   :  { %v1752_v49 = vpop.xlane.xlu1 %1751  ;;  %v1698_v43 = vpop.xlane.xlu0 %1697 }
 0x64a   :  { %3751 = vrsqrt.f32 %v1859_v20  ;;  %v1828_v42 = vmax.f32 %v1812_v16, 0.0  ;;  %v1825_v18 = vmax.f32 %v1809_v37, 0.0  ;;  %v1778_v30 = vmul.f32 0.03125, %v1752_v49 }
 0x64b   :  { %v3746_v54 = vpop.eup %3745  ;;  %v1907_v38 = vmul.f32 %v4999_v58, %v1887_v29  ;;  %v5010_v62 = vmul.f32 0.03125, %v1698_v43 }
 0x64c   :  { %v3748_v41 = vpop.eup %3747  ;;  %v1888_v19 = vmul.f32 %v3746_v54, %v1840_v46  ;;  %v1860_v56 = vadd.f32 1e-05, %v1828_v42  ;;  %v1857_v50 = vadd.f32 1e-05, %v1825_v18  ;;  %v1810_v17 = vsub.f32 %v1778_v30, %v1794_v57 }
 0x64d   :  { %v1700_v6 = vpop.xlane.xlu1 %1699  ;;  %v1694_v47 = vpop.xlane.xlu0 %1693  ;;  %v1885_v9 = vmul.f32 %v3748_v41, %v1837_v22  ;;  %v1927_v37 = vadd.f32 %v5008_v55, %v1907_v38  ;;  %v1799_v60 = vmul.f32 %v5010_v62, %v5010_v62 }
 0x64e   :  { %3753 = vrsqrt.f32 %v1860_v56  ;;  %v1826_v59 = vmax.f32 %v1810_v17, 0.0  ;;  %v1908_v29 = vmul.f32 %v4999_v58, %v1888_v19  ;;  %v5017_v46 = vmul.f32 0.03125, %v1700_v6 }
 0x64f   :  { %v3750_v20 = vpop.eup %3749  ;;  %3755 = vrsqrt.f32 %v1857_v50  ;;  %v1905_v4 = vmul.f32 %v4999_v58, %v1885_v9  ;;  %v5023_v33 = vmul.f32 0.03125, %v1694_v47  ;;  %v5032_v41 = vadd.f32 %v1927_v37, %v1029_v45 }
 0x650   :  { %v1858_v16 = vadd.f32 1e-05, %v1826_v59  ;;  %v1886_v42 = vmul.f32 %v3750_v20, %v1838_v23  ;;  %v1928_v18 = vadd.f32 %v5008_v55, %v1908_v29  ;;  %v1800_v19 = vmul.f32 %v5017_v46, %v5017_v46 }
 0x651   :  { %v1696_v57 = vpop.xlane.xlu1 %1695  ;;  %v1762_v49 = vpop.xlane.xlu0 %1761  ;;  %v1925_v43 = vadd.f32 %v5008_v55, %v1905_v4  ;;  %v5806_v47 = vmax.f32 %v4494_v5, 0.0  ;;  %v1797_v40 = vmul.f32 %v5023_v33, %v5023_v33  ;;  %v1843_v20 = vsub.f32 %v4896_v44, %v4981_v14 }
 0x652   :  { %3757 = vrsqrt.f32 %v1858_v16  ;;  %v1783_v30 = vmul.f32 0.03125, %v1762_v49  ;;  %v1906_v54 = vmul.f32 %v4999_v58, %v1886_v42  ;;  %v5028_v22 = vadd.f32 %v1928_v18, %v1030_v13 }
 0x653   :  { %v5036_v56 = vmul.f32 0.03125, %v1696_v57  ;;  %v5041_v9 = vadd.f32 %v1925_v43, %v5806_v47  ;;  %v1844_v23 = vsub.f32 %v4905_v12, %v4983_v3  ;;  %v5807_v4 = vmax.f32 %v4502_v2, 0.0 }
 0x654   :  { %v1815_v38 = vsub.f32 %v1783_v30, %v1799_v60  ;;  %v1926_v6 = vadd.f32 %v5008_v55, %v1906_v54  ;;  %v5794_v5 = vmax.f32 %v5028_v22, 0.0  ;;  %v5795_v49 = vmax.f32 %v5032_v41, 0.0 }
 0x655   :  { %v1764_v50 = vpop.xlane.xlu1 %1763  ;;  %v1758_v17 = vpop.xlane.xlu0 %1757  ;;  %v1798_v42 = vmul.f32 %v5036_v56, %v5036_v56  ;;  %v5793_v44 = vmax.f32 %v5041_v9, 0.0  ;;  %v1841_v54 = vsub.f32 %v4902_v0, %v4987_v15 }
 0x656   :  { %v1831_v13 = vmax.f32 %v1815_v38, 0.0  ;;  %v1784_v61 = vmul.f32 0.03125, %v1764_v50  ;;  %v1781_v45 = vmul.f32 0.03125, %v1758_v17  ;;  %v5051_v29 = vadd.f32 %v1926_v6, %v5807_v4 }
 0x657   :  { %v3752_v59 = vpop.eup %3751  ;;  %v1842_v4 = vsub.f32 %v4910_v8, %v4992_v24 }
 0x658   :  { %v1863_v16 = vadd.f32 1e-05, %v1831_v13  ;;  %v1816_v37 = vsub.f32 %v1784_v61, %v1800_v19  ;;  %v1813_v57 = vsub.f32 %v1781_v45, %v1797_v40  ;;  %v5792_v12 = vmax.f32 %v5051_v29, 0.0 }
 0x659   :  { %v1760_v43 = vpop.xlane.xlu1 %1759  ;;  %v1706_v18 = vpop.xlane.xlu0 %1705  ;;  %v1891_v14 = vmul.f32 %v3752_v59, %v1843_v20  ;;  %v1974_v19 = vpack.c.bf16 %v5794_v5, %v5795_v49 }
 0x65a   :  { %3759 = vrsqrt.f32 %v1863_v16  ;;  %v1832_v2 = vmax.f32 %v1816_v37, 0.0  ;;  %v1829_v3 = vmax.f32 %v1813_v57, 0.0  ;;  %v1782_v60 = vmul.f32 0.03125, %v1760_v43 }
 0x65b   :  { %v3754_v30 = vpop.eup %3753  ;;  %v1973_v38 = vpack.c.bf16 %v5792_v12, %v5793_v44  ;;  %v1911_v0 = vmul.f32 %v4999_v58, %v1891_v14  ;;  %v5076_v57 = vmul.f32 0.03125, %v1706_v18  ;;  %v5808_v18 = vmax.f32 %v4537_v21, 0.0 }
 0x65c   :  { %v3756_v50 = vpop.eup %3755  ;;  %v1864_v17 = vadd.f32 1e-05, %v1832_v2  ;;  %v1861_v6 = vadd.f32 1e-05, %v1829_v3  ;;  %v1814_v47 = vsub.f32 %v1782_v60, %v1798_v42  ;;  %v1892_v40 = vmul.f32 %v3754_v30, %v1844_v23 }
 0x65d   :  { %3514 = vmatprep.mubr.bf16.mxu0 %v1973_v38  ;;  %v1708_v13 = vpop.xlane.xlu1 %1707  ;;  %v1702_v61 = vpop.xlane.xlu0 %1701  ;;  %v1889_v45 = vmul.f32 %v3756_v50, %v1841_v54  ;;  %v1931_v3 = vadd.f32 %v5008_v55, %v1911_v0  ;;  %v5810_v0 = vmax.f32 %v4546_v36, 0.0 }
 0x65e   :  { %3761 = vrsqrt.f32 %v1864_v17  ;;  %v1830_v15 = vmax.f32 %v1814_v47, 0.0  ;;  %3515 = vmatmul.mubr.bf16.vlgmr.msra.gmra.mxu0 %v1974_v19  ;;  %v5070_v59 = vmul.f32 0.03125, %v1702_v61  ;;  %v1912_v23 = vmul.f32 %v4999_v58, %v1892_v40 }
 0x65f   :  { %v3758_v20 = vpop.eup %3757  ;;  %3763 = vrsqrt.f32 %v1861_v6  ;;  %v1909_v16 = vmul.f32 %v4999_v58, %v1889_v45  ;;  %v5090_v19 = vmul.f32 0.03125, %v1708_v13  ;;  %v1803_v17 = vmul.f32 %v5076_v57, %v5076_v57 }
 0x660   :  { %v1862_v37 = vadd.f32 1e-05, %v1830_v15  ;;  %v1890_v14 = vmul.f32 %v3758_v20, %v1842_v4  ;;  %v1932_v60 = vadd.f32 %v5008_v55, %v1912_v23  ;;  %v1801_v8 = vmul.f32 %v5070_v59, %v5070_v59 }
 0x661   :  { %v1704_v42 = vpop.xlane.xlu1 %1703  ;;  %v1766_v43 = vpop.xlane.xlu0 %1765  ;;  %v1929_v2 = vadd.f32 %v5008_v55, %v1909_v16  ;;  %v5809_v61 = vmax.f32 %v4544_v31, 0.0  ;;  %v5101_v15 = vadd.f32 %v1931_v3, %v5810_v0  ;;  %v1847_v23 = vsub.f32 %v4920_v27, %v5010_v62 }
 0x662   :  { %3765 = vrsqrt.f32 %v1862_v37  ;;  %v5083_v24 = vmul.f32 0.03125, %v1704_v42  ;;  %v1785_v30 = vmul.f32 0.03125, %v1766_v43  ;;  %v1910_v54 = vmul.f32 %v4999_v58, %v1890_v14 }
 0x663   :  { %v5088_v38 = vadd.f32 %v1932_v60, %v5808_v18  ;;  %v5097_v45 = vadd.f32 %v1929_v2, %v5809_v61  ;;  %v1848_v37 = vsub.f32 %v4926_v25, %v5017_v46  ;;  %v5811_v31 = vmax.f32 %v4554_v1, 0.0 }
 0x664   :  { %v1817_v50 = vsub.f32 %v1785_v30, %v1801_v8  ;;  %v1930_v40 = vadd.f32 %v5008_v55, %v1910_v54  ;;  %v1802_v21 = vmul.f32 %v5083_v24, %v5083_v24  ;;  %v1804_v43 = vmul.f32 %v5090_v19, %v5090_v19 }
 0x665   :  { %v1768_v6 = vpop.xlane.xlu1 %1767  ;;  %v1770_v47 = vpop.xlane.xlu0 %1769  ;;  %v5798_v36 = vmax.f32 %v5088_v38, 0.0  ;;  %v5797_v8 = vmax.f32 %v5097_v45, 0.0  ;;  %v5799_v62 = vmax.f32 %v5101_v15, 0.0  ;;  %v1845_v18 = vsub.f32 %v4929_v48, %v5023_v33 }
 0x666   :  { %v1833_v13 = vmax.f32 %v1817_v50, 0.0  ;;  %v1786_v20 = vmul.f32 0.03125, %v1768_v6  ;;  %v1787_v4 = vmul.f32 0.03125, %v1770_v47  ;;  %v5111_v42 = vadd.f32 %v1930_v40, %v5811_v31 }
 0x667   :  { %v3760_v16 = vpop.eup %3759  ;;  %v1846_v48 = vsub.f32 %v4934_v7, %v5036_v56  ;;  %v5812_v56 = vmax.f32 %v4581_v39, 0.0 }
 0x668   :  { %v1865_v14 = vadd.f32 1e-05, %v1833_v13  ;;  %v1818_v2 = vsub.f32 %v1786_v20, %v1802_v21  ;;  %v1819_v3 = vsub.f32 %v1787_v4, %v1803_v17  ;;  %v5796_v27 = vmax.f32 %v5111_v42, 0.0 }
 0x669   :  { %v1772_v60 = vpop.xlane.xlu1 %1771  ;;  %v1895_v25 = vmul.f32 %v3760_v16, %v1847_v23  ;;  %v1976_v17 = vpack.c.bf16 %v5798_v36, %v5799_v62 }
 0x66a   :  { %3767 = vrsqrt.f32 %v1865_v14  ;;  %v1834_v1 = vmax.f32 %v1818_v2, 0.0  ;;  %v1835_v46 = vmax.f32 %v1819_v3, 0.0  ;;  %v1788_v30 = vmul.f32 0.03125, %v1772_v60 }
 0x66b   :  { %v3762_v54 = vpop.eup %3761  ;;  %v1975_v50 = vpack.c.bf16 %v5796_v27, %v5797_v8  ;;  %v1915_v13 = vmul.f32 %v4999_v58, %v1895_v25  ;;  %v5813_v60 = vmax.f32 %v4584_v52, 0.0 }
 0x66c   :  { %v3764_v6 = vpop.eup %3763  ;;  %v1866_v47 = vadd.f32 1e-05, %v1834_v1  ;;  %v1867_v40 = vadd.f32 1e-05, %v1835_v46  ;;  %v1820_v61 = vsub.f32 %v1788_v30, %v1804_v43  ;;  %v1896_v0 = vmul.f32 %v3762_v54, %v1848_v37 }
 0x66d   :  { %3518 = vmatprep.mubr.bf16.mxu0 %v1975_v50  ;;  %v1893_v21 = vmul.f32 %v3764_v6, %v1845_v18  ;;  %v1935_v14 = vadd.f32 %v5008_v55, %v1915_v13  ;;  %v5814_v1 = vmax.f32 %v4586_v26, 0.0  ;;  %v1849_v30 = vsub.f32 %v4953_v63, %v5070_v59 }
 0x66e   :  { %3769 = vrsqrt.f32 %v1866_v47  ;;  %v1836_v33 = vmax.f32 %v1820_v61, 0.0  ;;  %3519 = vmatmul.mubr.bf16.gmra.mxu0 %v1976_v17  ;;  %v1916_v20 = vmul.f32 %v4999_v58, %v1896_v0  ;;  %v5815_v54 = vmax.f32 %v4590_v51, 0.0 }
 0x66f   :  { %v3766_v4 = vpop.eup %3765  ;;  %3771 = vrsqrt.f32 %v1867_v40  ;;  %v1913_v16 = vmul.f32 %v4999_v58, %v1893_v21  ;;  %v5149_v46 = vadd.f32 %v1935_v14, %v5814_v1  ;;  %v1850_v26 = vsub.f32 %v4958_v34, %v5083_v24 }
 0x670   :  { %v1868_v23 = vadd.f32 1e-05, %v1836_v33  ;;  %v1894_v31 = vmul.f32 %v3766_v4, %v1846_v48  ;;  %v1936_v37 = vadd.f32 %v5008_v55, %v1916_v20  ;;  %v1851_v40 = vsub.f32 %v4944_v35, %v5076_v57 }
 0x671   :  { %v1933_v43 = vadd.f32 %v5008_v55, %v1913_v16  ;;  %v5803_v47 = vmax.f32 %v5149_v46, 0.0  ;;  %v1852_v13 = vsub.f32 %v4950_v10, %v5090_v19  ;;  %v5816_v20 = vmax.f32 %v4615_v11, 0.0 }
 0x672   :  { %3773 = vrsqrt.f32 %v1868_v23  ;;  %v1914_v7 = vmul.f32 %v4999_v58, %v1894_v31  ;;  %v5140_v2 = vadd.f32 %v1936_v37, %v5812_v56  ;;  %v5817_v31 = vmax.f32 %v4618_v53, 0.0 }
 0x673   :  { %v5145_v25 = vadd.f32 %v1933_v43, %v5813_v60  ;;  %v5819_v53 = vmax.f32 %v4630_v28, 0.0 }
 0x674   :  { %v1934_v3 = vadd.f32 %v5008_v55, %v1914_v7  ;;  %v5802_v50 = vmax.f32 %v5140_v2, 0.0  ;;  %v5818_v7 = vmax.f32 %v4624_v32, 0.0 }
 0x675   :  { %v5801_v17 = vmax.f32 %v5145_v25, 0.0 }
 0x676   :  { %v5155_v18 = vadd.f32 %v1934_v3, %v5815_v54  ;;  %v1978_v61 = vpack.c.bf16 %v5802_v50, %v5803_v47 }
 0x677   :  { %v3768_v39 = vpop.eup %3767 }
 0x678   :  { %v5800_v52 = vmax.f32 %v5155_v18, 0.0  ;;  %v1897_v6 = vmul.f32 %v3768_v39, %v1849_v30 }
 0x67a   :  { %v1977_v51 = vpack.c.bf16 %v5800_v52, %v5801_v17  ;;  %v1917_v63 = vmul.f32 %v4999_v58, %v1897_v6 }
 0x67b   :  { %v3770_v59 = vpop.eup %3769 }
 0x67c   :  { %v3772_v0 = vpop.eup %3771  ;;  %3522 = vmatprep.mubr.bf16.mxu0 %v1977_v51  ;;  %v1898_v21 = vmul.f32 %v3770_v59, %v1850_v26  ;;  %v1937_v34 = vadd.f32 %v5008_v55, %v1917_v63 }
 0x67d   :  { %3523 = vmatmul.mubr.bf16.gmra.mxu0 %v1978_v61  ;;  %v1899_v24 = vmul.f32 %v3772_v0, %v1851_v40 }
 0x67e   :  { %v1918_v48 = vmul.f32 %v4999_v58, %v1898_v21  ;;  %v5182_v4 = vadd.f32 %v1937_v34, %v5816_v20 }
 0x67f   :  { %v3774_v33 = vpop.eup %3773  ;;  %v1919_v35 = vmul.f32 %v4999_v58, %v1899_v24 }
 0x680   :  { %v1938_v57 = vadd.f32 %v5008_v55, %v1918_v48  ;;  %v1900_v16 = vmul.f32 %v3774_v33, %v1852_v13  ;;  %v5805_v19 = vmax.f32 %v5182_v4, 0.0 }
 0x681   :  { %v1939_v23 = vadd.f32 %v5008_v55, %v1919_v35 }
 0x682   :  { %v5187_v37 = vadd.f32 %v1938_v57, %v5817_v31  ;;  %v1920_v10 = vmul.f32 %v4999_v58, %v1900_v16 }
 0x683   :  { %v5195_v11 = vadd.f32 %v1939_v23, %v5818_v7  ;;  %v3638_v23 = vld [vmem:[#allocation5 + $0x178] sm:$0xff]  }
 0x684   :  { %v5804_v43 = vmax.f32 %v5187_v37, 0.0  ;;  %v1940_v14 = vadd.f32 %v5008_v55, %v1920_v10  ;;  %v5211_v55 = vld [vmem:[#allocation7 + $0x4] ss:$0 sm:$0xff]  ;;  %3530 = vmatprep.subr.bf16.mxu1 %v3638_v23 }
 0x685   :  { %v1971_v58 = vmax.f32 %v5195_v11, 0.0  ;;  %3531 = vmatpush3.bf16.msra.mxu1 %v3638_v23 }
 0x686   :  { %v1979_v56 = vpack.c.bf16 %v5804_v43, %v5805_v19  ;;  %v5203_v3 = vadd.f32 %v1940_v14, %v5819_v53 }
 0x688   :  { %3526 = vmatprep.mubr.bf16.mxu0 %v1979_v56  ;;  %v1972_v60 = vmax.f32 %v5203_v3, 0.0  ;;  %v3639_v56 = vld [vmem:[#allocation5 + $0x170] sm:$0xff]  }
 0x689   :  { %3532 = vmatprep.subr.bf16.mxu1 %v3639_v56 }
 0x68a   :  { %v1980_v32 = vpack.c.bf16 %v1972_v60, %v1971_v58  ;;  %3533 = vmatpush3.bf16.msra.mxu1 %v3639_v56 }
 0x68c   :  { %3527 = vmatmul.mubr.bf16.gmra.mxu0 %v1980_v32 }
 0x71e   :  { %v3516_v1 = vpop.f32.mrf.mxu0 }
 0x71f   :  { %v5214_v30 = vadd.f32 %v3516_v1, %v5211_v55 }
 0x720   :  { %v2085_v28 = vpop.f32.mrf.mxu0 }
 0x721   :  { %2154 = vadd.xlane.f32.xlu0 %v5214_v30  ;;  %v5218_v39 = vadd.f32 %v5211_v55, %v2085_v28  ;;  %v2200_v63 = vmul.f32 %v5214_v30, %v5214_v30  ;;  %v3640_v28 = vld [vmem:[#allocation5 + $0x168] sm:$0xff]  }
 0x722   :  { %v3517_v54 = vpop.f32.mrf.mxu0  ;;  %3534 = vmatprep.subr.bf16.mxu1 %v3640_v28 }
 0x723   :  { %v5221_v6 = vadd.f32 %v3517_v54, %v5211_v55  ;;  %v2198_v40 = vmul.f32 %v5218_v39, %v5218_v39  ;;  %3535 = vmatpush3.bf16.msra.mxu1 %v3640_v28  ;;  %v3645_v28 = vld [vmem:[#allocation5 + $0x140] sm:$0xff]  }
 0x724   :  { %v2088_v26 = vpop.f32.mrf.mxu0 }
 0x725   :  { %2156 = vadd.xlane.f32.xlu1 %v5221_v6  ;;  %2150 = vadd.xlane.f32.xlu0 %v5218_v39  ;;  %v5226_v51 = vadd.f32 %v5211_v55, %v2088_v26  ;;  %v2201_v59 = vmul.f32 %v5221_v6, %v5221_v6 }
 0x727   :  { %v2199_v21 = vmul.f32 %v5226_v51, %v5226_v51 }
 0x729   :  { %2152 = vadd.xlane.f32.xlu1 %v5226_v51  ;;  %2218 = vadd.xlane.f32.xlu0 %v2200_v63 }
 0x72d   :  { %2220 = vadd.xlane.f32.xlu1 %v2201_v59  ;;  %2214 = vadd.xlane.f32.xlu0 %v2198_v40  ;;  %v3641_v59 = vld [vmem:[#allocation5 + $0x160] sm:$0xff]  }
 0x72e   :  { %v3520_v61 = vpop.f32.mrf.mxu0  ;;  %3536 = vmatprep.subr.bf16.mxu1 %v3641_v59 }
 0x72f   :  { %v5236_v0 = vadd.f32 %v3520_v61, %v5211_v55  ;;  %3537 = vmatpush3.bf16.msra.mxu1 %v3641_v59 }
 0x730   :  { %v2101_v34 = vpop.f32.mrf.mxu0 }
 0x731   :  { %2216 = vadd.xlane.f32.xlu1 %v2199_v21  ;;  %2162 = vadd.xlane.f32.xlu0 %v5236_v0  ;;  %v5242_v13 = vadd.f32 %v5211_v55, %v2101_v34  ;;  %v2204_v57 = vmul.f32 %v5236_v0, %v5236_v0  ;;  %v3642_v21 = vld [vmem:[#allocation5 + $0x158] sm:$0xff]  }
 0x732   :  { %v3521_v24 = vpop.f32.mrf.mxu0  ;;  %3538 = vmatprep.subr.bf16.mxu1 %v3642_v21 }
 0x733   :  { %v5245_v48 = vadd.f32 %v3521_v24, %v5211_v55  ;;  %v2202_v16 = vmul.f32 %v5242_v13, %v5242_v13  ;;  %3539 = vmatpush3.bf16.msra.mxu1 %v3642_v21 }
 0x734   :  { %v2104_v33 = vpop.f32.mrf.mxu0 }
 0x735   :  { %2164 = vadd.xlane.f32.xlu1 %v5245_v48  ;;  %2158 = vadd.xlane.f32.xlu0 %v5242_v13  ;;  %v5250_v35 = vadd.f32 %v5211_v55, %v2104_v33  ;;  %v2205_v20 = vmul.f32 %v5245_v48, %v5245_v48 }
 0x737   :  { %v2203_v7 = vmul.f32 %v5250_v35, %v5250_v35 }
 0x739   :  { %2160 = vadd.xlane.f32.xlu1 %v5250_v35  ;;  %2226 = vadd.xlane.f32.xlu0 %v2204_v57 }
 0x73d   :  { %2228 = vadd.xlane.f32.xlu1 %v2205_v20  ;;  %2222 = vadd.xlane.f32.xlu0 %v2202_v16  ;;  %v3524_v31 = vpop.f32.mrf.mxu0  ;;  %v3643_v20 = vld [vmem:[#allocation5 + $0x150] sm:$0xff]  }
 0x73e   :  { %v5260_v10 = vadd.f32 %v3524_v31, %v5211_v55  ;;  %3540 = vmatprep.subr.bf16.mxu1 %v3643_v20 }
 0x73f   :  { %v2117_v14 = vpop.f32.mrf.mxu0  ;;  %3541 = vmatpush3.bf16.msra.mxu1 %v3643_v20 }
 0x740   :  { %v5269_v1 = vadd.f32 %v5211_v55, %v2117_v14  ;;  %v2208_v63 = vmul.f32 %v5260_v10, %v5260_v10  ;;  %v3644_v14 = vld [vmem:[#allocation5 + $0x148] sm:$0xff]  }
 0x741   :  { %2224 = vadd.xlane.f32.xlu1 %v2203_v7  ;;  %2170 = vadd.xlane.f32.xlu0 %v5260_v10  ;;  %v3525_v53 = vpop.f32.mrf.mxu0 }
 0x742   :  { %v5266_v32 = vadd.f32 %v3525_v53, %v5211_v55  ;;  %v2206_v61 = vmul.f32 %v5269_v1, %v5269_v1  ;;  %3542 = vmatprep.subr.bf16.mxu1 %v3644_v14 }
 0x743   :  { %v2120_v54 = vpop.f32.mrf.mxu0  ;;  %3543 = vmatpush3.bf16.msra.mxu1 %v3644_v14 }
 0x744   :  { %v5274_v26 = vadd.f32 %v5211_v55, %v2120_v54  ;;  %v2209_v40 = vmul.f32 %v5266_v32, %v5266_v32  ;;  %3544 = vmatprep.subr.bf16.mxu1 %v3645_v28 }
 0x745   :  { %2172 = vadd.xlane.f32.xlu1 %v5266_v32  ;;  %2166 = vadd.xlane.f32.xlu0 %v5269_v1 }
 0x746   :  { %v2207_v57 = vmul.f32 %v5274_v26, %v5274_v26 }
 0x747   :  { %3545 = vmatpush3.bf16.msra.mxu1 %v3645_v28 }
 0x749   :  { %2168 = vadd.xlane.f32.xlu1 %v5274_v26  ;;  %2234 = vadd.xlane.f32.xlu0 %v2208_v63 }
 0x74c   :  { %v3528_v34 = vpop.f32.mrf.mxu0 }
 0x74d   :  { %2236 = vadd.xlane.f32.xlu1 %v2209_v40  ;;  %2230 = vadd.xlane.f32.xlu0 %v2206_v61  ;;  %v5284_v24 = vadd.f32 %v3528_v34, %v5211_v55 }
 0x74e   :  { %v2133_v33 = vpop.f32.mrf.mxu0 }
 0x74f   :  { %v5293_v31 = vadd.f32 %v5211_v55, %v2133_v33  ;;  %v2212_v63 = vmul.f32 %v5284_v24, %v5284_v24 }
 0x750   :  { %v3529_v16 = vpop.f32.mrf.mxu0 }
 0x751   :  { %2232 = vadd.xlane.f32.xlu1 %v2207_v57  ;;  %2178 = vadd.xlane.f32.xlu0 %v5284_v24  ;;  %v5290_v23 = vadd.f32 %v3529_v16, %v5211_v55  ;;  %v2210_v53 = vmul.f32 %v5293_v31, %v5293_v31 }
 0x752   :  { %v2136_v7 = vpop.f32.mrf.mxu0 }
 0x753   :  { %v5298_v56 = vadd.f32 %v5211_v55, %v2136_v7  ;;  %v2213_v55 = vmul.f32 %v5290_v23, %v5290_v23 }
 0x755   :  { %2180 = vadd.xlane.f32.xlu1 %v5290_v23  ;;  %2174 = vadd.xlane.f32.xlu0 %v5293_v31  ;;  %v2211_v54 = vmul.f32 %v5298_v56, %v5298_v56 }
 0x759   :  { %2176 = vadd.xlane.f32.xlu1 %v5298_v56  ;;  %2238 = vadd.xlane.f32.xlu0 %v2210_v53 }
 0x75d   :  { %2240 = vadd.xlane.f32.xlu1 %v2211_v54  ;;  %2242 = vadd.xlane.f32.xlu0 %v2212_v63 }
 0x761   :  { %2244 = vadd.xlane.f32.xlu1 %v2213_v55 }
 0x7aa   :  { %v2155_v59 = vpop.xlane.xlu0 %2154 }
 0x7ab   :  { %v5309_v21 = vmul.f32 0.03125, %v2155_v59 }
 0x7ad   :  { %v2264_v16 = vmul.f32 %v5309_v21, %v5309_v21 }
 0x7ae   :  { %v2157_v40 = vpop.xlane.xlu1 %2156  ;;  %v2151_v61 = vpop.xlane.xlu0 %2150 }
 0x7af   :  { %v5311_v34 = vmul.f32 0.03125, %v2157_v40  ;;  %v5313_v33 = vmul.f32 0.03125, %v2151_v61 }
 0x7b1   :  { %v2265_v53 = vmul.f32 %v5311_v34, %v5311_v34  ;;  %v2262_v28 = vmul.f32 %v5313_v33, %v5313_v33 }
 0x7b2   :  { %v2153_v57 = vpop.xlane.xlu1 %2152  ;;  %v2219_v20 = vpop.xlane.xlu0 %2218 }
 0x7b3   :  { %v2248_v14 = vmul.f32 0.03125, %v2219_v20  ;;  %v5321_v55 = vmul.f32 0.03125, %v2153_v57 }
 0x7b5   :  { %v2280_v7 = vsub.f32 %v2248_v14, %v2264_v16  ;;  %v2263_v20 = vmul.f32 %v5321_v55, %v5321_v55 }
 0x7b6   :  { %v2221_v54 = vpop.xlane.xlu1 %2220  ;;  %v2215_v63 = vpop.xlane.xlu0 %2214 }
 0x7b7   :  { %v2296_v59 = vmax.f32 %v2280_v7, 0.0  ;;  %v2249_v40 = vmul.f32 0.03125, %v2221_v54  ;;  %v2246_v61 = vmul.f32 0.03125, %v2215_v63 }
 0x7b9   :  { %v2328_v12 = vadd.f32 1e-05, %v2296_v59  ;;  %v2281_v44 = vsub.f32 %v2249_v40, %v2265_v53  ;;  %v2278_v5 = vsub.f32 %v2246_v61, %v2262_v28 }
 0x7ba   :  { %v2217_v49 = vpop.xlane.xlu1 %2216  ;;  %v2163_v27 = vpop.xlane.xlu0 %2162 }
 0x7bb   :  { %v2297_v16 = vmax.f32 %v2281_v44, 0.0  ;;  %v2294_v14 = vmax.f32 %v2278_v5, 0.0  ;;  %v2247_v8 = vmul.f32 0.03125, %v2217_v49  ;;  %3775 = vrsqrt.f32 %v2328_v12 }
 0x7bc   :  { %v5325_v54 = vmul.f32 0.03125, %v2163_v27 }
 0x7bd   :  { %v2329_v36 = vadd.f32 1e-05, %v2297_v16  ;;  %v2326_v62 = vadd.f32 1e-05, %v2294_v14  ;;  %v2279_v52 = vsub.f32 %v2247_v8, %v2263_v20 }
 0x7be   :  { %v2165_v57 = vpop.xlane.xlu1 %2164  ;;  %v2159_v17 = vpop.xlane.xlu0 %2158  ;;  %v2268_v5 = vmul.f32 %v5325_v54, %v5325_v54  ;;  %v2316_v43 = vsub.f32 %v5236_v0, %v5325_v54 }
 0x7bf   :  { %3777 = vrsqrt.f32 %v2329_v36  ;;  %v2295_v7 = vmax.f32 %v2279_v52, 0.0  ;;  %v5327_v28 = vmul.f32 0.03125, %v2165_v57  ;;  %v5329_v63 = vmul.f32 0.03125, %v2159_v17 }
 0x7c0   :  { %3779 = vrsqrt.f32 %v2326_v62 }
 0x7c1   :  { %v2327_v53 = vadd.f32 1e-05, %v2295_v7  ;;  %v2269_v36 = vmul.f32 %v5327_v28, %v5327_v28  ;;  %v2266_v8 = vmul.f32 %v5329_v63, %v5329_v63  ;;  %v2312_v7 = vsub.f32 %v5214_v30, %v5309_v21 }
 0x7c2   :  { %v2161_v59 = vpop.xlane.xlu1 %2160  ;;  %v2227_v44 = vpop.xlane.xlu0 %2226 }
 0x7c3   :  { %3781 = vrsqrt.f32 %v2327_v53  ;;  %v2252_v49 = vmul.f32 0.03125, %v2227_v44  ;;  %v5337_v52 = vmul.f32 0.03125, %v2161_v59  ;;  %v2313_v53 = vsub.f32 %v5221_v6, %v5311_v34 }
 0x7c5   :  { %v2284_v12 = vsub.f32 %v2252_v49, %v2268_v5  ;;  %v2267_v49 = vmul.f32 %v5337_v52, %v5337_v52 }
 0x7c6   :  { %v2229_v27 = vpop.xlane.xlu1 %2228  ;;  %v2223_v62 = vpop.xlane.xlu0 %2222 }
 0x7c7   :  { %v2300_v17 = vmax.f32 %v2284_v12, 0.0  ;;  %v2253_v40 = vmul.f32 0.03125, %v2229_v27  ;;  %v2250_v61 = vmul.f32 0.03125, %v2223_v62  ;;  %v2310_v62 = vsub.f32 %v5218_v39, %v5313_v33 }
 0x7c8   :  { %v3776_v20 = vpop.eup %3775  ;;  %v2311_v33 = vsub.f32 %v5226_v51, %v5321_v55 }
 0x7c9   :  { %v2332_v16 = vadd.f32 1e-05, %v2300_v17  ;;  %v2285_v14 = vsub.f32 %v2253_v40, %v2269_v36  ;;  %v2282_v57 = vsub.f32 %v2250_v61, %v2266_v8  ;;  %v2360_v36 = vmul.f32 %v3776_v20, %v2312_v7  ;;  %v5350_v61 = vld [vmem:[%s5772_s4 + $0x4] ss:$0 sm:$0xff] }
 0x7ca   :  { %v2225_v44 = vpop.xlane.xlu1 %2224  ;;  %v2171_v5 = vpop.xlane.xlu0 %2170 }
 0x7cb   :  { %v2301_v59 = vmax.f32 %v2285_v14, 0.0  ;;  %v2298_v50 = vmax.f32 %v2282_v57, 0.0  ;;  %v2251_v12 = vmul.f32 0.03125, %v2225_v44  ;;  %3783 = vrsqrt.f32 %v2332_v16 }
 0x7cc   :  { %v3778_v27 = vpop.eup %3777  ;;  %v5352_v44 = vmul.f32 0.03125, %v2171_v5  ;;  %v2380_v7 = vmul.f32 %v5350_v61, %v2360_v36  ;;  %v5363_v5 = vld [vmem:[#allocation8 + $0x4] ss:$0 sm:$0xff] }
 0x7cd   :  { %v3780_v8 = vpop.eup %3779  ;;  %v2361_v17 = vmul.f32 %v3778_v27, %v2313_v53  ;;  %v2333_v30 = vadd.f32 1e-05, %v2301_v59  ;;  %v2330_v21 = vadd.f32 1e-05, %v2298_v50  ;;  %v2283_v40 = vsub.f32 %v2251_v12, %v2267_v49 }
 0x7ce   :  { %v2173_v6 = vpop.xlane.xlu1 %2172  ;;  %v2167_v34 = vpop.xlane.xlu0 %2166  ;;  %v2358_v14 = vmul.f32 %v3780_v8, %v2310_v62  ;;  %v2272_v51 = vmul.f32 %v5352_v44, %v5352_v44 }
 0x7cf   :  { %3785 = vrsqrt.f32 %v2333_v30  ;;  %v2299_v57 = vmax.f32 %v2283_v40, 0.0  ;;  %v2381_v20 = vmul.f32 %v5350_v61, %v2361_v17  ;;  %v5359_v53 = vmul.f32 0.03125, %v2173_v6 }
 0x7d0   :  { %v3782_v39 = vpop.eup %3781  ;;  %3787 = vrsqrt.f32 %v2330_v21  ;;  %v2378_v50 = vmul.f32 %v5350_v61, %v2358_v14  ;;  %v5361_v49 = vmul.f32 0.03125, %v2167_v34  ;;  %v2400_v30 = vadd.f32 %v5363_v5, %v2380_v7 }
 0x7d1   :  { %v2331_v16 = vadd.f32 1e-05, %v2299_v57  ;;  %v2359_v27 = vmul.f32 %v3782_v39, %v2311_v33  ;;  %v2401_v62 = vadd.f32 %v5363_v5, %v2381_v20  ;;  %v2273_v21 = vmul.f32 %v5359_v53, %v5359_v53 }
 0x7d2   :  { %v2169_v59 = vpop.xlane.xlu1 %2168  ;;  %v2235_v12 = vpop.xlane.xlu0 %2234  ;;  %v2398_v36 = vadd.f32 %v5363_v5, %v2378_v50  ;;  %v2270_v40 = vmul.f32 %v5361_v49, %v5361_v49  ;;  %v2416_v47 = vmax.f32 %v2400_v30, 0.0  ;;  %v2314_v30 = vsub.f32 %v5242_v13, %v5329_v63 }
 0x7d3   :  { %3789 = vrsqrt.f32 %v2331_v16  ;;  %v2256_v55 = vmul.f32 0.03125, %v2235_v12  ;;  %v2379_v8 = vmul.f32 %v5350_v61, %v2359_v27  ;;  %v5375_v6 = vmul.f32 0.03125, %v2169_v59 }
 0x7d4   :  { %v2417_v16 = vmax.f32 %v2401_v62, 0.0  ;;  %v2414_v50 = vmax.f32 %v2398_v36, 0.0  ;;  %v2317_v59 = vsub.f32 %v5245_v48, %v5327_v28 }
 0x7d5   :  { %v2288_v17 = vsub.f32 %v2256_v55, %v2272_v51  ;;  %v2399_v57 = vadd.f32 %v5363_v5, %v2379_v8  ;;  %v2271_v8 = vmul.f32 %v5375_v6, %v5375_v6 }
 0x7d6   :  { %v2237_v34 = vpop.xlane.xlu1 %2236  ;;  %v2231_v14 = vpop.xlane.xlu0 %2230  ;;  %v2431_v19 = vpack.c.bf16 %v2417_v16, %v2416_v47 }
 0x7d7   :  { %v2304_v39 = vmax.f32 %v2288_v17, 0.0  ;;  %v2257_v33 = vmul.f32 0.03125, %v2237_v34  ;;  %v2254_v20 = vmul.f32 0.03125, %v2231_v14  ;;  %v2415_v12 = vmax.f32 %v2399_v57, 0.0 }
 0x7d8   :  { %v3784_v27 = vpop.eup %3783 }
 0x7d9   :  { %v2336_v7 = vadd.f32 1e-05, %v2304_v39  ;;  %v2289_v51 = vsub.f32 %v2257_v33, %v2273_v21  ;;  %v2286_v55 = vsub.f32 %v2254_v20, %v2270_v40  ;;  %v2430_v14 = vpack.c.bf16 %v2415_v12, %v2414_v50 }
 0x7da   :  { %v2233_v17 = vpop.xlane.xlu1 %2232  ;;  %v2179_v34 = vpop.xlane.xlu0 %2178  ;;  %v2364_v0 = vmul.f32 %v3784_v27, %v2316_v43  ;;  %v2315_v12 = vsub.f32 %v5250_v35, %v5337_v52 }
 0x7db   :  { %v2305_v62 = vmax.f32 %v2289_v51, 0.0  ;;  %v2302_v36 = vmax.f32 %v2286_v55, 0.0  ;;  %v2255_v57 = vmul.f32 0.03125, %v2233_v17  ;;  %3791 = vrsqrt.f32 %v2336_v7  ;;  %3546 = vmatprep.mubr.bf16.mxu1 %v2430_v14 }
 0x7dc   :  { %v3786_v39 = vpop.eup %3785  ;;  %3547 = vmatmul.mubr.bf16.vlgmr.msra.gmra.mxu1 %v2431_v19  ;;  %v2384_v63 = vmul.f32 %v5350_v61, %v2364_v0  ;;  %v5393_v7 = vmul.f32 0.03125, %v2179_v34 }
 0x7dd   :  { %v3788_v54 = vpop.eup %3787  ;;  %v2337_v21 = vadd.f32 1e-05, %v2305_v62  ;;  %v2334_v48 = vadd.f32 1e-05, %v2302_v36  ;;  %v2287_v28 = vsub.f32 %v2255_v57, %v2271_v8  ;;  %v2365_v40 = vmul.f32 %v3786_v39, %v2317_v59 }
 0x7de   :  { %v2181_v33 = vpop.xlane.xlu1 %2180  ;;  %v2175_v20 = vpop.xlane.xlu0 %2174  ;;  %v2362_v50 = vmul.f32 %v3788_v54, %v2314_v30  ;;  %v2404_v36 = vadd.f32 %v5363_v5, %v2384_v63  ;;  %v2276_v57 = vmul.f32 %v5393_v7, %v5393_v7 }
 0x7df   :  { %3793 = vrsqrt.f32 %v2337_v21  ;;  %v2303_v47 = vmax.f32 %v2287_v28, 0.0  ;;  %v5388_v16 = vmul.f32 0.03125, %v2175_v20  ;;  %v2385_v27 = vmul.f32 %v5350_v61, %v2365_v40 }
 0x7e0   :  { %v3790_v13 = vpop.eup %3789  ;;  %3795 = vrsqrt.f32 %v2334_v48  ;;  %v2382_v43 = vmul.f32 %v5350_v61, %v2362_v50  ;;  %v5405_v39 = vmul.f32 0.03125, %v2181_v33 }
 0x7e1   :  { %v2335_v19 = vadd.f32 1e-05, %v2303_v47  ;;  %v2363_v59 = vmul.f32 %v3790_v13, %v2315_v12  ;;  %v2405_v35 = vadd.f32 %v5363_v5, %v2385_v27  ;;  %v2274_v52 = vmul.f32 %v5388_v16, %v5388_v16 }
 0x7e2   :  { %v2177_v51 = vpop.xlane.xlu1 %2176  ;;  %v2239_v55 = vpop.xlane.xlu0 %2238  ;;  %v2402_v62 = vadd.f32 %v5363_v5, %v2382_v43  ;;  %v2420_v47 = vmax.f32 %v2404_v36, 0.0  ;;  %v2320_v43 = vsub.f32 %v5260_v10, %v5352_v44  ;;  %v2318_v10 = vsub.f32 %v5269_v1, %v5361_v49 }
 0x7e3   :  { %3797 = vrsqrt.f32 %v2335_v19  ;;  %v5398_v8 = vmul.f32 0.03125, %v2177_v51  ;;  %v2258_v17 = vmul.f32 0.03125, %v2239_v55  ;;  %v2383_v14 = vmul.f32 %v5350_v61, %v2363_v59 }
 0x7e4   :  { %v2421_v21 = vmax.f32 %v2405_v35, 0.0  ;;  %v2418_v50 = vmax.f32 %v2402_v62, 0.0  ;;  %v2321_v19 = vsub.f32 %v5266_v32, %v5359_v53  ;;  %v2277_v51 = vmul.f32 %v5405_v39, %v5405_v39 }
 0x7e5   :  { %v2290_v34 = vsub.f32 %v2258_v17, %v2274_v52  ;;  %v2403_v54 = vadd.f32 %v5363_v5, %v2383_v14  ;;  %v2275_v48 = vmul.f32 %v5398_v8, %v5398_v8 }
 0x7e6   :  { %v2241_v30 = vpop.xlane.xlu1 %2240  ;;  %v2243_v0 = vpop.xlane.xlu0 %2242  ;;  %v2433_v35 = vpack.c.bf16 %v2421_v21, %v2420_v47 }
 0x7e7   :  { %v2306_v28 = vmax.f32 %v2290_v34, 0.0  ;;  %v2259_v40 = vmul.f32 0.03125, %v2241_v30  ;;  %v2260_v20 = vmul.f32 0.03125, %v2243_v0  ;;  %v2419_v12 = vmax.f32 %v2403_v54, 0.0 }
 0x7e8   :  { %v3792_v13 = vpop.eup %3791  ;;  %v2319_v0 = vsub.f32 %v5274_v26, %v5375_v6 }
 0x7e9   :  { %v2338_v33 = vadd.f32 1e-05, %v2306_v28  ;;  %v2291_v63 = vsub.f32 %v2259_v40, %v2275_v48  ;;  %v2292_v27 = vsub.f32 %v2260_v20, %v2276_v57  ;;  %v2432_v59 = vpack.c.bf16 %v2419_v12, %v2418_v50 }
 0x7ea   :  { %v2245_v55 = vpop.xlane.xlu1 %2244  ;;  %v2368_v44 = vmul.f32 %v3792_v13, %v2320_v43  ;;  %v2322_v13 = vsub.f32 %v5293_v31, %v5388_v16 }
 0x7eb   :  { %3799 = vrsqrt.f32 %v2338_v33  ;;  %v2307_v52 = vmax.f32 %v2291_v63, 0.0  ;;  %v2308_v17 = vmax.f32 %v2292_v27, 0.0  ;;  %v2261_v14 = vmul.f32 0.03125, %v2245_v55  ;;  %3550 = vmatprep.mubr.bf16.mxu1 %v2432_v59 }
 0x7ec   :  { %v3794_v62 = vpop.eup %3793  ;;  %3551 = vmatmul.mubr.bf16.gmra.mxu1 %v2433_v35  ;;  %v2388_v49 = vmul.f32 %v5350_v61, %v2368_v44  ;;  %v2323_v59 = vsub.f32 %v5298_v56, %v5398_v8 }
 0x7ed   :  { %v3796_v36 = vpop.eup %3795  ;;  %v2339_v34 = vadd.f32 1e-05, %v2307_v52  ;;  %v2340_v57 = vadd.f32 1e-05, %v2308_v17  ;;  %v2293_v32 = vsub.f32 %v2261_v14, %v2277_v51  ;;  %v2369_v53 = vmul.f32 %v3794_v62, %v2321_v19 }
 0x7ee   :  { %v2366_v30 = vmul.f32 %v3796_v36, %v2318_v10  ;;  %v2408_v26 = vadd.f32 %v5363_v5, %v2388_v49  ;;  %v2324_v17 = vsub.f32 %v5284_v24, %v5393_v7  ;;  %v2325_v62 = vsub.f32 %v5290_v23, %v5405_v39 }
 0x7ef   :  { %3801 = vrsqrt.f32 %v2339_v34  ;;  %v2309_v54 = vmax.f32 %v2293_v32, 0.0  ;;  %v2389_v21 = vmul.f32 %v5350_v61, %v2369_v53 }
 0x7f0   :  { %v3798_v48 = vpop.eup %3797  ;;  %3803 = vrsqrt.f32 %v2340_v57  ;;  %v2386_v1 = vmul.f32 %v5350_v61, %v2366_v30  ;;  %v2424_v27 = vmax.f32 %v2408_v26, 0.0  ;;  %v5452_v26 = vld [vmem:[#allocation7 + $0x5] ss:$0 sm:$0xff] }
 0x7f1   :  { %v2341_v28 = vadd.f32 1e-05, %v2309_v54  ;;  %v2367_v40 = vmul.f32 %v3798_v48, %v2319_v0  ;;  %v2409_v20 = vadd.f32 %v5363_v5, %v2389_v21 }
 0x7f2   :  { %v2406_v12 = vadd.f32 %v5363_v5, %v2386_v1 }
 0x7f3   :  { %3805 = vrsqrt.f32 %v2341_v28  ;;  %v2387_v50 = vmul.f32 %v5350_v61, %v2367_v40  ;;  %v2425_v47 = vmax.f32 %v2409_v20, 0.0 }
 0x7f4   :  { %v2422_v43 = vmax.f32 %v2406_v12, 0.0 }
 0x7f5   :  { %v2407_v6 = vadd.f32 %v5363_v5, %v2387_v50  ;;  %v2435_v55 = vpack.c.bf16 %v2425_v47, %v2424_v27 }
 0x7f7   :  { %v2423_v33 = vmax.f32 %v2407_v6, 0.0 }
 0x7f8   :  { %v3800_v63 = vpop.eup %3799 }
 0x7f9   :  { %v2434_v19 = vpack.c.bf16 %v2423_v33, %v2422_v43  ;;  %v2370_v51 = vmul.f32 %v3800_v63, %v2322_v13 }
 0x7fb   :  { %3554 = vmatprep.mubr.bf16.mxu1 %v2434_v19  ;;  %v2390_v35 = vmul.f32 %v5350_v61, %v2370_v51 }
 0x7fc   :  { %v3802_v52 = vpop.eup %3801  ;;  %3555 = vmatmul.mubr.bf16.gmra.mxu1 %v2435_v55 }
 0x7fd   :  { %v3804_v14 = vpop.eup %3803  ;;  %v2371_v31 = vmul.f32 %v3802_v52, %v2323_v59  ;;  %v2410_v44 = vadd.f32 %v5363_v5, %v2390_v35 }
 0x7fe   :  { %v2372_v16 = vmul.f32 %v3804_v14, %v2324_v17 }
 0x7ff   :  { %v2391_v10 = vmul.f32 %v5350_v61, %v2371_v31  ;;  %v2426_v57 = vmax.f32 %v2410_v44, 0.0 }
 0x800   :  { %v3806_v36 = vpop.eup %3805  ;;  %v2392_v56 = vmul.f32 %v5350_v61, %v2372_v16 }
 0x801   :  { %v2411_v8 = vadd.f32 %v5363_v5, %v2391_v10  ;;  %v2373_v34 = vmul.f32 %v3806_v36, %v2325_v62 }
 0x802   :  { %v2412_v7 = vadd.f32 %v5363_v5, %v2392_v56 }
 0x803   :  { %v2427_v32 = vmax.f32 %v2411_v8, 0.0  ;;  %v2393_v24 = vmul.f32 %v5350_v61, %v2373_v34 }
 0x804   :  { %v2428_v23 = vmax.f32 %v2412_v7, 0.0 }
 0x805   :  { %v2436_v53 = vpack.c.bf16 %v2427_v32, %v2426_v57  ;;  %v2413_v30 = vadd.f32 %v5363_v5, %v2393_v24 }
 0x807   :  { %3558 = vmatprep.mubr.bf16.mxu1 %v2436_v53  ;;  %v2429_v39 = vmax.f32 %v2413_v30, 0.0 }
 0x809   :  { %v2437_v0 = vpack.c.bf16 %v2429_v39, %v2428_v23  ;;  %v4018_v39 = vmov 0.0  }
 0x80a   :  { %3562 = vmatprep.subr.bf16.mxu0 %v4018_v39  ;;  %3578 = vmatprep.mubr.msk.bf16.mxu0 %vm4019_vm0, %v4018_v39 }
 0x80b   :  { %3559 = vmatmul.mubr.bf16.gmra.mxu1 %v2437_v0 }
 0x89c   :  { %v5444_v54 = vpop.f32.mrf.mxu1 }
 0x89d   :  { %v5526_v7 = vadd.f32 %v5444_v54, %v5452_v26 }
 0x89e   :  { %v5446_v21 = vpop.f32.mrf.mxu1 }
 0x89f   :  { %v2657_v23 = vmul.f32 %v5526_v7, %v5526_v7  ;;  %v5541_v0 = vadd.f32 %v5452_v26, %v5446_v21 }
 0x8a0   :  { %v5448_v48 = vpop.f32.mrf.mxu1 }
 0x8a1   :  { %v5533_v30 = vadd.f32 %v5448_v48, %v5452_v26 }
 0x8a2   :  { %v5450_v1 = vpop.f32.mrf.mxu1 }
 0x8a3   :  { %v2658_v54 = vmul.f32 %v5533_v30, %v5533_v30  ;;  %v5548_v48 = vadd.f32 %v5452_v26, %v5450_v1  ;;  %v2914_v1 = vld [vmem:[%s5775_s7 + $0x8] sm:$0x1] }
 0x8a5   :  { %v2656_v21 = vmul.f32 %v5548_v48, %v5548_v48 }
 0x8ac   :  { %v3552_v49 = vpop.f32.mrf.mxu1 }
 0x8ad   :  { %v5501_v44 = vadd.f32 %v3552_v49, %v5452_v26  ;;  %v2655_v49 = vmul.f32 %v5541_v0, %v5541_v0 }
 0x8ae   :  { %v2558_v61 = vpop.f32.mrf.mxu1 }
 0x8af   :  { %v2661_v8 = vmul.f32 %v5501_v44, %v5501_v44  ;;  %v5513_v34 = vadd.f32 %v5452_v26, %v2558_v61  ;;  %v2913_v61 = vld [vmem:[%s5775_s7] sm:$0xff] }
 0x8b0   :  { %v3553_v28 = vpop.f32.mrf.mxu1 }
 0x8b1   :  { %v5507_v56 = vadd.f32 %v3553_v28, %v5452_v26  ;;  %v2659_v24 = vmul.f32 %v5513_v34, %v5513_v34  ;;  %v4020_v28 = vmov 0  }
 0x8b2   :  { %v2561_v40 = vpop.f32.mrf.mxu1  ;;  %3596 = vset.pattern.permute.xlu0 %v4020_v28  ;;  %3597 = vset.pattern.permute.xlu1 %v4020_v28 }
 0x8b3   :  { %v2662_v57 = vmul.f32 %v5507_v56, %v5507_v56  ;;  %v5519_v32 = vadd.f32 %v5452_v26, %v2561_v40 }
 0x8b5   :  { %v2660_v53 = vmul.f32 %v5519_v32, %v5519_v32 }
 0x8bc   :  { %v3556_v20 = vpop.f32.mrf.mxu1 }
 0x8bd   :  { %v5477_v35 = vadd.f32 %v3556_v20, %v5452_v26 }
 0x8be   :  { %v2574_v50 = vpop.f32.mrf.mxu1 }
 0x8bf   :  { %v2665_v14 = vmul.f32 %v5477_v35, %v5477_v35  ;;  %v5489_v31 = vadd.f32 %v5452_v26, %v2574_v50 }
 0x8c0   :  { %v3557_v5 = vpop.f32.mrf.mxu1 }
 0x8c1   :  { %v5483_v17 = vadd.f32 %v3557_v5, %v5452_v26  ;;  %v2663_v10 = vmul.f32 %v5489_v31, %v5489_v31 }
 0x8c2   :  { %v2577_v12 = vpop.f32.mrf.mxu1 }
 0x8c3   :  { %v2666_v16 = vmul.f32 %v5483_v17, %v5483_v17  ;;  %v5495_v62 = vadd.f32 %v5452_v26, %v2577_v12 }
 0x8c5   :  { %v2664_v36 = vmul.f32 %v5495_v62, %v5495_v62 }
 0x8cb   :  { %v3560_v6 = vpop.f32.mrf.mxu1 }
 0x8cc   :  { %v5455_v47 = vadd.f32 %v3560_v6, %v5452_v26 }
 0x8cd   :  { %v2590_v13 = vpop.f32.mrf.mxu1 }
 0x8ce   :  { %2635 = vadd.xlane.f32.xlu0 %v5455_v47  ;;  %v2669_v63 = vmul.f32 %v5455_v47, %v5455_v47  ;;  %v5465_v27 = vadd.f32 %v5452_v26, %v2590_v13 }
 0x8cf   :  { %v3561_v43 = vpop.f32.mrf.mxu1 }
 0x8d0   :  { %v5459_v33 = vadd.f32 %v3561_v43, %v5452_v26  ;;  %v2667_v59 = vmul.f32 %v5465_v27, %v5465_v27 }
 0x8d1   :  { %v2593_v51 = vpop.f32.mrf.mxu1 }
 0x8d2   :  { %2699 = vadd.xlane.f32.xlu0 %v2669_v63  ;;  %2637 = vadd.xlane.f32.xlu1 %v5459_v33  ;;  %v2670_v19 = vmul.f32 %v5459_v33, %v5459_v33  ;;  %v5471_v55 = vadd.f32 %v5452_v26, %v2593_v51 }
 0x8d4   :  { %v2668_v52 = vmul.f32 %v5471_v55, %v5471_v55 }
 0x8d6   :  { %2701 = vadd.xlane.f32.xlu1 %v2670_v19  ;;  %2631 = vadd.xlane.f32.xlu0 %v5465_v27 }
 0x8da   :  { %2633 = vadd.xlane.f32.xlu1 %v5471_v55  ;;  %2695 = vadd.xlane.f32.xlu0 %v2667_v59 }
 0x8de   :  { %2697 = vadd.xlane.f32.xlu1 %v2668_v52  ;;  %2627 = vadd.xlane.f32.xlu0 %v5477_v35 }
 0x8e2   :  { %2629 = vadd.xlane.f32.xlu1 %v5483_v17  ;;  %2691 = vadd.xlane.f32.xlu0 %v2665_v14 }
 0x8e6   :  { %2693 = vadd.xlane.f32.xlu1 %v2666_v16  ;;  %2623 = vadd.xlane.f32.xlu0 %v5489_v31 }
 0x8ea   :  { %2625 = vadd.xlane.f32.xlu1 %v5495_v62  ;;  %2687 = vadd.xlane.f32.xlu0 %v2663_v10 }
 0x8ee   :  { %2689 = vadd.xlane.f32.xlu1 %v2664_v36  ;;  %2619 = vadd.xlane.f32.xlu0 %v5501_v44 }
 0x8f2   :  { %2621 = vadd.xlane.f32.xlu1 %v5507_v56  ;;  %2683 = vadd.xlane.f32.xlu0 %v2661_v8 }
 0x8f6   :  { %2685 = vadd.xlane.f32.xlu1 %v2662_v57  ;;  %2615 = vadd.xlane.f32.xlu0 %v5513_v34 }
 0x8fa   :  { %2617 = vadd.xlane.f32.xlu1 %v5519_v32  ;;  %2679 = vadd.xlane.f32.xlu0 %v2659_v24 }
 0x8fe   :  { %2681 = vadd.xlane.f32.xlu1 %v2660_v53  ;;  %2611 = vadd.xlane.f32.xlu0 %v5526_v7 }
 0x902   :  { %2613 = vadd.xlane.f32.xlu1 %v5533_v30  ;;  %2675 = vadd.xlane.f32.xlu0 %v2657_v23 }
 0x906   :  { %2677 = vadd.xlane.f32.xlu1 %v2658_v54  ;;  %2607 = vadd.xlane.f32.xlu0 %v5541_v0 }
 0x90a   :  { %2609 = vadd.xlane.f32.xlu1 %v5548_v48  ;;  %2671 = vadd.xlane.f32.xlu0 %v2655_v49 }
 0x90e   :  { %2673 = vadd.xlane.f32.xlu1 %v2656_v21 }
 0x91f   :  { %2922 = vperm.xlu1 %3597, %v2914_v1  }
 0x920   :  { %2917 = vperm.xlu0 %3596, %v2913_v61  }
 0x957   :  { %v2636_v40 = vpop.xlane.xlu0 %2635 }
 0x958   :  { %v2653_v20 = vmul.f32 0.03125, %v2636_v40 }
 0x95a   :  { %v2733_v12 = vmul.f32 %v2653_v20, %v2653_v20 }
 0x95b   :  { %v2700_v50 = vpop.xlane.xlu0 %2699  ;;  %v2638_v5 = vpop.xlane.xlu1 %2637 }
 0x95c   :  { %v2717_v26 = vmul.f32 0.03125, %v2700_v50  ;;  %v5562_v6 = vmul.f32 0.03125, %v2638_v5 }
 0x95e   :  { %v2749_v13 = vsub.f32 %v2717_v26, %v2733_v12  ;;  %v2734_v51 = vmul.f32 %v5562_v6, %v5562_v6 }
 0x95f   :  { %v2702_v43 = vpop.xlane.xlu1 %2701  ;;  %v2632_v63 = vpop.xlane.xlu0 %2631 }
 0x960   :  { %v2765_v19 = vmax.f32 %v2749_v13, 0.0  ;;  %v2718_v59 = vmul.f32 0.03125, %v2702_v43  ;;  %v5566_v52 = vmul.f32 0.03125, %v2632_v63 }
 0x962   :  { %v2797_v14 = vadd.f32 1e-05, %v2765_v19  ;;  %v2750_v16 = vsub.f32 %v2718_v59, %v2734_v51  ;;  %v2731_v10 = vmul.f32 %v5566_v52, %v5566_v52 }
 0x963   :  { %v2634_v36 = vpop.xlane.xlu1 %2633  ;;  %v2696_v8 = vpop.xlane.xlu0 %2695 }
 0x964   :  { %3807 = vrsqrt.f32 %v2797_v14  ;;  %v2766_v57 = vmax.f32 %v2750_v16, 0.0  ;;  %v5570_v24 = vmul.f32 0.03125, %v2634_v36  ;;  %v2715_v53 = vmul.f32 0.03125, %v2696_v8 }
 0x966   :  { %v2798_v23 = vadd.f32 1e-05, %v2766_v57  ;;  %v2747_v54 = vsub.f32 %v2715_v53, %v2731_v10  ;;  %v2732_v49 = vmul.f32 %v5570_v24, %v5570_v24 }
 0x967   :  { %v2698_v21 = vpop.xlane.xlu1 %2697  ;;  %v2628_v61 = vpop.xlane.xlu0 %2627 }
 0x968   :  { %3809 = vrsqrt.f32 %v2798_v23  ;;  %v2763_v1 = vmax.f32 %v2747_v54, 0.0  ;;  %v2716_v28 = vmul.f32 0.03125, %v2698_v21  ;;  %v5574_v40 = vmul.f32 0.03125, %v2628_v61  ;;  %v5588_v21 = vld [vmem:[%s5772_s4 + $0x5] ss:$0 sm:$0xff] }
 0x969   :  { %v2781_v23 = vsub.f32 %v5455_v47, %v2653_v20  ;;  %v2782_v20 = vsub.f32 %v5459_v33, %v5562_v6  ;;  %v2779_v33 = vsub.f32 %v5465_v27, %v5566_v52 }
 0x96a   :  { %v2795_v50 = vadd.f32 1e-05, %v2763_v1  ;;  %v2748_v5 = vsub.f32 %v2716_v28, %v2732_v49  ;;  %v2729_v12 = vmul.f32 %v5574_v40, %v5574_v40 }
 0x96b   :  { %v2630_v26 = vpop.xlane.xlu1 %2629  ;;  %v2692_v13 = vpop.xlane.xlu0 %2691 }
 0x96c   :  { %3811 = vrsqrt.f32 %v2795_v50  ;;  %v2764_v43 = vmax.f32 %v2748_v5, 0.0  ;;  %v5578_v63 = vmul.f32 0.03125, %v2630_v26  ;;  %v2713_v19 = vmul.f32 0.03125, %v2692_v13  ;;  %v5594_v13 = vld [vmem:[#allocation8 + $0x5] ss:$0 sm:$0xff] }
 0x96e   :  { %v2796_v51 = vadd.f32 1e-05, %v2764_v43  ;;  %v2745_v59 = vsub.f32 %v2713_v19, %v2729_v12  ;;  %v2730_v14 = vmul.f32 %v5578_v63, %v5578_v63 }
 0x96f   :  { %v2694_v16 = vpop.xlane.xlu1 %2693  ;;  %v2624_v10 = vpop.xlane.xlu0 %2623 }
 0x970   :  { %3813 = vrsqrt.f32 %v2796_v51  ;;  %v2761_v36 = vmax.f32 %v2745_v59, 0.0  ;;  %v2714_v8 = vmul.f32 0.03125, %v2694_v16  ;;  %v5582_v57 = vmul.f32 0.03125, %v2624_v10 }
 0x971   :  { %v3808_v53 = vpop.eup %3807 }
 0x972   :  { %v2793_v54 = vadd.f32 1e-05, %v2761_v36  ;;  %v2746_v49 = vsub.f32 %v2714_v8, %v2730_v14  ;;  %v2727_v61 = vmul.f32 %v5582_v57, %v5582_v57  ;;  %v2829_v50 = vmul.f32 %v3808_v53, %v2781_v23 }
 0x973   :  { %v2626_v1 = vpop.xlane.xlu1 %2625  ;;  %v2688_v28 = vpop.xlane.xlu0 %2687 }
 0x974   :  { %3815 = vrsqrt.f32 %v2793_v54  ;;  %v2762_v5 = vmax.f32 %v2746_v49, 0.0  ;;  %v5592_v12 = vmul.f32 0.03125, %v2626_v1  ;;  %v2711_v26 = vmul.f32 0.03125, %v2688_v28 }
 0x975   :  { %v3810_v47 = vpop.eup %3809  ;;  %v2849_v43 = vmul.f32 %v5588_v21, %v2829_v50 }
 0x976   :  { %v2794_v19 = vadd.f32 1e-05, %v2762_v5  ;;  %v2743_v51 = vsub.f32 %v2711_v26, %v2727_v61  ;;  %v2728_v59 = vmul.f32 %v5592_v12, %v5592_v12  ;;  %v2830_v10 = vmul.f32 %v3810_v47, %v2782_v20 }
 0x977   :  { %v2690_v14 = vpop.xlane.xlu1 %2689  ;;  %v2620_v16 = vpop.xlane.xlu0 %2619  ;;  %v2869_v36 = vadd.f32 %v5594_v13, %v2849_v43 }
 0x978   :  { %3817 = vrsqrt.f32 %v2794_v19  ;;  %v2759_v8 = vmax.f32 %v2743_v51, 0.0  ;;  %v2712_v53 = vmul.f32 0.03125, %v2690_v14  ;;  %v5602_v23 = vmul.f32 0.03125, %v2620_v16 }
 0x979   :  { %v3812_v54 = vpop.eup %3811  ;;  %v2850_v6 = vmul.f32 %v5588_v21, %v2830_v10  ;;  %v2885_v1 = vadd.f32 %v2869_v36, %v1971_v58  ;;  %v2780_v19 = vsub.f32 %v5471_v55, %v5570_v24 }
 0x97a   :  { %v2791_v49 = vadd.f32 1e-05, %v2759_v8  ;;  %v2744_v61 = vsub.f32 %v2712_v53, %v2728_v59  ;;  %v2725_v28 = vmul.f32 %v5602_v23, %v5602_v23  ;;  %v2827_v47 = vmul.f32 %v3812_v54, %v2779_v33 }
 0x97b   :  { %v2622_v50 = vpop.xlane.xlu1 %2621  ;;  %v2684_v5 = vpop.xlane.xlu0 %2683  ;;  %v2870_v26 = vadd.f32 %v5594_v13, %v2850_v6  ;;  %v2901_v14 = vmax.f32 %v2885_v1, 0.0 }
 0x97c   :  { %3819 = vrsqrt.f32 %v2791_v49  ;;  %v2760_v20 = vmax.f32 %v2744_v61, 0.0  ;;  %v5612_v43 = vmul.f32 0.03125, %v2622_v50  ;;  %v2709_v27 = vmul.f32 0.03125, %v2684_v5 }
 0x97d   :  { %v3814_v52 = vpop.eup %3813  ;;  %v2886_v11 = vadd.f32 %v2870_v26, %v1972_v60  ;;  %v2847_v58 = vmul.f32 %v5588_v21, %v2827_v47  ;;  %v2777_v60 = vsub.f32 %v5477_v35, %v5574_v40 }
 0x97e   :  { %v2792_v51 = vadd.f32 1e-05, %v2760_v20  ;;  %v2741_v59 = vsub.f32 %v2709_v27, %v2725_v28  ;;  %v2726_v16 = vmul.f32 %v5612_v43, %v5612_v43  ;;  %v2828_v53 = vmul.f32 %v3814_v52, %v2780_v19 }
 0x97f   :  { %v2686_v10 = vpop.xlane.xlu1 %2685  ;;  %v2616_v36 = vpop.xlane.xlu0 %2615  ;;  %v2902_v8 = vmax.f32 %v2886_v11, 0.0  ;;  %v2867_v54 = vadd.f32 %v5594_v13, %v2847_v58  ;;  %v5820_v28 = vmax.f32 %v5182_v4, 0.0  ;;  %v2778_v4 = vsub.f32 %v5483_v17, %v5578_v63 }
 0x980   :  { %3821 = vrsqrt.f32 %v2792_v51  ;;  %v2757_v33 = vmax.f32 %v2741_v59, 0.0  ;;  %v2710_v55 = vmul.f32 0.03125, %v2686_v10  ;;  %v5622_v24 = vmul.f32 0.03125, %v2616_v36 }
 0x981   :  { %v3816_v3 = vpop.eup %3815  ;;  %v2912_v6 = vpack.c.bf16 %v2902_v8, %v2901_v14  ;;  %v2848_v49 = vmul.f32 %v5588_v21, %v2828_v53  ;;  %v2883_v50 = vadd.f32 %v2867_v54, %v5820_v28  ;;  %v5821_v11 = vmax.f32 %v5187_v37, 0.0 }
 0x982   :  { %v2789_v61 = vadd.f32 1e-05, %v2757_v33  ;;  %v2742_v1 = vsub.f32 %v2710_v55, %v2726_v16  ;;  %v2723_v5 = vmul.f32 %v5622_v24, %v5622_v24  ;;  %v2825_v27 = vmul.f32 %v3816_v3, %v2777_v60 }
 0x983   :  { %3563 = vmatpush3.bf16.xpose.msra.mxu0 %v2912_v6  ;;  %v2618_v26 = vpop.xlane.xlu1 %2617  ;;  %v2680_v47 = vpop.xlane.xlu0 %2679  ;;  %v2868_v20 = vadd.f32 %v5594_v13, %v2848_v49  ;;  %v2899_v16 = vmax.f32 %v2883_v50, 0.0  ;;  %v2775_v3 = vsub.f32 %v5489_v31, %v5582_v57 }
 0x984   :  { %3823 = vrsqrt.f32 %v2789_v61  ;;  %v2758_v52 = vmax.f32 %v2742_v1, 0.0  ;;  %v5632_v35 = vmul.f32 0.03125, %v2618_v26  ;;  %v2707_v40 = vmul.f32 0.03125, %v2680_v47  ;;  %3564 = vmatprep.subr.bf16.mxu0 %v4018_v39 }
 0x985   :  { %v3818_v19 = vpop.eup %3817  ;;  %v2884_v58 = vadd.f32 %v2868_v20, %v5821_v11  ;;  %v2845_v51 = vmul.f32 %v5588_v21, %v2825_v27  ;;  %v5822_v1 = vmax.f32 %v5149_v46, 0.0  ;;  %v2776_v46 = vsub.f32 %v5495_v62, %v5592_v12 }
 0x986   :  { %v2790_v59 = vadd.f32 1e-05, %v2758_v52  ;;  %v2739_v14 = vsub.f32 %v2707_v40, %v2723_v5  ;;  %v2724_v10 = vmul.f32 %v5632_v35, %v5632_v35  ;;  %v2826_v54 = vmul.f32 %v3818_v19, %v2778_v4 }
 0x987   :  { %v2682_v36 = vpop.xlane.xlu1 %2681  ;;  %v2612_v8 = vpop.xlane.xlu0 %2611  ;;  %v2900_v53 = vmax.f32 %v2884_v58, 0.0  ;;  %v2865_v33 = vadd.f32 %v5594_v13, %v2845_v51  ;;  %v5823_v40 = vmax.f32 %v5140_v2, 0.0 }
 0x988   :  { %3825 = vrsqrt.f32 %v2790_v59  ;;  %v2755_v55 = vmax.f32 %v2739_v14, 0.0  ;;  %v2708_v17 = vmul.f32 0.03125, %v2682_v36  ;;  %v5643_v63 = vmul.f32 0.03125, %v2612_v8 }
 0x989   :  { %v3820_v37 = vpop.eup %3819  ;;  %v2911_v60 = vpack.c.bf16 %v2900_v53, %v2899_v16  ;;  %v2846_v6 = vmul.f32 %v5588_v21, %v2826_v54  ;;  %v2881_v28 = vadd.f32 %v2865_v33, %v5822_v1  ;;  %v2773_v54 = vsub.f32 %v5501_v44, %v5602_v23 }
 0x98a   :  { %v2787_v49 = vadd.f32 1e-05, %v2755_v55  ;;  %v2740_v61 = vsub.f32 %v2708_v17, %v2724_v10  ;;  %v2721_v50 = vmul.f32 %v5643_v63, %v5643_v63  ;;  %v2823_v20 = vmul.f32 %v3820_v37, %v2775_v3 }
 0x98b   :  { %3565 = vmatpush3.bf16.xpose.msra.mxu0 %v2911_v60  ;;  %v2614_v5 = vpop.xlane.xlu1 %2613  ;;  %v2676_v26 = vpop.xlane.xlu0 %2675  ;;  %v2866_v47 = vadd.f32 %v5594_v13, %v2846_v6  ;;  %v2897_v51 = vmax.f32 %v2881_v28, 0.0 }
 0x98c   :  { %3827 = vrsqrt.f32 %v2787_v49  ;;  %v2756_v27 = vmax.f32 %v2740_v61, 0.0  ;;  %v5653_v31 = vmul.f32 0.03125, %v2614_v5  ;;  %v2705_v57 = vmul.f32 0.03125, %v2676_v26  ;;  %3566 = vmatprep.subr.bf16.mxu0 %v4018_v39 }
 0x98d   :  { %v3822_v52 = vpop.eup %3821  ;;  %v2882_v19 = vadd.f32 %v2866_v47, %v5823_v40  ;;  %v2843_v4 = vmul.f32 %v5588_v21, %v2823_v20  ;;  %v5824_v61 = vmax.f32 %v5145_v25, 0.0  ;;  %v2774_v26 = vsub.f32 %v5507_v56, %v5612_v43 }
 0x98e   :  { %v2788_v11 = vadd.f32 1e-05, %v2756_v27  ;;  %v2737_v58 = vsub.f32 %v2705_v57, %v2721_v50  ;;  %v2722_v59 = vmul.f32 %v5653_v31, %v5653_v31  ;;  %v2824_v36 = vmul.f32 %v3822_v52, %v2776_v46 }
 0x98f   :  { %v2678_v14 = vpop.xlane.xlu1 %2677  ;;  %v2608_v16 = vpop.xlane.xlu0 %2607  ;;  %v2898_v10 = vmax.f32 %v2882_v19, 0.0  ;;  %v2863_v8 = vadd.f32 %v5594_v13, %v2843_v4  ;;  %v5825_v47 = vmax.f32 %v5155_v18, 0.0  ;;  %v2771_v25 = vsub.f32 %v5513_v34, %v5622_v24 }
 0x990   :  { %3829 = vrsqrt.f32 %v2788_v11  ;;  %v2753_v53 = vmax.f32 %v2737_v58, 0.0  ;;  %v2706_v62 = vmul.f32 0.03125, %v2678_v14  ;;  %v5664_v12 = vmul.f32 0.03125, %v2608_v16 }
 0x991   :  { %v3824_v2 = vpop.eup %3823  ;;  %v2910_v33 = vpack.c.bf16 %v2898_v10, %v2897_v51  ;;  %v2844_v55 = vmul.f32 %v5588_v21, %v2824_v36  ;;  %v2879_v1 = vadd.f32 %v2863_v8, %v5824_v61  ;;  %v5826_v10 = vmax.f32 %v5101_v15, 0.0 }
 0x992   :  { %v2785_v17 = vadd.f32 1e-05, %v2753_v53  ;;  %v2738_v37 = vsub.f32 %v2706_v62, %v2722_v59  ;;  %v2719_v3 = vmul.f32 %v5664_v12, %v5664_v12  ;;  %v2821_v28 = vmul.f32 %v3824_v2, %v2773_v54 }
 0x993   :  { %3567 = vmatpush3.bf16.xpose.msra.mxu0 %v2910_v33  ;;  %v2610_v60 = vpop.xlane.xlu1 %2609  ;;  %v2672_v6 = vpop.xlane.xlu0 %2671  ;;  %v2864_v49 = vadd.f32 %v5594_v13, %v2844_v55  ;;  %v2895_v40 = vmax.f32 %v2879_v1, 0.0  ;;  %v2772_v8 = vsub.f32 %v5519_v32, %v5632_v35  ;;  %v5827_v54 = vmax.f32 %v5088_v38, 0.0 }
 0x994   :  { %3831 = vrsqrt.f32 %v2785_v17  ;;  %v2754_v50 = vmax.f32 %v2738_v37, 0.0  ;;  %v5674_v44 = vmul.f32 0.03125, %v2610_v60  ;;  %v2703_v23 = vmul.f32 0.03125, %v2672_v6  ;;  %3568 = vmatprep.subr.bf16.mxu0 %v4018_v39 }
 0x995   :  { %v3826_v5 = vpop.eup %3825  ;;  %v2880_v20 = vadd.f32 %v2864_v49, %v5825_v47  ;;  %v2841_v27 = vmul.f32 %v5588_v21, %v2821_v28  ;;  %v2769_v60 = vsub.f32 %v5526_v7, %v5643_v63  ;;  %v5828_v61 = vmax.f32 %v5097_v45, 0.0 }
 0x996   :  { %v2786_v57 = vadd.f32 1e-05, %v2754_v50  ;;  %v2735_v52 = vsub.f32 %v2703_v23, %v2719_v3  ;;  %v2822_v4 = vmul.f32 %v3826_v5, %v2774_v26  ;;  %v2720_v56 = vmul.f32 %v5674_v44, %v5674_v44 }
 0x997   :  { %v2674_v46 = vpop.xlane.xlu1 %2673  ;;  %v2896_v19 = vmax.f32 %v2880_v20, 0.0  ;;  %v2861_v11 = vadd.f32 %v5594_v13, %v2841_v27  ;;  %v2770_v28 = vsub.f32 %v5533_v30, %v5653_v31  ;;  %v5829_v50 = vmax.f32 %v5111_v42, 0.0 }
 0x998   :  { %3833 = vrsqrt.f32 %v2786_v57  ;;  %v2751_v43 = vmax.f32 %v2735_v52, 0.0  ;;  %v2704_v18 = vmul.f32 0.03125, %v2674_v46  ;;  %v2842_v59 = vmul.f32 %v5588_v21, %v2822_v4 }
 0x999   :  { %v3828_v58 = vpop.eup %3827  ;;  %v2909_v51 = vpack.c.bf16 %v2896_v19, %v2895_v40  ;;  %v2877_v36 = vadd.f32 %v2861_v11, %v5826_v10  ;;  %v2767_v45 = vsub.f32 %v5541_v0, %v5664_v12  ;;  %v5830_v42 = vmax.f32 %v5032_v41, 0.0 }
 0x99a   :  { %v2783_v14 = vadd.f32 1e-05, %v2751_v43  ;;  %v2736_v34 = vsub.f32 %v2704_v18, %v2720_v56  ;;  %v2819_v24 = vmul.f32 %v3828_v58, %v2771_v25  ;;  %v2862_v16 = vadd.f32 %v5594_v13, %v2842_v59 }
 0x99b   :  { %3569 = vmatpush3.bf16.xpose.msra.mxu0 %v2909_v51  ;;  %v2893_v3 = vmax.f32 %v2877_v36, 0.0  ;;  %v2768_v46 = vsub.f32 %v5548_v48, %v5674_v44  ;;  %v5831_v40 = vmax.f32 %v5028_v22, 0.0  ;;  %v5832_v48 = vmax.f32 %v5041_v9, 0.0 }
 0x99c   :  { %3835 = vrsqrt.f32 %v2783_v14  ;;  %v2752_v53 = vmax.f32 %v2736_v34, 0.0  ;;  %3570 = vmatprep.subr.bf16.mxu0 %v4018_v39  ;;  %v2839_v62 = vmul.f32 %v5588_v21, %v2819_v24  ;;  %v2878_v33 = vadd.f32 %v2862_v16, %v5827_v54  ;;  %v3646_v24 = vld [vmem:[#allocation10] sm:$0x1f]  }
 0x99d   :  { %v3830_v2 = vpop.eup %3829  ;;  %v5833_v22 = vmax.f32 %v5051_v29, 0.0  ;;  %v2974_v16 = vlaneseq }
 0x99e   :  { %v2784_v55 = vadd.f32 1e-05, %v2752_v53  ;;  %v2820_v17 = vmul.f32 %v3830_v2, %v2772_v8  ;;  %v2859_v37 = vadd.f32 %v5594_v13, %v2839_v62  ;;  %v2894_v15 = vmax.f32 %v2878_v33, 0.0  ;;  %v2923_v33 = vpop.permute.xlu1 %2922 }
 0x99f   :  { %v2975_v10 = vshrl.u32 %v2974_v16, 7 }
 0x9a0   :  { %3837 = vrsqrt.f32 %v2784_v55  ;;  %v2840_v32 = vmul.f32 %v5588_v21, %v2820_v17  ;;  %v2908_v6 = vpack.c.bf16 %v2894_v15, %v2893_v3  ;;  %v2875_v38 = vadd.f32 %v2859_v37, %v5828_v61  ;;  %v2972_v55 = vld [vmem:[%s5769_s1] sm:$0xff]  ;;  %v2973_v17 = vld [vmem:[%s5769_s1 + $0x8] sm:$0xf]  ;;  %s4021_s1 = smov [#allocation11]  }
 0x9a1   :  { %v3832_v35 = vpop.eup %3831  ;;  %v2976_v36 = vsub.s32 0, %v2975_v10  ;;  %v3026_v8 = vsub.s32 5, %v2975_v10  ;;  %v2994_v9 = vsub.s32 2, %v2975_v10  ;;  %v3008_v62 = vsub.s32 3, %v2975_v10  ;;  %s3168_s30 = sshll.u32 %s4021_s1, 4  ;;  %s3169_s30 = int_to_ptr.vmem [resolvable:$true] %s3168_s30 }
 0x9a2   :  { %v2860_v49 = vadd.f32 %v5594_v13, %v2840_v32  ;;  %v2817_v1 = vmul.f32 %v3832_v35, %v2769_v60  ;;  %v2891_v5 = vmax.f32 %v2875_v38, 0.0  ;;  %v3017_v2 = vsub.s32 4, %v2975_v10  ;;  %s3959_s10 = scalar_lea.vmem %s3169_s30, 256  ;;  %p3964_p12 = scmp.lt.s32.totalorder %s3169_s30, %s3169_s30 }
 0x9a3   :  { %3571 = vmatpush3.bf16.xpose.msra.mxu0 %v2908_v6  ;;  %v3048_v37 = vsub.s32 7, %v2975_v10  ;;  %p3960_p11 = scmp.ne.s32.totalorder %s3169_s30, %s3959_s10  ;;  %p3965_p13 = scmp.lt.s32.totalorder %s3959_s10, %s3959_s10 }
 0x9a4   :  { %3572 = vmatprep.subr.bf16.mxu0 %v4018_v39  ;;  %v2876_v7 = vadd.f32 %v2860_v49, %v5829_v50  ;;  %v2837_v63 = vmul.f32 %v5588_v21, %v2817_v1 }
 0x9a5   :  { %v3834_v23 = vpop.eup %3833  ;;  %p3966_p0 = por %p3965_p13, %p3964_p12 }
 0x9a6   :  { %v2892_v26 = vmax.f32 %v2876_v7, 0.0  ;;  %v2818_v47 = vmul.f32 %v3834_v23, %v2770_v28  ;;  %v2857_v20 = vadd.f32 %v5594_v13, %v2837_v63 }
 0x9a7   :  { %p3967_p1 = pnand %p3966_p0, %p3960_p11 }
 0x9a8   :  { %v2907_v27 = vpack.c.bf16 %v2892_v26, %v2891_v5  ;;  %v2838_v25 = vmul.f32 %v5588_v21, %v2818_v47  ;;  %v2873_v57 = vadd.f32 %v2857_v20, %v5830_v42 }
 0x9a9   :  { %v3836_v30 = vpop.eup %3835 }
 0x9aa   :  { %v2858_v31 = vadd.f32 %v5594_v13, %v2838_v25  ;;  %v2815_v52 = vmul.f32 %v3836_v30, %v2767_v45  ;;  %v2889_v4 = vmax.f32 %v2873_v57, 0.0 }
 0x9ab   :  { %3573 = vmatpush3.bf16.xpose.msra.mxu0 %v2907_v27 }
 0x9ac   :  { %3574 = vmatprep.subr.bf16.mxu0 %v4018_v39  ;;  %v2874_v19 = vadd.f32 %v2858_v31, %v5831_v40  ;;  %v2835_v0 = vmul.f32 %v5588_v21, %v2815_v52 }
 0x9ad   :  { %v3838_v12 = vpop.eup %3837 }
 0x9ae   :  { %v2890_v11 = vmax.f32 %v2874_v19, 0.0  ;;  %v2816_v56 = vmul.f32 %v3838_v12, %v2768_v46  ;;  %v2855_v43 = vadd.f32 %v5594_v13, %v2835_v0 }
 0x9b0   :  { %v2906_v41 = vpack.c.bf16 %v2890_v11, %v2889_v4  ;;  %v2836_v18 = vmul.f32 %v5588_v21, %v2816_v56  ;;  %v2871_v44 = vadd.f32 %v2855_v43, %v5832_v48  ;;  %v2918_v21 = vpop.permute.xlu0 %2917 }
 0x9b2   :  { %v2856_v58 = vadd.f32 %v5594_v13, %v2836_v18  ;;  %v2887_v59 = vmax.f32 %v2871_v44, 0.0  ;;  %v2985_v13 = vsub.s32 1, %v2975_v10 }
 0x9b3   :  { %3575 = vmatpush3.bf16.xpose.msra.mxu0 %v2906_v41 }
 0x9b4   :  { %3576 = vmatprep.subr.bf16.mxu0 %v4018_v39  ;;  %v2872_v51 = vadd.f32 %v2856_v58, %v5833_v22  ;;  %v3039_v39 = vsub.s32 6, %v2975_v10 }
 0x9b6   :  { %v2888_v14 = vmax.f32 %v2872_v51, 0.0 }
 0x9b8   :  { %v2905_v34 = vpack.c.bf16 %v2888_v14, %v2887_v59 }
 0x9bb   :  { %3577 = vmatpush3.bf16.xpose.msra.mxu0 %v2905_v34 }
 0x9c2   :  { %3579 = vmatmul.mubr.bf16.vlgmr.msra.gmra.mxu0 %v3646_v24 }
 0xa82   :  { %v2965_v53 = vpop.f32.mrf.mxu0 }
 0xa83   :  { %v2966_v54 = vadd.f32 %v2965_v53, %v2918_v21 }
 0xa84   :  { %v3580_v29 = vpop.f32.mrf.mxu0 }
 0xa85   :  { %v2977_v3 = vrot.slane %v2966_v54, %v2976_v36  ;;  %v2986_v15 = vrot.slane %v2966_v54, %v2985_v13  ;;  %v3027_v60 = vrot.slane %v2966_v54, %v3026_v8  ;;  %v2995_v32 = vrot.slane %v2966_v54, %v2994_v9 }
 0xa86   :  { %v2968_v35 = vpop.f32.mrf.mxu0  ;;  %v3009_v6 = vrot.slane %v2966_v54, %v3008_v62  ;;  %v3018_v49 = vrot.slane %v2966_v54, %v3017_v2  ;;  %v3040_v61 = vrot.slane %v2966_v54, %v3039_v39  ;;  %v3049_v27 = vrot.slane %v2966_v54, %v3048_v37 }
 0xa87   :  { %v2969_v38 = vadd.f32 %v2968_v35, %v2923_v33  ;;  %v2978_v1 = vmul.f32 %v2977_v3, %v2972_v55  ;;  %v2987_v28 = vmul.f32 %v2986_v15, %v2972_v55  ;;  %v3029_v50 = vmul.f32 %v3027_v60, %v2973_v17 }
 0xa88   :  { %v3581_v7 = vpop.f32.mrf.mxu0  ;;  %v2996_v63 = vmul.f32 %v2995_v32, %v2972_v55  ;;  %v2997_v23 = vmul.f32 %v2995_v32, %v2973_v17  ;;  %v3010_v5 = vmul.f32 %v3009_v6, %v2972_v55  ;;  %v3019_v26 = vmul.f32 %v3018_v49, %v2972_v55 }
 0xa89   :  { %v2980_v47 = vrot.slane %v2978_v1, 7  ;;  %v3058_v20 = vrot.slane %v2969_v38, %v2976_v36  ;;  %v3028_v45 = vmul.f32 %v3027_v60, %v2972_v55  ;;  %v2989_v25 = vrot.slane %v2987_v28, 2 }
 0xa8a   :  { %v3001_v30 = vrot.slane %v2996_v63, 5  ;;  %v3002_v31 = vrot.slane %v2997_v23, 5  ;;  %v3012_v42 = vrot.slane %v3010_v5, 7  ;;  %v3021_v0 = vrot.slane %v3019_v26, 2 }
 0xa8b   :  { %v2982_v57 = vadd.f32 %v2980_v47, %v2973_v17  ;;  %v3059_v52 = vmul.f32 %v3058_v20, %v2972_v55  ;;  %v3060_v46 = vmul.f32 %v3058_v20, %v2973_v17  ;;  %v3032_v40 = vrot.slane %v3028_v45, 5 }
 0xa8c   :  { %v3014_v19 = vadd.f32 %v3012_v42, %v2973_v17  ;;  %v3033_v12 = vrot.slane %v3029_v50, 5  ;;  %v3041_v4 = vmul.f32 %v3040_v61, %v2972_v55  ;;  %v3050_v41 = vmul.f32 %v3049_v27, %v2972_v55 }
 0xa8d   :  { %v2991_v11 = vadd.f32 %v2989_v25, %v2982_v57  ;;  %v3063_v56 = vrot.slane %v3059_v52, 5  ;;  %v3064_v43 = vrot.slane %v3060_v46, 5  ;;  %v3003_v18 = vsel %vm3000_vm1, %v3001_v30, %v3002_v31 }
 0xa8e   :  { %v3023_v58 = vadd.f32 %v3021_v0, %v3014_v19  ;;  %v3043_v48 = vrot.slane %v3041_v4, 7  ;;  %v3034_v22 = vsel %vm3000_vm1, %v3032_v40, %v3033_v12  ;;  %v3052_v14 = vrot.slane %v3050_v41, 2 }
 0xa8f   :  { %v3005_v44 = vadd.f32 %v3003_v18, %v2991_v11  ;;  %v3065_v34 = vsel %vm3000_vm1, %v3063_v56, %v3064_v43 }
 0xa90   :  { %v5739_v51 = vadd.f32 %v3034_v22, %v3023_v58  ;;  %v3045_v59 = vadd.f32 %v3043_v48, %v2973_v17 }
 0xa91   :  { %v3069_v24 = vrot.slane %v3005_v44, 1 }
 0xa92   :  { %v3054_v16 = vadd.f32 %v3052_v14, %v3045_v59  ;;  %v3072_v10 = vrot.slane %v5739_v51, 6 }
 0xa94   :  { %v3067_v21 = vadd.f32 %v3065_v34, %v3054_v16  ;;  %v3077_v36 = vsel %vm3000_vm1, %v3069_v24, %v3072_v10 }
 0xa96   :  { %v3075_v13 = vrot.slane %v3067_v21, 3  ;;  %v3082_v8 = vsub.f32 %v5739_v51, %v3067_v21 }
 0xa98   :  { %v3079_v9 = vsel %vm3078_vm2, %v3077_v36, %v3075_v13  ;;  %3081 = vst [vmem:[#allocation11 + $0x8] sm:$0x1] %v3075_v13  ;;  %v3084_v53 = vmul.f32 %v3082_v8, %v3082_v8 }
 0xa99   :  { %3080 = vst [vmem:[#allocation11] sm:$0xff] %v3079_v9 }
 0xa9a   :  { %v3086_v62 = vrot.slane %v3084_v53, 1 }
 0xa9b   :  { %3970 = shalt.err (!%p3967_p1)
}
 0xa9c   :  { %3174 = dma.vmem_to_hbm [thread:$0]  %s3169_s30, 256, %s5776_s8, [#allocation4], %s4014_s2, %s4014_s2, %s4015_s24   ;;  %v3088_v2 = vsel %vm3000_vm1, %v3086_v62, 0.0  ;;  %v3083_v15 = vsub.f32 %v3005_v44, %v5739_v51  ;;  %vm3130_vm3 = vcmask 1041408   ;;  %vm3135_vm4 = vcmask 1040384  }
 0xa9d   :  { %v3089_v39 = vrot.slane %v3088_v2, 4  ;;  %s4022_s8 = smov [#allocation12]  }
 0xa9e   :  { %s3180_s0 = sshll.u32 %s4022_s8, 4  ;;  %s3181_s0 = int_to_ptr.vmem [resolvable:$true] %s3180_s0 }
 0xa9f   :  { %v3090_v54 = vadd.f32 %v3089_v39, %v3088_v2  ;;  %s3979_s15 = scalar_lea.vmem %s3181_s0, 256  ;;  %p3984_p3 = scmp.lt.s32.totalorder %s3181_s0, %s3181_s0 }
 0xaa0   :  { %p3980_p2 = scmp.ne.s32.totalorder %s3181_s0, %s3979_s15  ;;  %p3985_p4 = scmp.lt.s32.totalorder %s3979_s15, %s3979_s15 }
 0xaa1   :  { %v3091_v29 = vrot.slane %v3090_v54, 2 }
 0xaa2   :  { %p3986_p5 = por %p3985_p4, %p3984_p3 }
 0xaa3   :  { %v3092_v33 = vadd.f32 %v3091_v29, %v3090_v54 }
 0xaa4   :  { %p3987_p6 = pnand %p3986_p5, %p3980_p2 }
 0xaa5   :  { %v3093_v55 = vrot.slane %v3092_v33, 1 }
 0xaa7   :  { %v3094_v17 = vadd.f32 %v3093_v55, %v3092_v33 }
 0xaa9   :  { %v3095_v37 = vadd.f32 1e-10, %v3094_v17 }
 0xaab   :  { %3839 = vrsqrt.f32 %v3095_v37 }
 0xab8   :  { %v3840_v3 = vpop.eup %3839 }
 0xab9   :  { %v3097_v60 = vmul.f32 %v3840_v3, %v3082_v8 }
 0xabb   :  { %v3098_v32 = vmul.f32 %v3097_v60, %v3083_v15  ;;  %v3126_v52 = vrot.slane %v3097_v60, 2  ;;  %v3128_v46 = vrot.slane %v3097_v60, 7  ;;  %v3138_v40 = vrot.slane %v3097_v60, 3 }
 0xabc   :  { %v3148_v58 = vsub.f32 0.0, %v3097_v60 }
 0xabd   :  { %v3100_v35 = vrot.slane %v3098_v32, 1  ;;  %v3131_v4 = vsel %vm3130_vm3, %v3126_v52, %v3128_v46  ;;  %v3140_v56 = vsel %vm3135_vm4, %v3138_v40, %v3097_v60 }
 0xabe   :  { %v3151_v59 = vrot.slane %v3148_v58, 1 }
 0xabf   :  { %v3102_v6 = vsel %vm3000_vm1, %v3100_v35, 0.0 }
 0xac0   :  { %v3103_v49 = vrot.slane %v3102_v6, 4 }
 0xac2   :  { %v3104_v61 = vadd.f32 %v3103_v49, %v3102_v6 }
 0xac4   :  { %v3105_v38 = vrot.slane %v3104_v61, 2 }
 0xac6   :  { %v3106_v1 = vadd.f32 %v3105_v38, %v3104_v61 }
 0xac8   :  { %v3107_v28 = vrot.slane %v3106_v1, 1 }
 0xaca   :  { %v3108_v50 = vadd.f32 %v3107_v28, %v3106_v1 }
 0xacc   :  { %v3109_v7 = vmul.f32 %v3108_v50, %v3097_v60 }
 0xace   :  { %v3110_v63 = vsub.f32 %v3083_v15, %v3109_v7 }
 0xad0   :  { %v3111_v23 = vmul.f32 %v3110_v63, %v3110_v63 }
 0xad2   :  { %v3113_v5 = vrot.slane %v3111_v23, 1 }
 0xad4   :  { %v3115_v26 = vsel %vm3000_vm1, %v3113_v5, 0.0 }
 0xad5   :  { %v3116_v47 = vrot.slane %v3115_v26, 4 }
 0xad7   :  { %v3117_v20 = vadd.f32 %v3116_v47, %v3115_v26 }
 0xad9   :  { %v3118_v45 = vrot.slane %v3117_v20, 2 }
 0xadb   :  { %v3119_v27 = vadd.f32 %v3118_v45, %v3117_v20 }
 0xadd   :  { %v3120_v25 = vrot.slane %v3119_v27, 1 }
 0xadf   :  { %v3121_v30 = vadd.f32 %v3120_v25, %v3119_v27 }
 0xae1   :  { %v3122_v31 = vadd.f32 1e-10, %v3121_v30 }
 0xae3   :  { %3841 = vrsqrt.f32 %v3122_v31 }
 0xaf0   :  { %v3842_v42 = vpop.eup %3841 }
 0xaf1   :  { %v3124_v57 = vmul.f32 %v3842_v42, %v3110_v63 }
 0xaf3   :  { %v3133_v19 = vrot.slane %v3124_v57, 3  ;;  %v3141_v0 = vrot.slane %v3124_v57, 2  ;;  %v3143_v12 = vrot.slane %v3124_v57, 7  ;;  %v3153_v44 = vrot.slane %v3124_v57, 6 }
 0xaf5   :  { %v3136_v11 = vsel %vm3135_vm4, %v3133_v19, %v3124_v57  ;;  %v3145_v43 = vsel %vm3130_vm3, %v3141_v0, %v3143_v12  ;;  %v3158_v34 = vsel %vm3000_vm1, %v3151_v59, %v3153_v44 }
 0xaf6   :  { %v3137_v41 = vmul.f32 %v3136_v11, %v3131_v4  ;;  %v3146_v18 = vmul.f32 %v3145_v43, %v3140_v56 }
 0xaf8   :  { %v3147_v48 = vsub.f32 %v3137_v41, %v3146_v18 }
 0xafa   :  { %v3149_v22 = vsub.f32 0.0, %v3147_v48 }
 0xafc   :  { %v3156_v14 = vrot.slane %v3149_v22, 2 }
 0xafe   :  { %v3159_v24 = vsel %vm3078_vm2, %v3158_v34, %v3156_v14  ;;  %v3160_v16 = vsel %vm3135_vm4, %v3156_v14, %v5739_v51 }
 0xaff   :  { %3161 = vst [vmem:[#allocation12] sm:$0xff] %v3159_v24  ;;  %3162 = vst [vmem:[#allocation12 + $0x8] sm:$0xf] %v3160_v16 }
 0xb00   :  { %3990 = shalt.err (!%p3987_p6)
}
 0xb01   :  { %3186 = dma.vmem_to_hbm [thread:$0]  %s3181_s0, 256, %s5777_s9, [#allocation13], %s4014_s2, %s4014_s2, %s4015_s24  }
 0xb02   :  { %4005 = dma.done.wait [#allocation4], 256  }
 0xb03   :  { %4006 = vsyncadd [#allocation4], 4294967040 }
 0xb04   :  { %4007 = dma.done.wait [#allocation13], 256  }
 0xb05   :  { %4008 = vsyncadd [#allocation13], 4294967040 }
 0xb06   :  { %3193 = vsyncpa [#allocation3], 1 }
 0xb07   :  { %3194 = vsyncpa [#allocation6], 1 }
 0xb08   :  { %3195 = vsyncpa [#allocation9], 1 }
 0xb09   :  { %3196 = vsyncpa [#allocation4], 1 }
 0xb0a   :  { %3197 = vsyncpa [#allocation13], 1 }

</bundles_post_ra>
